<compile_context>
chip_gen: v6e
topology: v6e:2x2x1
jax: 0.10.0
libtpu: 0.0.40
codegen_flags: <defaults>
</compile_context>

<pallas_src>
import functools

import jax
import jax.numpy as jnp
from jax.experimental import pallas as pl
from jax.experimental.pallas import tpu as pltpu


# --------------------------- kernel 1: patch embedding ---------------------------

def _patch_embed_kernel(p_ref, w_ref, cb_ref, pos_ref, o_ref):
    # p_ref: (1, S, K) bf16   w_ref: (K, E) bf16   cb_ref: (1, E) f32   pos_ref: (S, E) f32
    acc = jnp.dot(p_ref[0], w_ref[...], preferred_element_type=jnp.float32)
    o_ref[0] = acc + cb_ref[...] + pos_ref[...]


def patch_embed(patches, w, conv_b, pos):
    B, S, K = patches.shape
    E = w.shape[1]
    return pl.pallas_call(
        _patch_embed_kernel,
        out_shape=jax.ShapeDtypeStruct((B, S, E), jnp.float32),
        grid=(B,),
        in_specs=[pl.BlockSpec((1, S, K), lambda i: (i, 0, 0)),
                  pl.BlockSpec((K, E), lambda i: (0, 0)),
                  pl.BlockSpec((1, E), lambda i: (0, 0)),
                  pl.BlockSpec((S, E), lambda i: (0, 0))],
        out_specs=pl.BlockSpec((1, S, E), lambda i: (i, 0, 0)),
        compiler_params=pltpu.CompilerParams(dimension_semantics=("parallel",)),
    )(patches, w, conv_b, pos)


# ---------------------- kernel 2: fused transformer encoder ----------------------

def _layernorm(x, g, b):
    mu = jnp.mean(x, axis=-1, keepdims=True)
    xc = x - mu
    var = jnp.mean(xc * xc, axis=-1, keepdims=True)   # biased variance (PyTorch LN)
    return xc * jax.lax.rsqrt(var + 1e-5) * g + b


def _encoder_stack_kernel(x0_ref, win_ref, bin_ref, wout_ref, bout_ref,
                          w1_ref, b1_ref, w2_ref, b2_ref,
                          g1_ref, be1_ref, g2_ref, be2_ref,
                          o_ref, ao_ref, *, num_heads, batch, seq):
    """One grid step == one post-norm TransformerEncoderLayer (ReLU FFN)."""
    layer = pl.program_id(0)
    E = o_ref.shape[1]
    hd = E // num_heads
    scale = 1.0 / float(hd) ** 0.5

    @pl.when(layer == 0)
    def _():
        o_ref[...] = x0_ref[...]          # residual stream stays VMEM-resident in o_ref

    x = o_ref[...]                        # (M, E) f32, rows are (batch-major, token)
    xb = x.astype(jnp.bfloat16)

    # ---- self attention ----
    qkv = jnp.dot(xb, win_ref[0], preferred_element_type=jnp.float32) + bin_ref[0]
    q, k, v = qkv[:, :E], qkv[:, E:2 * E], qkv[:, 2 * E:]

    for b in range(batch):                # unrolled; per (batch, head) attention
        r0 = b * seq
        for h in range(num_heads):
            c0 = h * hd
            qh = q[r0:r0 + seq, c0:c0 + hd]
            kh = k[r0:r0 + seq, c0:c0 + hd]
            vh = v[r0:r0 + seq, c0:c0 + hd]
            s = jnp.dot(qh, kh.T, preferred_element_type=jnp.float32) * scale
            m = jnp.max(s, axis=-1, keepdims=True)
            p = jnp.exp(s - m)
            p = p * pl.reciprocal(jnp.sum(p, axis=-1, keepdims=True), approx=True)
            ao_ref[r0:r0 + seq, c0:c0 + hd] = jnp.dot(
                p, vh, preferred_element_type=jnp.float32)

    ao = jnp.dot(ao_ref[...].astype(jnp.bfloat16), wout_ref[0],
                 preferred_element_type=jnp.float32) + bout_ref[0]
    x1 = _layernorm(x + ao, g1_ref[0], be1_ref[0])

    # ---- feed forward ----
    ffh = jnp.dot(x1.astype(jnp.bfloat16), w1_ref[0],
                  preferred_element_type=jnp.float32) + b1_ref[0]
    ffh = jnp.maximum(ffh, 0.0)
    ff = jnp.dot(ffh.astype(jnp.bfloat16), w2_ref[0],
                 preferred_element_type=jnp.float32) + b2_ref[0]
    o_ref[...] = _layernorm(x1 + ff, g2_ref[0], be2_ref[0])


def transformer_stack(x0, sp, *, num_heads, batch, seq):
    M, E = x0.shape
    L = sp["w_in"].shape[0]
    FF = sp["w1"].shape[2]

    def wspec(r, c):
        return pl.BlockSpec((1, r, c), lambda l: (l, 0, 0))

    return pl.pallas_call(
        functools.partial(_encoder_stack_kernel, num_heads=num_heads,
                          batch=batch, seq=seq),
        out_shape=jax.ShapeDtypeStruct((M, E), jnp.float32),
        grid=(L,),
        in_specs=[pl.BlockSpec((M, E), lambda l: (0, 0)),     # x0 (layer 0 only)
                  wspec(E, 3 * E), wspec(1, 3 * E),           # in_proj
                  wspec(E, E), wspec(1, E),                   # out_proj
                  wspec(E, FF), wspec(1, FF),                 # linear1
                  wspec(FF, E), wspec(1, E),                  # linear2
                  wspec(1, E), wspec(1, E),                   # norm1
                  wspec(1, E), wspec(1, E)],                  # norm2
        out_specs=pl.BlockSpec((M, E), lambda l: (0, 0)),     # carried across layers
        scratch_shapes=[pltpu.VMEM((M, E), jnp.float32)],     # attention-head assembly
        compiler_params=pltpu.CompilerParams(dimension_semantics=("arbitrary",)),
    )(x0, sp["w_in"], sp["b_in"], sp["w_out"], sp["b_out"],
      sp["w1"], sp["b1"], sp["w2"], sp["b2"],
      sp["g1"], sp["be1"], sp["g2"], sp["be2"])


def _stack_layer_params(layers):
    def st(f):
        return jnp.stack([f(lp) for lp in layers], 0)
    return dict(
        w_in=st(lambda lp: lp["in_proj_w"].T).astype(jnp.bfloat16),    # (L, E, 3E)
        b_in=st(lambda lp: lp["in_proj_b"].reshape(1, -1)),            # (L, 1, 3E)
        w_out=st(lambda lp: lp["out_proj_w"].T).astype(jnp.bfloat16),  # (L, E, E)
        b_out=st(lambda lp: lp["out_proj_b"].reshape(1, -1)),
        w1=st(lambda lp: lp["lin1_w"].T).astype(jnp.bfloat16),         # (L, E, FF)
        b1=st(lambda lp: lp["lin1_b"].reshape(1, -1)),
        w2=st(lambda lp: lp["lin2_w"].T).astype(jnp.bfloat16),         # (L, FF, E)
        b2=st(lambda lp: lp["lin2_b"].reshape(1, -1)),
        g1=st(lambda lp: lp["norm1_w"].reshape(1, -1)),
        be1=st(lambda lp: lp["norm1_b"].reshape(1, -1)),
        g2=st(lambda lp: lp["norm2_w"].reshape(1, -1)),
        be2=st(lambda lp: lp["norm2_b"].reshape(1, -1)),
    )


# ------------------- kernel 3: fused conv3x3 + final batched matmul -------------------

def _conv_attn_kernel(x_ref, w_ref, cb_ref, q_ref, o_ref, acc_ref, *, H, W):
    # x_ref: (1, C, P_in) f32 zero-padded flattened image (width-padded trick);
    # w_ref: (9, E, C) bf16; cb_ref: (E, 1) f32; q_ref: (1, Q, E) f32.
    Wp = W + 2
    P_out = H * Wp
    xt = x_ref[0]                                         # (C, P_in) f32
    acc_ref[...] = jnp.zeros_like(acc_ref)
    for kk in range(9):                                   # 9 shifted matmuls, no im2col
        ky, kx = divmod(kk, 3)
        off = ky * Wp + kx
        patch = xt[:, off:off + P_out].astype(jnp.bfloat16)      # (C, P_out)
        acc_ref[...] += jnp.dot(w_ref[kk], patch,
                                preferred_element_type=jnp.float32)
    feat = (acc_ref[...] + cb_ref[...]).astype(jnp.bfloat16)     # (E, P_out)
    # final attention matmul: (Q, E) @ (E, P_out) -> lane-dense (Q, P_out)
    o_ref[0] = jnp.dot(q_ref[0].astype(jnp.bfloat16), feat,
                       preferred_element_type=jnp.float32)


def conv3x3_attention(xflat, wc, conv_b, queries, *, H, W):
    B, C, P_in = xflat.shape
    E = wc.shape[1]
    Q = queries.shape[1]
    P_out = H * (W + 2)
    return pl.pallas_call(
        functools.partial(_conv_attn_kernel, H=H, W=W),
        out_shape=jax.ShapeDtypeStruct((B, Q, P_out), jnp.float32),
        grid=(B,),
        in_specs=[pl.BlockSpec((1, C, P_in), lambda i: (i, 0, 0)),
                  pl.BlockSpec((9, E, C), lambda i: (0, 0, 0)),
                  pl.BlockSpec((E, 1), lambda i: (0, 0)),
                  pl.BlockSpec((1, Q, E), lambda i: (i, 0, 0))],
        out_specs=pl.BlockSpec((1, Q, P_out), lambda i: (i, 0, 0)),
        scratch_shapes=[pltpu.VMEM((E, P_out), jnp.float32)],
        compiler_params=pltpu.CompilerParams(dimension_semantics=("parallel",)),
    )(xflat, wc, conv_b, queries)


# ----------------------------------- forward -----------------------------------

def patch_transformer_encoder(x, params, *, patch_size, num_heads, n_query_channels):
    B, C, H, W = x.shape
    E = params["conv3_w"].shape[0]
    P = patch_size
    Hp, Wg = H // P, W // P
    S = Hp * Wg
    Q = n_query_channels

    # ---- patch embedding (stride==kernel conv is a pure relayout) ----
    patches = (x.reshape(B, C, Hp, P, Wg, P)
                 .transpose(0, 2, 4, 1, 3, 5)
                 .reshape(B, S, C * P * P)).astype(jnp.bfloat16)
    wP = params["convP_w"].reshape(E, C * P * P).T.astype(jnp.bfloat16)
    emb = patch_embed(patches, wP, params["convP_b"].reshape(1, E),
                      params["pos"][:S])                       # (B, S, E) f32
    x0 = emb.reshape(B * S, E)                                 # batch-major token rows

    # ---- fused transformer encoder stack ----
    sp = _stack_layer_params(params["layers"])
    tgt = transformer_stack(x0, sp, num_heads=num_heads, batch=B, seq=S)

    queries = tgt.reshape(B, S, E)[:, :Q, :]                   # (B, Q, E)

    # ---- fused conv3x3 + batched matmul ----
    Wp = W + 2
    P_out = H * Wp
    P_in = -(-(2 * Wp + 2 + P_out) // 8) * 8                   # covers max shifted slice
    xflat = jnp.pad(x, ((0, 0), (0, 0), (1, 1), (1, 1))).reshape(B, C, (H + 2) * Wp)
    xflat = jnp.pad(xflat, ((0, 0), (0, 0), (0, P_in - (H + 2) * Wp)))
    wc = params["conv3_w"].transpose(2, 3, 0, 1).reshape(9, E, C).astype(jnp.bfloat16)
    attn = conv3x3_attention(xflat, wc, params["conv3_b"].reshape(E, 1), queries,
                             H=H, W=W)                         # (B, Q, H*(W+2))
    return attn.reshape(B, Q, H, Wp)[..., :W]                  # NCHW (B, Q, H, W)


# ------------------------------- parameter init -------------------------------

def init_params(key, *, in_channels, patch_size, embedding_dim, num_heads,
                num_layers, n_query_channels, dim_feedforward=1024):
    del num_heads, n_query_channels
    E, FF = embedding_dim, dim_feedforward
    keys = iter(jax.random.split(key, 6 + 8 * num_layers))

    def nrm(shape, scale=0.05):
        return scale * jax.random.normal(next(keys), shape, jnp.float32)

    params = {
        "convP_w": nrm((E, in_channels, patch_size, patch_size)),
        "convP_b": nrm((E,)),
        "conv3_w": nrm((E, in_channels, 3, 3)),
        "conv3_b": nrm((E,)),
        "pos": jax.random.uniform(next(keys), (500, E), jnp.float32),  # torch.rand
        "layers": [],
    }
    for _ in range(num_layers):
        params["layers"].append({
            "in_proj_w": nrm((3 * E, E)),
            "in_proj_b": nrm((3 * E,)),
            "out_proj_w": nrm((E, E)),
            "out_proj_b": nrm((E,)),
            "lin1_w": nrm((FF, E)),
            "lin1_b": nrm((FF,)),
            "lin2_w": nrm((E, FF)),
            "lin2_b": nrm((E,)),
            "norm1_w": jnp.ones((E,), jnp.float32),
            "norm1_b": jnp.zeros((E,), jnp.float32),
            "norm2_w": jnp.ones((E,), jnp.float32),
            "norm2_b": jnp.zeros((E,), jnp.float32),
        })
    return params


# ----------------------------------- main -----------------------------------

if __name__ == "__main__":
    B, C, H, W = 2, 4, 16, 16
    PATCH, EMB, HEADS, LAYERS, NQ = 4, 64, 4, 4, 16   # S = (16/4)^2 = 16 >= NQ

    key = jax.random.PRNGKey(0)
    kx, kp = jax.random.split(key)
    x = jax.random.normal(kx, (B, C, H, W), jnp.float32)
    params = init_params(kp, in_channels=C, patch_size=PATCH, embedding_dim=EMB,
                         num_heads=HEADS, num_layers=LAYERS, n_query_channels=NQ)

    fwd = jax.jit(functools.partial(patch_transformer_encoder,
                                    patch_size=PATCH, num_heads=HEADS,
                                    n_query_channels=NQ))
    out = jax.block_until_ready(fwd(x, params))

    assert out.shape == (B, NQ, H, W), out.shape
    assert bool(jnp.all(jnp.isfinite(out)))
    print("KERNEL_OK")
</pallas_src>

<mosaic_0001>
module attributes {stable_mosaic.version = 11 : i64} {
  func.func @_patch_embed_kernel(%arg0: i32, %arg1: memref<1x16x64xbf16, #tpu.memory_space<vmem>>, %arg2: memref<64x64xbf16, #tpu.memory_space<vmem>>, %arg3: memref<1x64xf32, #tpu.memory_space<vmem>>, %arg4: memref<16x64xf32, #tpu.memory_space<vmem>>, %arg5: memref<1x16x64xf32, #tpu.memory_space<vmem>>) attributes {dimension_semantics = [#tpu.dimension_semantics<parallel>], iteration_bounds = array<i64: 2>, scalar_prefetch = 0 : i64, scratch_operands = 0 : i64, tpu.core_type = #tpu.core_type<tc>, window_params = [{transform_indices = @transform_0, window_bounds = array<i64: 1, 16, 64>}, {pipeline_mode = #tpu.pipeline_mode<synchronous>, transform_indices = @transform_1, window_bounds = array<i64: 64, 64>}, {pipeline_mode = #tpu.pipeline_mode<synchronous>, transform_indices = @transform_2, window_bounds = array<i64: 1, 64>}, {pipeline_mode = #tpu.pipeline_mode<synchronous>, transform_indices = @transform_3, window_bounds = array<i64: 16, 64>}, {transform_indices = @transform_4, window_bounds = array<i64: 1, 16, 64>}]} {
    %c0 = arith.constant 0 : index
    %c0_0 = arith.constant 0 : index
    %c0_1 = arith.constant 0 : index
    %0 = vector.load %arg1[%c0, %c0_0, %c0_1] : memref<1x16x64xbf16, #tpu.memory_space<vmem>>, vector<1x16x64xbf16>
    %1 = vector.shape_cast %0 : vector<1x16x64xbf16> to vector<16x64xbf16>
    %c0_2 = arith.constant 0 : index
    %c0_3 = arith.constant 0 : index
    %2 = vector.load %arg2[%c0_2, %c0_3] : memref<64x64xbf16, #tpu.memory_space<vmem>>, vector<64x64xbf16>
    %cst = arith.constant dense<0.000000e+00> : vector<16x64xf32>
    %3 = tpu.matmul %1, %2, %cst {dimension_numbers = #tpu.dot_dimension_numbers<[1], [0], [0], [1], [0, 0, 1, 1], [], []>} : vector<16x64xbf16>, vector<64x64xbf16>, vector<16x64xf32> -> vector<16x64xf32>
    %c0_4 = arith.constant 0 : index
    %c0_5 = arith.constant 0 : index
    %4 = vector.load %arg3[%c0_4, %c0_5] : memref<1x64xf32, #tpu.memory_space<vmem>>, vector<1x64xf32>
    %5 = vector.broadcast %4 : vector<1x64xf32> to vector<16x64xf32>
    %6 = arith.addf %3, %5 : vector<16x64xf32>
    %c0_6 = arith.constant 0 : index
    %c0_7 = arith.constant 0 : index
    %7 = vector.load %arg4[%c0_6, %c0_7] : memref<16x64xf32, #tpu.memory_space<vmem>>, vector<16x64xf32>
    %8 = arith.addf %6, %7 : vector<16x64xf32>
    %c0_8 = arith.constant 0 : index
    %c0_9 = arith.constant 0 : index
    %c0_10 = arith.constant 0 : index
    %9 = vector.load %arg5[%c0_8, %c0_9, %c0_10] : memref<1x16x64xf32, #tpu.memory_space<vmem>>, vector<1x16x64xf32>
    %10 = vector.shape_cast %9 : vector<1x16x64xf32> to vector<16x64xf32>
    %11 = vector.shape_cast %8 : vector<16x64xf32> to vector<1x16x64xf32>
    tpu.vector_store %arg5[%c0_8, %c0_9, %c0_10], %11 {strides = array<i32>} : memref<1x16x64xf32, #tpu.memory_space<vmem>>, vector<1x16x64xf32>,
    return
  }
  func.func @transform_0(%arg0: i32) -> (i32, i32, i32) {
    %c0_i32 = arith.constant 0 : i32
    %c0_i32_0 = arith.constant 0 : i32
    %c0_i32_1 = arith.constant 0 : i32
    return %arg0, %c0_i32, %c0_i32_0 : i32, i32, i32
  }
  func.func @transform_1(%arg0: i32) -> (i32, i32) {
    %c0_i32 = arith.constant 0 : i32
    %c0_i32_0 = arith.constant 0 : i32
    %c0_i32_1 = arith.constant 0 : i32
    return %c0_i32, %c0_i32_0 : i32, i32
  }
  func.func @transform_2(%arg0: i32) -> (i32, i32) {
    %c0_i32 = arith.constant 0 : i32
    %c0_i32_0 = arith.constant 0 : i32
    %c0_i32_1 = arith.constant 0 : i32
    return %c0_i32, %c0_i32_0 : i32, i32
  }
  func.func @transform_3(%arg0: i32) -> (i32, i32) {
    %c0_i32 = arith.constant 0 : i32
    %c0_i32_0 = arith.constant 0 : i32
    %c0_i32_1 = arith.constant 0 : i32
    return %c0_i32, %c0_i32_0 : i32, i32
  }
  func.func @transform_4(%arg0: i32) -> (i32, i32, i32) {
    %c0_i32 = arith.constant 0 : i32
    %c0_i32_0 = arith.constant 0 : i32
    %c0_i32_1 = arith.constant 0 : i32
    return %arg0, %c0_i32, %c0_i32_0 : i32, i32, i32
  }
}

module attributes {stable_mosaic.version = 11 : i64} {
  func.func @_encoder_stack_kernel(%arg0: i32, %arg1: memref<32x64xf32, #tpu.memory_space<vmem>>, %arg2: memref<1x64x192xbf16, #tpu.memory_space<vmem>>, %arg3: memref<1x1x192xf32, #tpu.memory_space<vmem>>, %arg4: memref<1x64x64xbf16, #tpu.memory_space<vmem>>, %arg5: memref<1x1x64xf32, #tpu.memory_space<vmem>>, %arg6: memref<1x64x1024xbf16, #tpu.memory_space<vmem>>, %arg7: memref<1x1x1024xf32, #tpu.memory_space<vmem>>, %arg8: memref<1x1024x64xbf16, #tpu.memory_space<vmem>>, %arg9: memref<1x1x64xf32, #tpu.memory_space<vmem>>, %arg10: memref<1x1x64xf32, #tpu.memory_space<vmem>>, %arg11: memref<1x1x64xf32, #tpu.memory_space<vmem>>, %arg12: memref<1x1x64xf32, #tpu.memory_space<vmem>>, %arg13: memref<1x1x64xf32, #tpu.memory_space<vmem>>, %arg14: memref<32x64xf32, #tpu.memory_space<vmem>>, %arg15: memref<32x64xf32, #tpu.memory_space<vmem>>) attributes {dimension_semantics = [#tpu.dimension_semantics<arbitrary>], iteration_bounds = array<i64: 4>, scalar_prefetch = 0 : i64, scratch_operands = 1 : i64, tpu.core_type = #tpu.core_type<tc>, window_params = [{pipeline_mode = #tpu.pipeline_mode<synchronous>, transform_indices = @transform_0, window_bounds = array<i64: 32, 64>}, {transform_indices = @transform_1, window_bounds = array<i64: 1, 64, 192>}, {transform_indices = @transform_2, window_bounds = array<i64: 1, 1, 192>}, {transform_indices = @transform_3, window_bounds = array<i64: 1, 64, 64>}, {transform_indices = @transform_4, window_bounds = array<i64: 1, 1, 64>}, {transform_indices = @transform_5, window_bounds = array<i64: 1, 64, 1024>}, {transform_indices = @transform_6, window_bounds = array<i64: 1, 1, 1024>}, {transform_indices = @transform_7, window_bounds = array<i64: 1, 1024, 64>}, {transform_indices = @transform_8, window_bounds = array<i64: 1, 1, 64>}, {transform_indices = @transform_9, window_bounds = array<i64: 1, 1, 64>}, {transform_indices = @transform_10, window_bounds = array<i64: 1, 1, 64>}, {transform_indices = @transform_11, window_bounds = array<i64: 1, 1, 64>}, {transform_indices = @transform_12, window_bounds = array<i64: 1, 1, 64>}, {pipeline_mode = #tpu.pipeline_mode<synchronous>, transform_indices = @transform_13, window_bounds = array<i64: 32, 64>}]} {
    %c0_i32 = arith.constant 0 : i32
    %0 = arith.cmpi eq, %arg0, %c0_i32 : i32
    %1 = arith.extui %0 : i1 to i32
    %c0_i32_0 = arith.constant 0 : i32
    %2 = arith.cmpi ne, %1, %c0_i32_0 : i32
    scf.if %2 {
      %c0_109 = arith.constant 0 : index
      %c0_110 = arith.constant 0 : index
      %245 = vector.load %arg1[%c0_109, %c0_110] : memref<32x64xf32, #tpu.memory_space<vmem>>, vector<32x64xf32>
      %c0_111 = arith.constant 0 : index
      %c0_112 = arith.constant 0 : index
      %246 = vector.load %arg14[%c0_111, %c0_112] : memref<32x64xf32, #tpu.memory_space<vmem>>, vector<32x64xf32>
      tpu.vector_store %arg14[%c0_111, %c0_112], %245 {strides = array<i32>} : memref<32x64xf32, #tpu.memory_space<vmem>>, vector<32x64xf32>,
    } else {
    }
    %c0 = arith.constant 0 : index
    %c0_1 = arith.constant 0 : index
    %3 = vector.load %arg14[%c0, %c0_1] : memref<32x64xf32, #tpu.memory_space<vmem>>, vector<32x64xf32>
    %4 = arith.truncf %3 : vector<32x64xf32> to vector<32x64xbf16>
    %c0_2 = arith.constant 0 : index
    %c0_3 = arith.constant 0 : index
    %c0_4 = arith.constant 0 : index
    %5 = vector.load %arg2[%c0_2, %c0_3, %c0_4] : memref<1x64x192xbf16, #tpu.memory_space<vmem>>, vector<1x64x192xbf16>
    %6 = vector.shape_cast %5 : vector<1x64x192xbf16> to vector<64x192xbf16>
    %cst = arith.constant dense<0.000000e+00> : vector<32x192xf32>
    %7 = tpu.matmul %4, %6, %cst {dimension_numbers = #tpu.dot_dimension_numbers<[1], [0], [0], [1], [0, 0, 1, 1], [], []>} : vector<32x64xbf16>, vector<64x192xbf16>, vector<32x192xf32> -> vector<32x192xf32>
    %c0_5 = arith.constant 0 : index
    %c0_6 = arith.constant 0 : index
    %c0_7 = arith.constant 0 : index
    %8 = vector.load %arg3[%c0_5, %c0_6, %c0_7] : memref<1x1x192xf32, #tpu.memory_space<vmem>>, vector<1x1x192xf32>
    %9 = vector.shape_cast %8 : vector<1x1x192xf32> to vector<1x192xf32>
    %10 = vector.broadcast %9 : vector<1x192xf32> to vector<32x192xf32>
    %11 = arith.addf %7, %10 : vector<32x192xf32>
    %12 = vector.extract_strided_slice %11 {offsets = [0, 0], sizes = [32, 64], strides = [1, 1]} : vector<32x192xf32> to vector<32x64xf32>
    %13 = vector.extract_strided_slice %11 {offsets = [0, 64], sizes = [32, 64], strides = [1, 1]} : vector<32x192xf32> to vector<32x64xf32>
    %14 = vector.extract_strided_slice %11 {offsets = [0, 128], sizes = [32, 64], strides = [1, 1]} : vector<32x192xf32> to vector<32x64xf32>
    %15 = vector.extract_strided_slice %12 {offsets = [0, 0], sizes = [16, 16], strides = [1, 1]} : vector<32x64xf32> to vector<16x16xf32>
    %16 = vector.extract_strided_slice %13 {offsets = [0, 0], sizes = [16, 16], strides = [1, 1]} : vector<32x64xf32> to vector<16x16xf32>
    %17 = vector.extract_strided_slice %14 {offsets = [0, 0], sizes = [16, 16], strides = [1, 1]} : vector<32x64xf32> to vector<16x16xf32>
    %18 = tpu.transpose %16, [1, 0] : vector<16x16xf32> -> vector<16x16xf32>
    %cst_8 = arith.constant dense<0.000000e+00> : vector<16x16xf32>
    %19 = tpu.matmul %15, %18, %cst_8 {dimension_numbers = #tpu.dot_dimension_numbers<[1], [0], [0], [1], [0, 0, 1, 1], [], []>} : vector<16x16xf32>, vector<16x16xf32>, vector<16x16xf32> -> vector<16x16xf32>
    %cst_9 = arith.constant 2.500000e-01 : f32
    %20 = vector.broadcast %cst_9 : f32 to vector<16x16xf32>
    %21 = arith.mulf %19, %20 : vector<16x16xf32>
    %cst_10 = arith.constant dense<0xFF800000> : vector<16xf32>
    %22 = vector.multi_reduction <maximumf>, %21, %cst_10 [1] : vector<16x16xf32> to vector<16xf32>
    %23 = vector.shape_cast %22 : vector<16xf32> to vector<16x1xf32>
    %24 = vector.broadcast %23 : vector<16x1xf32> to vector<16x16xf32>
    %25 = arith.subf %21, %24 : vector<16x16xf32>
    %26 = math.exp %25 : vector<16x16xf32>
    %cst_11 = arith.constant dense<0.000000e+00> : vector<16xf32>
    %27 = vector.multi_reduction <add>, %26, %cst_11 [1] : vector<16x16xf32> to vector<16xf32>
    %28 = vector.shape_cast %27 : vector<16xf32> to vector<16x1xf32>
    %29 = tpu.reciprocal %28 {approx = true} : vector<16x1xf32> -> vector<16x1xf32>
    %30 = vector.broadcast %29 : vector<16x1xf32> to vector<16x16xf32>
    %31 = arith.mulf %26, %30 : vector<16x16xf32>
    %cst_12 = arith.constant dense<0.000000e+00> : vector<16x16xf32>
    %32 = tpu.matmul %31, %17, %cst_12 {dimension_numbers = #tpu.dot_dimension_numbers<[1], [0], [0], [1], [0, 0, 1, 1], [], []>} : vector<16x16xf32>, vector<16x16xf32>, vector<16x16xf32> -> vector<16x16xf32>
    %c0_13 = arith.constant 0 : index
    %c0_14 = arith.constant 0 : index
    %33 = vector.load %arg15[%c0_13, %c0_14] : memref<32x64xf32, #tpu.memory_space<vmem>>, vector<16x16xf32>
    tpu.vector_store %arg15[%c0_13, %c0_14], %32 {strides = array<i32>} : memref<32x64xf32, #tpu.memory_space<vmem>>, vector<16x16xf32>,
    %34 = vector.extract_strided_slice %12 {offsets = [0, 16], sizes = [16, 16], strides = [1, 1]} : vector<32x64xf32> to vector<16x16xf32>
    %35 = vector.extract_strided_slice %13 {offsets = [0, 16], sizes = [16, 16], strides = [1, 1]} : vector<32x64xf32> to vector<16x16xf32>
    %36 = vector.extract_strided_slice %14 {offsets = [0, 16], sizes = [16, 16], strides = [1, 1]} : vector<32x64xf32> to vector<16x16xf32>
    %37 = tpu.transpose %35, [1, 0] : vector<16x16xf32> -> vector<16x16xf32>
    %cst_15 = arith.constant dense<0.000000e+00> : vector<16x16xf32>
    %38 = tpu.matmul %34, %37, %cst_15 {dimension_numbers = #tpu.dot_dimension_numbers<[1], [0], [0], [1], [0, 0, 1, 1], [], []>} : vector<16x16xf32>, vector<16x16xf32>, vector<16x16xf32> -> vector<16x16xf32>
    %cst_16 = arith.constant 2.500000e-01 : f32
    %39 = vector.broadcast %cst_16 : f32 to vector<16x16xf32>
    %40 = arith.mulf %38, %39 : vector<16x16xf32>
    %cst_17 = arith.constant dense<0xFF800000> : vector<16xf32>
    %41 = vector.multi_reduction <maximumf>, %40, %cst_17 [1] : vector<16x16xf32> to vector<16xf32>
    %42 = vector.shape_cast %41 : vector<16xf32> to vector<16x1xf32>
    %43 = vector.broadcast %42 : vector<16x1xf32> to vector<16x16xf32>
    %44 = arith.subf %40, %43 : vector<16x16xf32>
    %45 = math.exp %44 : vector<16x16xf32>
    %cst_18 = arith.constant dense<0.000000e+00> : vector<16xf32>
    %46 = vector.multi_reduction <add>, %45, %cst_18 [1] : vector<16x16xf32> to vector<16xf32>
    %47 = vector.shape_cast %46 : vector<16xf32> to vector<16x1xf32>
    %48 = tpu.reciprocal %47 {approx = true} : vector<16x1xf32> -> vector<16x1xf32>
    %49 = vector.broadcast %48 : vector<16x1xf32> to vector<16x16xf32>
    %50 = arith.mulf %45, %49 : vector<16x16xf32>
    %cst_19 = arith.constant dense<0.000000e+00> : vector<16x16xf32>
    %51 = tpu.matmul %50, %36, %cst_19 {dimension_numbers = #tpu.dot_dimension_numbers<[1], [0], [0], [1], [0, 0, 1, 1], [], []>} : vector<16x16xf32>, vector<16x16xf32>, vector<16x16xf32> -> vector<16x16xf32>
    %c0_20 = arith.constant 0 : index
    %c16 = arith.constant 16 : index
    %52 = vector.load %arg15[%c0_20, %c16] : memref<32x64xf32, #tpu.memory_space<vmem>>, vector<16x16xf32>
    tpu.vector_store %arg15[%c0_20, %c16], %51 {strides = array<i32>} : memref<32x64xf32, #tpu.memory_space<vmem>>, vector<16x16xf32>,
    %53 = vector.extract_strided_slice %12 {offsets = [0, 32], sizes = [16, 16], strides = [1, 1]} : vector<32x64xf32> to vector<16x16xf32>
    %54 = vector.extract_strided_slice %13 {offsets = [0, 32], sizes = [16, 16], strides = [1, 1]} : vector<32x64xf32> to vector<16x16xf32>
    %55 = vector.extract_strided_slice %14 {offsets = [0, 32], sizes = [16, 16], strides = [1, 1]} : vector<32x64xf32> to vector<16x16xf32>
    %56 = tpu.transpose %54, [1, 0] : vector<16x16xf32> -> vector<16x16xf32>
    %cst_21 = arith.constant dense<0.000000e+00> : vector<16x16xf32>
    %57 = tpu.matmul %53, %56, %cst_21 {dimension_numbers = #tpu.dot_dimension_numbers<[1], [0], [0], [1], [0, 0, 1, 1], [], []>} : vector<16x16xf32>, vector<16x16xf32>, vector<16x16xf32> -> vector<16x16xf32>
    %cst_22 = arith.constant 2.500000e-01 : f32
    %58 = vector.broadcast %cst_22 : f32 to vector<16x16xf32>
    %59 = arith.mulf %57, %58 : vector<16x16xf32>
    %cst_23 = arith.constant dense<0xFF800000> : vector<16xf32>
    %60 = vector.multi_reduction <maximumf>, %59, %cst_23 [1] : vector<16x16xf32> to vector<16xf32>
    %61 = vector.shape_cast %60 : vector<16xf32> to vector<16x1xf32>
    %62 = vector.broadcast %61 : vector<16x1xf32> to vector<16x16xf32>
    %63 = arith.subf %59, %62 : vector<16x16xf32>
    %64 = math.exp %63 : vector<16x16xf32>
    %cst_24 = arith.constant dense<0.000000e+00> : vector<16xf32>
    %65 = vector.multi_reduction <add>, %64, %cst_24 [1] : vector<16x16xf32> to vector<16xf32>
    %66 = vector.shape_cast %65 : vector<16xf32> to vector<16x1xf32>
    %67 = tpu.reciprocal %66 {approx = true} : vector<16x1xf32> -> vector<16x1xf32>
    %68 = vector.broadcast %67 : vector<16x1xf32> to vector<16x16xf32>
    %69 = arith.mulf %64, %68 : vector<16x16xf32>
    %cst_25 = arith.constant dense<0.000000e+00> : vector<16x16xf32>
    %70 = tpu.matmul %69, %55, %cst_25 {dimension_numbers = #tpu.dot_dimension_numbers<[1], [0], [0], [1], [0, 0, 1, 1], [], []>} : vector<16x16xf32>, vector<16x16xf32>, vector<16x16xf32> -> vector<16x16xf32>
    %c0_26 = arith.constant 0 : index
    %c32 = arith.constant 32 : index
    %71 = vector.load %arg15[%c0_26, %c32] : memref<32x64xf32, #tpu.memory_space<vmem>>, vector<16x16xf32>
    tpu.vector_store %arg15[%c0_26, %c32], %70 {strides = array<i32>} : memref<32x64xf32, #tpu.memory_space<vmem>>, vector<16x16xf32>,
    %72 = vector.extract_strided_slice %12 {offsets = [0, 48], sizes = [16, 16], strides = [1, 1]} : vector<32x64xf32> to vector<16x16xf32>
    %73 = vector.extract_strided_slice %13 {offsets = [0, 48], sizes = [16, 16], strides = [1, 1]} : vector<32x64xf32> to vector<16x16xf32>
    %74 = vector.extract_strided_slice %14 {offsets = [0, 48], sizes = [16, 16], strides = [1, 1]} : vector<32x64xf32> to vector<16x16xf32>
    %75 = tpu.transpose %73, [1, 0] : vector<16x16xf32> -> vector<16x16xf32>
    %cst_27 = arith.constant dense<0.000000e+00> : vector<16x16xf32>
    %76 = tpu.matmul %72, %75, %cst_27 {dimension_numbers = #tpu.dot_dimension_numbers<[1], [0], [0], [1], [0, 0, 1, 1], [], []>} : vector<16x16xf32>, vector<16x16xf32>, vector<16x16xf32> -> vector<16x16xf32>
    %cst_28 = arith.constant 2.500000e-01 : f32
    %77 = vector.broadcast %cst_28 : f32 to vector<16x16xf32>
    %78 = arith.mulf %76, %77 : vector<16x16xf32>
    %cst_29 = arith.constant dense<0xFF800000> : vector<16xf32>
    %79 = vector.multi_reduction <maximumf>, %78, %cst_29 [1] : vector<16x16xf32> to vector<16xf32>
    %80 = vector.shape_cast %79 : vector<16xf32> to vector<16x1xf32>
    %81 = vector.broadcast %80 : vector<16x1xf32> to vector<16x16xf32>
    %82 = arith.subf %78, %81 : vector<16x16xf32>
    %83 = math.exp %82 : vector<16x16xf32>
    %cst_30 = arith.constant dense<0.000000e+00> : vector<16xf32>
    %84 = vector.multi_reduction <add>, %83, %cst_30 [1] : vector<16x16xf32> to vector<16xf32>
    %85 = vector.shape_cast %84 : vector<16xf32> to vector<16x1xf32>
    %86 = tpu.reciprocal %85 {approx = true} : vector<16x1xf32> -> vector<16x1xf32>
    %87 = vector.broadcast %86 : vector<16x1xf32> to vector<16x16xf32>
    %88 = arith.mulf %83, %87 : vector<16x16xf32>
    %cst_31 = arith.constant dense<0.000000e+00> : vector<16x16xf32>
    %89 = tpu.matmul %88, %74, %cst_31 {dimension_numbers = #tpu.dot_dimension_numbers<[1], [0], [0], [1], [0, 0, 1, 1], [], []>} : vector<16x16xf32>, vector<16x16xf32>, vector<16x16xf32> -> vector<16x16xf32>
    %c0_32 = arith.constant 0 : index
    %c48 = arith.constant 48 : index
    %90 = vector.load %arg15[%c0_32, %c48] : memref<32x64xf32, #tpu.memory_space<vmem>>, vector<16x16xf32>
    tpu.vector_store %arg15[%c0_32, %c48], %89 {strides = array<i32>} : memref<32x64xf32, #tpu.memory_space<vmem>>, vector<16x16xf32>,
    %91 = vector.extract_strided_slice %12 {offsets = [16, 0], sizes = [16, 16], strides = [1, 1]} : vector<32x64xf32> to vector<16x16xf32>
    %92 = vector.extract_strided_slice %13 {offsets = [16, 0], sizes = [16, 16], strides = [1, 1]} : vector<32x64xf32> to vector<16x16xf32>
    %93 = vector.extract_strided_slice %14 {offsets = [16, 0], sizes = [16, 16], strides = [1, 1]} : vector<32x64xf32> to vector<16x16xf32>
    %94 = tpu.transpose %92, [1, 0] : vector<16x16xf32> -> vector<16x16xf32>
    %cst_33 = arith.constant dense<0.000000e+00> : vector<16x16xf32>
    %95 = tpu.matmul %91, %94, %cst_33 {dimension_numbers = #tpu.dot_dimension_numbers<[1], [0], [0], [1], [0, 0, 1, 1], [], []>} : vector<16x16xf32>, vector<16x16xf32>, vector<16x16xf32> -> vector<16x16xf32>
    %cst_34 = arith.constant 2.500000e-01 : f32
    %96 = vector.broadcast %cst_34 : f32 to vector<16x16xf32>
    %97 = arith.mulf %95, %96 : vector<16x16xf32>
    %cst_35 = arith.constant dense<0xFF800000> : vector<16xf32>
    %98 = vector.multi_reduction <maximumf>, %97, %cst_35 [1] : vector<16x16xf32> to vector<16xf32>
    %99 = vector.shape_cast %98 : vector<16xf32> to vector<16x1xf32>
    %100 = vector.broadcast %99 : vector<16x1xf32> to vector<16x16xf32>
    %101 = arith.subf %97, %100 : vector<16x16xf32>
    %102 = math.exp %101 : vector<16x16xf32>
    %cst_36 = arith.constant dense<0.000000e+00> : vector<16xf32>
    %103 = vector.multi_reduction <add>, %102, %cst_36 [1] : vector<16x16xf32> to vector<16xf32>
    %104 = vector.shape_cast %103 : vector<16xf32> to vector<16x1xf32>
    %105 = tpu.reciprocal %104 {approx = true} : vector<16x1xf32> -> vector<16x1xf32>
    %106 = vector.broadcast %105 : vector<16x1xf32> to vector<16x16xf32>
    %107 = arith.mulf %102, %106 : vector<16x16xf32>
    %cst_37 = arith.constant dense<0.000000e+00> : vector<16x16xf32>
    %108 = tpu.matmul %107, %93, %cst_37 {dimension_numbers = #tpu.dot_dimension_numbers<[1], [0], [0], [1], [0, 0, 1, 1], [], []>} : vector<16x16xf32>, vector<16x16xf32>, vector<16x16xf32> -> vector<16x16xf32>
    %c16_38 = arith.constant 16 : index
    %c0_39 = arith.constant 0 : index
    %109 = vector.load %arg15[%c16_38, %c0_39] : memref<32x64xf32, #tpu.memory_space<vmem>>, vector<16x16xf32>
    tpu.vector_store %arg15[%c16_38, %c0_39], %108 {strides = array<i32>} : memref<32x64xf32, #tpu.memory_space<vmem>>, vector<16x16xf32>,
    %110 = vector.extract_strided_slice %12 {offsets = [16, 16], sizes = [16, 16], strides = [1, 1]} : vector<32x64xf32> to vector<16x16xf32>
    %111 = vector.extract_strided_slice %13 {offsets = [16, 16], sizes = [16, 16], strides = [1, 1]} : vector<32x64xf32> to vector<16x16xf32>
    %112 = vector.extract_strided_slice %14 {offsets = [16, 16], sizes = [16, 16], strides = [1, 1]} : vector<32x64xf32> to vector<16x16xf32>
    %113 = tpu.transpose %111, [1, 0] : vector<16x16xf32> -> vector<16x16xf32>
    %cst_40 = arith.constant dense<0.000000e+00> : vector<16x16xf32>
    %114 = tpu.matmul %110, %113, %cst_40 {dimension_numbers = #tpu.dot_dimension_numbers<[1], [0], [0], [1], [0, 0, 1, 1], [], []>} : vector<16x16xf32>, vector<16x16xf32>, vector<16x16xf32> -> vector<16x16xf32>
    %cst_41 = arith.constant 2.500000e-01 : f32
    %115 = vector.broadcast %cst_41 : f32 to vector<16x16xf32>
    %116 = arith.mulf %114, %115 : vector<16x16xf32>
    %cst_42 = arith.constant dense<0xFF800000> : vector<16xf32>
    %117 = vector.multi_reduction <maximumf>, %116, %cst_42 [1] : vector<16x16xf32> to vector<16xf32>
    %118 = vector.shape_cast %117 : vector<16xf32> to vector<16x1xf32>
    %119 = vector.broadcast %118 : vector<16x1xf32> to vector<16x16xf32>
    %120 = arith.subf %116, %119 : vector<16x16xf32>
    %121 = math.exp %120 : vector<16x16xf32>
    %cst_43 = arith.constant dense<0.000000e+00> : vector<16xf32>
    %122 = vector.multi_reduction <add>, %121, %cst_43 [1] : vector<16x16xf32> to vector<16xf32>
    %123 = vector.shape_cast %122 : vector<16xf32> to vector<16x1xf32>
    %124 = tpu.reciprocal %123 {approx = true} : vector<16x1xf32> -> vector<16x1xf32>
    %125 = vector.broadcast %124 : vector<16x1xf32> to vector<16x16xf32>
    %126 = arith.mulf %121, %125 : vector<16x16xf32>
    %cst_44 = arith.constant dense<0.000000e+00> : vector<16x16xf32>
    %127 = tpu.matmul %126, %112, %cst_44 {dimension_numbers = #tpu.dot_dimension_numbers<[1], [0], [0], [1], [0, 0, 1, 1], [], []>} : vector<16x16xf32>, vector<16x16xf32>, vector<16x16xf32> -> vector<16x16xf32>
    %c16_45 = arith.constant 16 : index
    %c16_46 = arith.constant 16 : index
    %128 = vector.load %arg15[%c16_45, %c16_46] : memref<32x64xf32, #tpu.memory_space<vmem>>, vector<16x16xf32>
    tpu.vector_store %arg15[%c16_45, %c16_46], %127 {strides = array<i32>} : memref<32x64xf32, #tpu.memory_space<vmem>>, vector<16x16xf32>,
    %129 = vector.extract_strided_slice %12 {offsets = [16, 32], sizes = [16, 16], strides = [1, 1]} : vector<32x64xf32> to vector<16x16xf32>
    %130 = vector.extract_strided_slice %13 {offsets = [16, 32], sizes = [16, 16], strides = [1, 1]} : vector<32x64xf32> to vector<16x16xf32>
    %131 = vector.extract_strided_slice %14 {offsets = [16, 32], sizes = [16, 16], strides = [1, 1]} : vector<32x64xf32> to vector<16x16xf32>
    %132 = tpu.transpose %130, [1, 0] : vector<16x16xf32> -> vector<16x16xf32>
    %cst_47 = arith.constant dense<0.000000e+00> : vector<16x16xf32>
    %133 = tpu.matmul %129, %132, %cst_47 {dimension_numbers = #tpu.dot_dimension_numbers<[1], [0], [0], [1], [0, 0, 1, 1], [], []>} : vector<16x16xf32>, vector<16x16xf32>, vector<16x16xf32> -> vector<16x16xf32>
    %cst_48 = arith.constant 2.500000e-01 : f32
    %134 = vector.broadcast %cst_48 : f32 to vector<16x16xf32>
    %135 = arith.mulf %133, %134 : vector<16x16xf32>
    %cst_49 = arith.constant dense<0xFF800000> : vector<16xf32>
    %136 = vector.multi_reduction <maximumf>, %135, %cst_49 [1] : vector<16x16xf32> to vector<16xf32>
    %137 = vector.shape_cast %136 : vector<16xf32> to vector<16x1xf32>
    %138 = vector.broadcast %137 : vector<16x1xf32> to vector<16x16xf32>
    %139 = arith.subf %135, %138 : vector<16x16xf32>
    %140 = math.exp %139 : vector<16x16xf32>
    %cst_50 = arith.constant dense<0.000000e+00> : vector<16xf32>
    %141 = vector.multi_reduction <add>, %140, %cst_50 [1] : vector<16x16xf32> to vector<16xf32>
    %142 = vector.shape_cast %141 : vector<16xf32> to vector<16x1xf32>
    %143 = tpu.reciprocal %142 {approx = true} : vector<16x1xf32> -> vector<16x1xf32>
    %144 = vector.broadcast %143 : vector<16x1xf32> to vector<16x16xf32>
    %145 = arith.mulf %140, %144 : vector<16x16xf32>
    %cst_51 = arith.constant dense<0.000000e+00> : vector<16x16xf32>
    %146 = tpu.matmul %145, %131, %cst_51 {dimension_numbers = #tpu.dot_dimension_numbers<[1], [0], [0], [1], [0, 0, 1, 1], [], []>} : vector<16x16xf32>, vector<16x16xf32>, vector<16x16xf32> -> vector<16x16xf32>
    %c16_52 = arith.constant 16 : index
    %c32_53 = arith.constant 32 : index
    %147 = vector.load %arg15[%c16_52, %c32_53] : memref<32x64xf32, #tpu.memory_space<vmem>>, vector<16x16xf32>
    tpu.vector_store %arg15[%c16_52, %c32_53], %146 {strides = array<i32>} : memref<32x64xf32, #tpu.memory_space<vmem>>, vector<16x16xf32>,
    %148 = vector.extract_strided_slice %12 {offsets = [16, 48], sizes = [16, 16], strides = [1, 1]} : vector<32x64xf32> to vector<16x16xf32>
    %149 = vector.extract_strided_slice %13 {offsets = [16, 48], sizes = [16, 16], strides = [1, 1]} : vector<32x64xf32> to vector<16x16xf32>
    %150 = vector.extract_strided_slice %14 {offsets = [16, 48], sizes = [16, 16], strides = [1, 1]} : vector<32x64xf32> to vector<16x16xf32>
    %151 = tpu.transpose %149, [1, 0] : vector<16x16xf32> -> vector<16x16xf32>
    %cst_54 = arith.constant dense<0.000000e+00> : vector<16x16xf32>
    %152 = tpu.matmul %148, %151, %cst_54 {dimension_numbers = #tpu.dot_dimension_numbers<[1], [0], [0], [1], [0, 0, 1, 1], [], []>} : vector<16x16xf32>, vector<16x16xf32>, vector<16x16xf32> -> vector<16x16xf32>
    %cst_55 = arith.constant 2.500000e-01 : f32
    %153 = vector.broadcast %cst_55 : f32 to vector<16x16xf32>
    %154 = arith.mulf %152, %153 : vector<16x16xf32>
    %cst_56 = arith.constant dense<0xFF800000> : vector<16xf32>
    %155 = vector.multi_reduction <maximumf>, %154, %cst_56 [1] : vector<16x16xf32> to vector<16xf32>
    %156 = vector.shape_cast %155 : vector<16xf32> to vector<16x1xf32>
    %157 = vector.broadcast %156 : vector<16x1xf32> to vector<16x16xf32>
    %158 = arith.subf %154, %157 : vector<16x16xf32>
    %159 = math.exp %158 : vector<16x16xf32>
    %cst_57 = arith.constant dense<0.000000e+00> : vector<16xf32>
    %160 = vector.multi_reduction <add>, %159, %cst_57 [1] : vector<16x16xf32> to vector<16xf32>
    %161 = vector.shape_cast %160 : vector<16xf32> to vector<16x1xf32>
    %162 = tpu.reciprocal %161 {approx = true} : vector<16x1xf32> -> vector<16x1xf32>
    %163 = vector.broadcast %162 : vector<16x1xf32> to vector<16x16xf32>
    %164 = arith.mulf %159, %163 : vector<16x16xf32>
    %cst_58 = arith.constant dense<0.000000e+00> : vector<16x16xf32>
    %165 = tpu.matmul %164, %150, %cst_58 {dimension_numbers = #tpu.dot_dimension_numbers<[1], [0], [0], [1], [0, 0, 1, 1], [], []>} : vector<16x16xf32>, vector<16x16xf32>, vector<16x16xf32> -> vector<16x16xf32>
    %c16_59 = arith.constant 16 : index
    %c48_60 = arith.constant 48 : index
    %166 = vector.load %arg15[%c16_59, %c48_60] : memref<32x64xf32, #tpu.memory_space<vmem>>, vector<16x16xf32>
    tpu.vector_store %arg15[%c16_59, %c48_60], %165 {strides = array<i32>} : memref<32x64xf32, #tpu.memory_space<vmem>>, vector<16x16xf32>,
    %c0_61 = arith.constant 0 : index
    %c0_62 = arith.constant 0 : index
    %167 = vector.load %arg15[%c0_61, %c0_62] : memref<32x64xf32, #tpu.memory_space<vmem>>, vector<32x64xf32>
    %168 = arith.truncf %167 : vector<32x64xf32> to vector<32x64xbf16>
    %c0_63 = arith.constant 0 : index
    %c0_64 = arith.constant 0 : index
    %c0_65 = arith.constant 0 : index
    %169 = vector.load %arg4[%c0_63, %c0_64, %c0_65] : memref<1x64x64xbf16, #tpu.memory_space<vmem>>, vector<1x64x64xbf16>
    %170 = vector.shape_cast %169 : vector<1x64x64xbf16> to vector<64x64xbf16>
    %cst_66 = arith.constant dense<0.000000e+00> : vector<32x64xf32>
    %171 = tpu.matmul %168, %170, %cst_66 {dimension_numbers = #tpu.dot_dimension_numbers<[1], [0], [0], [1], [0, 0, 1, 1], [], []>} : vector<32x64xbf16>, vector<64x64xbf16>, vector<32x64xf32> -> vector<32x64xf32>
    %c0_67 = arith.constant 0 : index
    %c0_68 = arith.constant 0 : index
    %c0_69 = arith.constant 0 : index
    %172 = vector.load %arg5[%c0_67, %c0_68, %c0_69] : memref<1x1x64xf32, #tpu.memory_space<vmem>>, vector<1x1x64xf32>
    %173 = vector.shape_cast %172 : vector<1x1x64xf32> to vector<1x64xf32>
    %174 = vector.broadcast %173 : vector<1x64xf32> to vector<32x64xf32>
    %175 = arith.addf %171, %174 : vector<32x64xf32>
    %176 = arith.addf %3, %175 : vector<32x64xf32>
    %c0_70 = arith.constant 0 : index
    %c0_71 = arith.constant 0 : index
    %c0_72 = arith.constant 0 : index
    %177 = vector.load %arg10[%c0_70, %c0_71, %c0_72] : memref<1x1x64xf32, #tpu.memory_space<vmem>>, vector<1x1x64xf32>
    %178 = vector.shape_cast %177 : vector<1x1x64xf32> to vector<1x64xf32>
    %c0_73 = arith.constant 0 : index
    %c0_74 = arith.constant 0 : index
    %c0_75 = arith.constant 0 : index
    %179 = vector.load %arg11[%c0_73, %c0_74, %c0_75] : memref<1x1x64xf32, #tpu.memory_space<vmem>>, vector<1x1x64xf32>
    %180 = vector.shape_cast %179 : vector<1x1x64xf32> to vector<1x64xf32>
    %cst_76 = arith.constant dense<0.000000e+00> : vector<32xf32>
    %181 = vector.multi_reduction <add>, %176, %cst_76 [1] : vector<32x64xf32> to vector<32xf32>
    %182 = vector.shape_cast %181 : vector<32xf32> to vector<32x1xf32>
    %cst_77 = arith.constant 6.400000e+01 : f32
    %183 = vector.broadcast %cst_77 : f32 to vector<32x1xf32>
    %184 = arith.divf %182, %183 : vector<32x1xf32>
    %185 = vector.broadcast %184 : vector<32x1xf32> to vector<32x64xf32>
    %186 = arith.subf %176, %185 : vector<32x64xf32>
    %187 = arith.mulf %186, %186 : vector<32x64xf32>
    %cst_78 = arith.constant dense<0.000000e+00> : vector<32xf32>
    %188 = vector.multi_reduction <add>, %187, %cst_78 [1] : vector<32x64xf32> to vector<32xf32>
    %189 = vector.shape_cast %188 : vector<32xf32> to vector<32x1xf32>
    %cst_79 = arith.constant 6.400000e+01 : f32
    %190 = vector.broadcast %cst_79 : f32 to vector<32x1xf32>
    %191 = arith.divf %189, %190 : vector<32x1xf32>
    %cst_80 = arith.constant 9.99999974E-6 : f32
    %192 = vector.broadcast %cst_80 : f32 to vector<32x1xf32>
    %193 = arith.addf %191, %192 : vector<32x1xf32>
    %194 = math.rsqrt %193 : vector<32x1xf32>
    %195 = vector.broadcast %194 : vector<32x1xf32> to vector<32x64xf32>
    %196 = arith.mulf %186, %195 : vector<32x64xf32>
    %197 = vector.broadcast %178 : vector<1x64xf32> to vector<32x64xf32>
    %198 = arith.mulf %196, %197 : vector<32x64xf32>
    %199 = vector.broadcast %180 : vector<1x64xf32> to vector<32x64xf32>
    %200 = arith.addf %198, %199 : vector<32x64xf32>
    %201 = arith.truncf %200 : vector<32x64xf32> to vector<32x64xbf16>
    %c0_81 = arith.constant 0 : index
    %c0_82 = arith.constant 0 : index
    %c0_83 = arith.constant 0 : index
    %202 = vector.load %arg6[%c0_81, %c0_82, %c0_83] : memref<1x64x1024xbf16, #tpu.memory_space<vmem>>, vector<1x64x1024xbf16>
    %203 = vector.shape_cast %202 : vector<1x64x1024xbf16> to vector<64x1024xbf16>
    %cst_84 = arith.constant dense<0.000000e+00> : vector<32x1024xf32>
    %204 = tpu.matmul %201, %203, %cst_84 {dimension_numbers = #tpu.dot_dimension_numbers<[1], [0], [0], [1], [0, 0, 1, 1], [], []>} : vector<32x64xbf16>, vector<64x1024xbf16>, vector<32x1024xf32> -> vector<32x1024xf32>
    %c0_85 = arith.constant 0 : index
    %c0_86 = arith.constant 0 : index
    %c0_87 = arith.constant 0 : index
    %205 = vector.load %arg7[%c0_85, %c0_86, %c0_87] : memref<1x1x1024xf32, #tpu.memory_space<vmem>>, vector<1x1x1024xf32>
    %206 = vector.shape_cast %205 : vector<1x1x1024xf32> to vector<1x1024xf32>
    %207 = vector.broadcast %206 : vector<1x1024xf32> to vector<32x1024xf32>
    %208 = arith.addf %204, %207 : vector<32x1024xf32>
    %cst_88 = arith.constant 0.000000e+00 : f32
    %209 = vector.broadcast %cst_88 : f32 to vector<32x1024xf32>
    %210 = arith.maximumf %208, %209 : vector<32x1024xf32>
    %211 = arith.truncf %210 : vector<32x1024xf32> to vector<32x1024xbf16>
    %c0_89 = arith.constant 0 : index
    %c0_90 = arith.constant 0 : index
    %c0_91 = arith.constant 0 : index
    %212 = vector.load %arg8[%c0_89, %c0_90, %c0_91] : memref<1x1024x64xbf16, #tpu.memory_space<vmem>>, vector<1x1024x64xbf16>
    %213 = vector.shape_cast %212 : vector<1x1024x64xbf16> to vector<1024x64xbf16>
    %cst_92 = arith.constant dense<0.000000e+00> : vector<32x64xf32>
    %214 = tpu.matmul %211, %213, %cst_92 {dimension_numbers = #tpu.dot_dimension_numbers<[1], [0], [0], [1], [0, 0, 1, 1], [], []>} : vector<32x1024xbf16>, vector<1024x64xbf16>, vector<32x64xf32> -> vector<32x64xf32>
    %c0_93 = arith.constant 0 : index
    %c0_94 = arith.constant 0 : index
    %c0_95 = arith.constant 0 : index
    %215 = vector.load %arg9[%c0_93, %c0_94, %c0_95] : memref<1x1x64xf32, #tpu.memory_space<vmem>>, vector<1x1x64xf32>
    %216 = vector.shape_cast %215 : vector<1x1x64xf32> to vector<1x64xf32>
    %217 = vector.broadcast %216 : vector<1x64xf32> to vector<32x64xf32>
    %218 = arith.addf %214, %217 : vector<32x64xf32>
    %219 = arith.addf %200, %218 : vector<32x64xf32>
    %c0_96 = arith.constant 0 : index
    %c0_97 = arith.constant 0 : index
    %c0_98 = arith.constant 0 : index
    %220 = vector.load %arg12[%c0_96, %c0_97, %c0_98] : memref<1x1x64xf32, #tpu.memory_space<vmem>>, vector<1x1x64xf32>
    %221 = vector.shape_cast %220 : vector<1x1x64xf32> to vector<1x64xf32>
    %c0_99 = arith.constant 0 : index
    %c0_100 = arith.constant 0 : index
    %c0_101 = arith.constant 0 : index
    %222 = vector.load %arg13[%c0_99, %c0_100, %c0_101] : memref<1x1x64xf32, #tpu.memory_space<vmem>>, vector<1x1x64xf32>
    %223 = vector.shape_cast %222 : vector<1x1x64xf32> to vector<1x64xf32>
    %cst_102 = arith.constant dense<0.000000e+00> : vector<32xf32>
    %224 = vector.multi_reduction <add>, %219, %cst_102 [1] : vector<32x64xf32> to vector<32xf32>
    %225 = vector.shape_cast %224 : vector<32xf32> to vector<32x1xf32>
    %cst_103 = arith.constant 6.400000e+01 : f32
    %226 = vector.broadcast %cst_103 : f32 to vector<32x1xf32>
    %227 = arith.divf %225, %226 : vector<32x1xf32>
    %228 = vector.broadcast %227 : vector<32x1xf32> to vector<32x64xf32>
    %229 = arith.subf %219, %228 : vector<32x64xf32>
    %230 = arith.mulf %229, %229 : vector<32x64xf32>
    %cst_104 = arith.constant dense<0.000000e+00> : vector<32xf32>
    %231 = vector.multi_reduction <add>, %230, %cst_104 [1] : vector<32x64xf32> to vector<32xf32>
    %232 = vector.shape_cast %231 : vector<32xf32> to vector<32x1xf32>
    %cst_105 = arith.constant 6.400000e+01 : f32
    %233 = vector.broadcast %cst_105 : f32 to vector<32x1xf32>
    %234 = arith.divf %232, %233 : vector<32x1xf32>
    %cst_106 = arith.constant 9.99999974E-6 : f32
    %235 = vector.broadcast %cst_106 : f32 to vector<32x1xf32>
    %236 = arith.addf %234, %235 : vector<32x1xf32>
    %237 = math.rsqrt %236 : vector<32x1xf32>
    %238 = vector.broadcast %237 : vector<32x1xf32> to vector<32x64xf32>
    %239 = arith.mulf %229, %238 : vector<32x64xf32>
    %240 = vector.broadcast %221 : vector<1x64xf32> to vector<32x64xf32>
    %241 = arith.mulf %239, %240 : vector<32x64xf32>
    %242 = vector.broadcast %223 : vector<1x64xf32> to vector<32x64xf32>
    %243 = arith.addf %241, %242 : vector<32x64xf32>
    %c0_107 = arith.constant 0 : index
    %c0_108 = arith.constant 0 : index
    %244 = vector.load %arg14[%c0_107, %c0_108] : memref<32x64xf32, #tpu.memory_space<vmem>>, vector<32x64xf32>
    tpu.vector_store %arg14[%c0_107, %c0_108], %243 {strides = array<i32>} : memref<32x64xf32, #tpu.memory_space<vmem>>, vector<32x64xf32>,
    return
  }
  func.func @transform_0(%arg0: i32) -> (i32, i32) {
    %c0_i32 = arith.constant 0 : i32
    %c0_i32_0 = arith.constant 0 : i32
    %c0_i32_1 = arith.constant 0 : i32
    return %c0_i32, %c0_i32_0 : i32, i32
  }
  func.func @transform_1(%arg0: i32) -> (i32, i32, i32) {
    %c0_i32 = arith.constant 0 : i32
    %c0_i32_0 = arith.constant 0 : i32
    %c0_i32_1 = arith.constant 0 : i32
    return %arg0, %c0_i32, %c0_i32_0 : i32, i32, i32
  }
  func.func @transform_2(%arg0: i32) -> (i32, i32, i32) {
    %c0_i32 = arith.constant 0 : i32
    %c0_i32_0 = arith.constant 0 : i32
    %c0_i32_1 = arith.constant 0 : i32
    return %arg0, %c0_i32, %c0_i32_0 : i32, i32, i32
  }
  func.func @transform_3(%arg0: i32) -> (i32, i32, i32) {
    %c0_i32 = arith.constant 0 : i32
    %c0_i32_0 = arith.constant 0 : i32
    %c0_i32_1 = arith.constant 0 : i32
    return %arg0, %c0_i32, %c0_i32_0 : i32, i32, i32
  }
  func.func @transform_4(%arg0: i32) -> (i32, i32, i32) {
    %c0_i32 = arith.constant 0 : i32
    %c0_i32_0 = arith.constant 0 : i32
    %c0_i32_1 = arith.constant 0 : i32
    return %arg0, %c0_i32, %c0_i32_0 : i32, i32, i32
  }
  func.func @transform_5(%arg0: i32) -> (i32, i32, i32) {
    %c0_i32 = arith.constant 0 : i32
    %c0_i32_0 = arith.constant 0 : i32
    %c0_i32_1 = arith.constant 0 : i32
    return %arg0, %c0_i32, %c0_i32_0 : i32, i32, i32
  }
  func.func @transform_6(%arg0: i32) -> (i32, i32, i32) {
    %c0_i32 = arith.constant 0 : i32
    %c0_i32_0 = arith.constant 0 : i32
    %c0_i32_1 = arith.constant 0 : i32
    return %arg0, %c0_i32, %c0_i32_0 : i32, i32, i32
  }
  func.func @transform_7(%arg0: i32) -> (i32, i32, i32) {
    %c0_i32 = arith.constant 0 : i32
    %c0_i32_0 = arith.constant 0 : i32
    %c0_i32_1 = arith.constant 0 : i32
    return %arg0, %c0_i32, %c0_i32_0 : i32, i32, i32
  }
  func.func @transform_8(%arg0: i32) -> (i32, i32, i32) {
    %c0_i32 = arith.constant 0 : i32
    %c0_i32_0 = arith.constant 0 : i32
    %c0_i32_1 = arith.constant 0 : i32
    return %arg0, %c0_i32, %c0_i32_0 : i32, i32, i32
  }
  func.func @transform_9(%arg0: i32) -> (i32, i32, i32) {
    %c0_i32 = arith.constant 0 : i32
    %c0_i32_0 = arith.constant 0 : i32
    %c0_i32_1 = arith.constant 0 : i32
    return %arg0, %c0_i32, %c0_i32_0 : i32, i32, i32
  }
  func.func @transform_10(%arg0: i32) -> (i32, i32, i32) {
    %c0_i32 = arith.constant 0 : i32
    %c0_i32_0 = arith.constant 0 : i32
    %c0_i32_1 = arith.constant 0 : i32
    return %arg0, %c0_i32, %c0_i32_0 : i32, i32, i32
  }
  func.func @transform_11(%arg0: i32) -> (i32, i32, i32) {
    %c0_i32 = arith.constant 0 : i32
    %c0_i32_0 = arith.constant 0 : i32
    %c0_i32_1 = arith.constant 0 : i32
    return %arg0, %c0_i32, %c0_i32_0 : i32, i32, i32
  }
  func.func @transform_12(%arg0: i32) -> (i32, i32, i32) {
    %c0_i32 = arith.constant 0 : i32
    %c0_i32_0 = arith.constant 0 : i32
    %c0_i32_1 = arith.constant 0 : i32
    return %arg0, %c0_i32, %c0_i32_0 : i32, i32, i32
  }
  func.func @transform_13(%arg0: i32) -> (i32, i32) {
    %c0_i32 = arith.constant 0 : i32
    %c0_i32_0 = arith.constant 0 : i32
    %c0_i32_1 = arith.constant 0 : i32
    return %c0_i32, %c0_i32_0 : i32, i32
  }
}

module attributes {stable_mosaic.version = 11 : i64} {
  func.func @_conv_attn_kernel(%arg0: i32, %arg1: memref<1x4x328xf32, #tpu.memory_space<vmem>>, %arg2: memref<9x64x4xbf16, #tpu.memory_space<vmem>>, %arg3: memref<64x1xf32, #tpu.memory_space<vmem>>, %arg4: memref<1x16x64xf32, #tpu.memory_space<vmem>>, %arg5: memref<1x16x288xf32, #tpu.memory_space<vmem>>, %arg6: memref<64x288xf32, #tpu.memory_space<vmem>>) attributes {dimension_semantics = [#tpu.dimension_semantics<parallel>], iteration_bounds = array<i64: 2>, scalar_prefetch = 0 : i64, scratch_operands = 1 : i64, tpu.core_type = #tpu.core_type<tc>, window_params = [{transform_indices = @transform_0, window_bounds = array<i64: 1, 4, 328>}, {pipeline_mode = #tpu.pipeline_mode<synchronous>, transform_indices = @transform_1, window_bounds = array<i64: 9, 64, 4>}, {pipeline_mode = #tpu.pipeline_mode<synchronous>, transform_indices = @transform_2, window_bounds = array<i64: 64, 1>}, {transform_indices = @transform_3, window_bounds = array<i64: 1, 16, 64>}, {transform_indices = @transform_4, window_bounds = array<i64: 1, 16, 288>}]} {
    %c0 = arith.constant 0 : index
    %c0_0 = arith.constant 0 : index
    %c0_1 = arith.constant 0 : index
    %0 = vector.load %arg1[%c0, %c0_0, %c0_1] : memref<1x4x328xf32, #tpu.memory_space<vmem>>, vector<1x4x328xf32>
    %1 = vector.shape_cast %0 : vector<1x4x328xf32> to vector<4x328xf32>
    %cst = arith.constant 0.000000e+00 : f32
    %2 = vector.broadcast %cst : f32 to vector<64x288xf32>
    %c0_2 = arith.constant 0 : index
    %c0_3 = arith.constant 0 : index
    %3 = vector.load %arg6[%c0_2, %c0_3] : memref<64x288xf32, #tpu.memory_space<vmem>>, vector<64x288xf32>
    tpu.vector_store %arg6[%c0_2, %c0_3], %2 {strides = array<i32>} : memref<64x288xf32, #tpu.memory_space<vmem>>, vector<64x288xf32>,
    %4 = vector.extract_strided_slice %1 {offsets = [0, 0], sizes = [4, 288], strides = [1, 1]} : vector<4x328xf32> to vector<4x288xf32>
    %5 = arith.truncf %4 : vector<4x288xf32> to vector<4x288xbf16>
    %c0_4 = arith.constant 0 : index
    %c0_5 = arith.constant 0 : index
    %6 = vector.load %arg6[%c0_4, %c0_5] : memref<64x288xf32, #tpu.memory_space<vmem>>, vector<64x288xf32>
    %c0_6 = arith.constant 0 : index
    %c0_7 = arith.constant 0 : index
    %c0_8 = arith.constant 0 : index
    %7 = vector.load %arg2[%c0_6, %c0_7, %c0_8] : memref<9x64x4xbf16, #tpu.memory_space<vmem>>, vector<1x64x4xbf16>
    %8 = vector.shape_cast %7 : vector<1x64x4xbf16> to vector<64x4xbf16>
    %cst_9 = arith.constant dense<0.000000e+00> : vector<64x288xf32>
    %9 = tpu.matmul %8, %5, %cst_9 {dimension_numbers = #tpu.dot_dimension_numbers<[1], [0], [0], [1], [0, 0, 1, 1], [], []>} : vector<64x4xbf16>, vector<4x288xbf16>, vector<64x288xf32> -> vector<64x288xf32>
    %10 = arith.addf %6, %9 : vector<64x288xf32>
    %c0_10 = arith.constant 0 : index
    %c0_11 = arith.constant 0 : index
    %11 = vector.load %arg6[%c0_10, %c0_11] : memref<64x288xf32, #tpu.memory_space<vmem>>, vector<64x288xf32>
    tpu.vector_store %arg6[%c0_10, %c0_11], %10 {strides = array<i32>} : memref<64x288xf32, #tpu.memory_space<vmem>>, vector<64x288xf32>,
    %12 = vector.extract_strided_slice %1 {offsets = [0, 1], sizes = [4, 288], strides = [1, 1]} : vector<4x328xf32> to vector<4x288xf32>
    %13 = arith.truncf %12 : vector<4x288xf32> to vector<4x288xbf16>
    %c0_12 = arith.constant 0 : index
    %c0_13 = arith.constant 0 : index
    %14 = vector.load %arg6[%c0_12, %c0_13] : memref<64x288xf32, #tpu.memory_space<vmem>>, vector<64x288xf32>
    %c1 = arith.constant 1 : index
    %c0_14 = arith.constant 0 : index
    %c0_15 = arith.constant 0 : index
    %15 = vector.load %arg2[%c1, %c0_14, %c0_15] : memref<9x64x4xbf16, #tpu.memory_space<vmem>>, vector<1x64x4xbf16>
    %16 = vector.shape_cast %15 : vector<1x64x4xbf16> to vector<64x4xbf16>
    %cst_16 = arith.constant dense<0.000000e+00> : vector<64x288xf32>
    %17 = tpu.matmul %16, %13, %cst_16 {dimension_numbers = #tpu.dot_dimension_numbers<[1], [0], [0], [1], [0, 0, 1, 1], [], []>} : vector<64x4xbf16>, vector<4x288xbf16>, vector<64x288xf32> -> vector<64x288xf32>
    %18 = arith.addf %14, %17 : vector<64x288xf32>
    %c0_17 = arith.constant 0 : index
    %c0_18 = arith.constant 0 : index
    %19 = vector.load %arg6[%c0_17, %c0_18] : memref<64x288xf32, #tpu.memory_space<vmem>>, vector<64x288xf32>
    tpu.vector_store %arg6[%c0_17, %c0_18], %18 {strides = array<i32>} : memref<64x288xf32, #tpu.memory_space<vmem>>, vector<64x288xf32>,
    %20 = vector.extract_strided_slice %1 {offsets = [0, 2], sizes = [4, 288], strides = [1, 1]} : vector<4x328xf32> to vector<4x288xf32>
    %21 = arith.truncf %20 : vector<4x288xf32> to vector<4x288xbf16>
    %c0_19 = arith.constant 0 : index
    %c0_20 = arith.constant 0 : index
    %22 = vector.load %arg6[%c0_19, %c0_20] : memref<64x288xf32, #tpu.memory_space<vmem>>, vector<64x288xf32>
    %c2 = arith.constant 2 : index
    %c0_21 = arith.constant 0 : index
    %c0_22 = arith.constant 0 : index
    %23 = vector.load %arg2[%c2, %c0_21, %c0_22] : memref<9x64x4xbf16, #tpu.memory_space<vmem>>, vector<1x64x4xbf16>
    %24 = vector.shape_cast %23 : vector<1x64x4xbf16> to vector<64x4xbf16>
    %cst_23 = arith.constant dense<0.000000e+00> : vector<64x288xf32>
    %25 = tpu.matmul %24, %21, %cst_23 {dimension_numbers = #tpu.dot_dimension_numbers<[1], [0], [0], [1], [0, 0, 1, 1], [], []>} : vector<64x4xbf16>, vector<4x288xbf16>, vector<64x288xf32> -> vector<64x288xf32>
    %26 = arith.addf %22, %25 : vector<64x288xf32>
    %c0_24 = arith.constant 0 : index
    %c0_25 = arith.constant 0 : index
    %27 = vector.load %arg6[%c0_24, %c0_25] : memref<64x288xf32, #tpu.memory_space<vmem>>, vector<64x288xf32>
    tpu.vector_store %arg6[%c0_24, %c0_25], %26 {strides = array<i32>} : memref<64x288xf32, #tpu.memory_space<vmem>>, vector<64x288xf32>,
    %28 = vector.extract_strided_slice %1 {offsets = [0, 18], sizes = [4, 288], strides = [1, 1]} : vector<4x328xf32> to vector<4x288xf32>
    %29 = arith.truncf %28 : vector<4x288xf32> to vector<4x288xbf16>
    %c0_26 = arith.constant 0 : index
    %c0_27 = arith.constant 0 : index
    %30 = vector.load %arg6[%c0_26, %c0_27] : memref<64x288xf32, #tpu.memory_space<vmem>>, vector<64x288xf32>
    %c3 = arith.constant 3 : index
    %c0_28 = arith.constant 0 : index
    %c0_29 = arith.constant 0 : index
    %31 = vector.load %arg2[%c3, %c0_28, %c0_29] : memref<9x64x4xbf16, #tpu.memory_space<vmem>>, vector<1x64x4xbf16>
    %32 = vector.shape_cast %31 : vector<1x64x4xbf16> to vector<64x4xbf16>
    %cst_30 = arith.constant dense<0.000000e+00> : vector<64x288xf32>
    %33 = tpu.matmul %32, %29, %cst_30 {dimension_numbers = #tpu.dot_dimension_numbers<[1], [0], [0], [1], [0, 0, 1, 1], [], []>} : vector<64x4xbf16>, vector<4x288xbf16>, vector<64x288xf32> -> vector<64x288xf32>
    %34 = arith.addf %30, %33 : vector<64x288xf32>
    %c0_31 = arith.constant 0 : index
    %c0_32 = arith.constant 0 : index
    %35 = vector.load %arg6[%c0_31, %c0_32] : memref<64x288xf32, #tpu.memory_space<vmem>>, vector<64x288xf32>
    tpu.vector_store %arg6[%c0_31, %c0_32], %34 {strides = array<i32>} : memref<64x288xf32, #tpu.memory_space<vmem>>, vector<64x288xf32>,
    %36 = vector.extract_strided_slice %1 {offsets = [0, 19], sizes = [4, 288], strides = [1, 1]} : vector<4x328xf32> to vector<4x288xf32>
    %37 = arith.truncf %36 : vector<4x288xf32> to vector<4x288xbf16>
    %c0_33 = arith.constant 0 : index
    %c0_34 = arith.constant 0 : index
    %38 = vector.load %arg6[%c0_33, %c0_34] : memref<64x288xf32, #tpu.memory_space<vmem>>, vector<64x288xf32>
    %c4 = arith.constant 4 : index
    %c0_35 = arith.constant 0 : index
    %c0_36 = arith.constant 0 : index
    %39 = vector.load %arg2[%c4, %c0_35, %c0_36] : memref<9x64x4xbf16, #tpu.memory_space<vmem>>, vector<1x64x4xbf16>
    %40 = vector.shape_cast %39 : vector<1x64x4xbf16> to vector<64x4xbf16>
    %cst_37 = arith.constant dense<0.000000e+00> : vector<64x288xf32>
    %41 = tpu.matmul %40, %37, %cst_37 {dimension_numbers = #tpu.dot_dimension_numbers<[1], [0], [0], [1], [0, 0, 1, 1], [], []>} : vector<64x4xbf16>, vector<4x288xbf16>, vector<64x288xf32> -> vector<64x288xf32>
    %42 = arith.addf %38, %41 : vector<64x288xf32>
    %c0_38 = arith.constant 0 : index
    %c0_39 = arith.constant 0 : index
    %43 = vector.load %arg6[%c0_38, %c0_39] : memref<64x288xf32, #tpu.memory_space<vmem>>, vector<64x288xf32>
    tpu.vector_store %arg6[%c0_38, %c0_39], %42 {strides = array<i32>} : memref<64x288xf32, #tpu.memory_space<vmem>>, vector<64x288xf32>,
    %44 = vector.extract_strided_slice %1 {offsets = [0, 20], sizes = [4, 288], strides = [1, 1]} : vector<4x328xf32> to vector<4x288xf32>
    %45 = arith.truncf %44 : vector<4x288xf32> to vector<4x288xbf16>
    %c0_40 = arith.constant 0 : index
    %c0_41 = arith.constant 0 : index
    %46 = vector.load %arg6[%c0_40, %c0_41] : memref<64x288xf32, #tpu.memory_space<vmem>>, vector<64x288xf32>
    %c5 = arith.constant 5 : index
    %c0_42 = arith.constant 0 : index
    %c0_43 = arith.constant 0 : index
    %47 = vector.load %arg2[%c5, %c0_42, %c0_43] : memref<9x64x4xbf16, #tpu.memory_space<vmem>>, vector<1x64x4xbf16>
    %48 = vector.shape_cast %47 : vector<1x64x4xbf16> to vector<64x4xbf16>
    %cst_44 = arith.constant dense<0.000000e+00> : vector<64x288xf32>
    %49 = tpu.matmul %48, %45, %cst_44 {dimension_numbers = #tpu.dot_dimension_numbers<[1], [0], [0], [1], [0, 0, 1, 1], [], []>} : vector<64x4xbf16>, vector<4x288xbf16>, vector<64x288xf32> -> vector<64x288xf32>
    %50 = arith.addf %46, %49 : vector<64x288xf32>
    %c0_45 = arith.constant 0 : index
    %c0_46 = arith.constant 0 : index
    %51 = vector.load %arg6[%c0_45, %c0_46] : memref<64x288xf32, #tpu.memory_space<vmem>>, vector<64x288xf32>
    tpu.vector_store %arg6[%c0_45, %c0_46], %50 {strides = array<i32>} : memref<64x288xf32, #tpu.memory_space<vmem>>, vector<64x288xf32>,
    %52 = vector.extract_strided_slice %1 {offsets = [0, 36], sizes = [4, 288], strides = [1, 1]} : vector<4x328xf32> to vector<4x288xf32>
    %53 = arith.truncf %52 : vector<4x288xf32> to vector<4x288xbf16>
    %c0_47 = arith.constant 0 : index
    %c0_48 = arith.constant 0 : index
    %54 = vector.load %arg6[%c0_47, %c0_48] : memref<64x288xf32, #tpu.memory_space<vmem>>, vector<64x288xf32>
    %c6 = arith.constant 6 : index
    %c0_49 = arith.constant 0 : index
    %c0_50 = arith.constant 0 : index
    %55 = vector.load %arg2[%c6, %c0_49, %c0_50] : memref<9x64x4xbf16, #tpu.memory_space<vmem>>, vector<1x64x4xbf16>
    %56 = vector.shape_cast %55 : vector<1x64x4xbf16> to vector<64x4xbf16>
    %cst_51 = arith.constant dense<0.000000e+00> : vector<64x288xf32>
    %57 = tpu.matmul %56, %53, %cst_51 {dimension_numbers = #tpu.dot_dimension_numbers<[1], [0], [0], [1], [0, 0, 1, 1], [], []>} : vector<64x4xbf16>, vector<4x288xbf16>, vector<64x288xf32> -> vector<64x288xf32>
    %58 = arith.addf %54, %57 : vector<64x288xf32>
    %c0_52 = arith.constant 0 : index
    %c0_53 = arith.constant 0 : index
    %59 = vector.load %arg6[%c0_52, %c0_53] : memref<64x288xf32, #tpu.memory_space<vmem>>, vector<64x288xf32>
    tpu.vector_store %arg6[%c0_52, %c0_53], %58 {strides = array<i32>} : memref<64x288xf32, #tpu.memory_space<vmem>>, vector<64x288xf32>,
    %60 = vector.extract_strided_slice %1 {offsets = [0, 37], sizes = [4, 288], strides = [1, 1]} : vector<4x328xf32> to vector<4x288xf32>
    %61 = arith.truncf %60 : vector<4x288xf32> to vector<4x288xbf16>
    %c0_54 = arith.constant 0 : index
    %c0_55 = arith.constant 0 : index
    %62 = vector.load %arg6[%c0_54, %c0_55] : memref<64x288xf32, #tpu.memory_space<vmem>>, vector<64x288xf32>
    %c7 = arith.constant 7 : index
    %c0_56 = arith.constant 0 : index
    %c0_57 = arith.constant 0 : index
    %63 = vector.load %arg2[%c7, %c0_56, %c0_57] : memref<9x64x4xbf16, #tpu.memory_space<vmem>>, vector<1x64x4xbf16>
    %64 = vector.shape_cast %63 : vector<1x64x4xbf16> to vector<64x4xbf16>
    %cst_58 = arith.constant dense<0.000000e+00> : vector<64x288xf32>
    %65 = tpu.matmul %64, %61, %cst_58 {dimension_numbers = #tpu.dot_dimension_numbers<[1], [0], [0], [1], [0, 0, 1, 1], [], []>} : vector<64x4xbf16>, vector<4x288xbf16>, vector<64x288xf32> -> vector<64x288xf32>
    %66 = arith.addf %62, %65 : vector<64x288xf32>
    %c0_59 = arith.constant 0 : index
    %c0_60 = arith.constant 0 : index
    %67 = vector.load %arg6[%c0_59, %c0_60] : memref<64x288xf32, #tpu.memory_space<vmem>>, vector<64x288xf32>
    tpu.vector_store %arg6[%c0_59, %c0_60], %66 {strides = array<i32>} : memref<64x288xf32, #tpu.memory_space<vmem>>, vector<64x288xf32>,
    %68 = vector.extract_strided_slice %1 {offsets = [0, 38], sizes = [4, 288], strides = [1, 1]} : vector<4x328xf32> to vector<4x288xf32>
    %69 = arith.truncf %68 : vector<4x288xf32> to vector<4x288xbf16>
    %c0_61 = arith.constant 0 : index
    %c0_62 = arith.constant 0 : index
    %70 = vector.load %arg6[%c0_61, %c0_62] : memref<64x288xf32, #tpu.memory_space<vmem>>, vector<64x288xf32>
    %c8 = arith.constant 8 : index
    %c0_63 = arith.constant 0 : index
    %c0_64 = arith.constant 0 : index
    %71 = vector.load %arg2[%c8, %c0_63, %c0_64] : memref<9x64x4xbf16, #tpu.memory_space<vmem>>, vector<1x64x4xbf16>
    %72 = vector.shape_cast %71 : vector<1x64x4xbf16> to vector<64x4xbf16>
    %cst_65 = arith.constant dense<0.000000e+00> : vector<64x288xf32>
    %73 = tpu.matmul %72, %69, %cst_65 {dimension_numbers = #tpu.dot_dimension_numbers<[1], [0], [0], [1], [0, 0, 1, 1], [], []>} : vector<64x4xbf16>, vector<4x288xbf16>, vector<64x288xf32> -> vector<64x288xf32>
    %74 = arith.addf %70, %73 : vector<64x288xf32>
    %c0_66 = arith.constant 0 : index
    %c0_67 = arith.constant 0 : index
    %75 = vector.load %arg6[%c0_66, %c0_67] : memref<64x288xf32, #tpu.memory_space<vmem>>, vector<64x288xf32>
    tpu.vector_store %arg6[%c0_66, %c0_67], %74 {strides = array<i32>} : memref<64x288xf32, #tpu.memory_space<vmem>>, vector<64x288xf32>,
    %c0_68 = arith.constant 0 : index
    %c0_69 = arith.constant 0 : index
    %76 = vector.load %arg6[%c0_68, %c0_69] : memref<64x288xf32, #tpu.memory_space<vmem>>, vector<64x288xf32>
    %c0_70 = arith.constant 0 : index
    %c0_71 = arith.constant 0 : index
    %77 = vector.load %arg3[%c0_70, %c0_71] : memref<64x1xf32, #tpu.memory_space<vmem>>, vector<64x1xf32>
    %78 = vector.broadcast %77 : vector<64x1xf32> to vector<64x288xf32>
    %79 = arith.addf %76, %78 : vector<64x288xf32>
    %80 = arith.truncf %79 : vector<64x288xf32> to vector<64x288xbf16>
    %c0_72 = arith.constant 0 : index
    %c0_73 = arith.constant 0 : index
    %c0_74 = arith.constant 0 : index
    %81 = vector.load %arg4[%c0_72, %c0_73, %c0_74] : memref<1x16x64xf32, #tpu.memory_space<vmem>>, vector<1x16x64xf32>
    %82 = vector.shape_cast %81 : vector<1x16x64xf32> to vector<16x64xf32>
    %83 = arith.truncf %82 : vector<16x64xf32> to vector<16x64xbf16>
    %cst_75 = arith.constant dense<0.000000e+00> : vector<16x288xf32>
    %84 = tpu.matmul %83, %80, %cst_75 {dimension_numbers = #tpu.dot_dimension_numbers<[1], [0], [0], [1], [0, 0, 1, 1], [], []>} : vector<16x64xbf16>, vector<64x288xbf16>, vector<16x288xf32> -> vector<16x288xf32>
    %c0_76 = arith.constant 0 : index
    %c0_77 = arith.constant 0 : index
    %c0_78 = arith.constant 0 : index
    %85 = vector.load %arg5[%c0_76, %c0_77, %c0_78] : memref<1x16x288xf32, #tpu.memory_space<vmem>>, vector<1x16x288xf32>
    %86 = vector.shape_cast %85 : vector<1x16x288xf32> to vector<16x288xf32>
    %87 = vector.shape_cast %84 : vector<16x288xf32> to vector<1x16x288xf32>
    tpu.vector_store %arg5[%c0_76, %c0_77, %c0_78], %87 {strides = array<i32>} : memref<1x16x288xf32, #tpu.memory_space<vmem>>, vector<1x16x288xf32>,
    return
  }
  func.func @transform_0(%arg0: i32) -> (i32, i32, i32) {
    %c0_i32 = arith.constant 0 : i32
    %c0_i32_0 = arith.constant 0 : i32
    %c0_i32_1 = arith.constant 0 : i32
    return %arg0, %c0_i32, %c0_i32_0 : i32, i32, i32
  }
  func.func @transform_1(%arg0: i32) -> (i32, i32, i32) {
    %c0_i32 = arith.constant 0 : i32
    %c0_i32_0 = arith.constant 0 : i32
    %c0_i32_1 = arith.constant 0 : i32
    %c0_i32_2 = arith.constant 0 : i32
    return %c0_i32, %c0_i32_0, %c0_i32_1 : i32, i32, i32
  }
  func.func @transform_2(%arg0: i32) -> (i32, i32) {
    %c0_i32 = arith.constant 0 : i32
    %c0_i32_0 = arith.constant 0 : i32
    %c0_i32_1 = arith.constant 0 : i32
    return %c0_i32, %c0_i32_0 : i32, i32
  }
  func.func @transform_3(%arg0: i32) -> (i32, i32, i32) {
    %c0_i32 = arith.constant 0 : i32
    %c0_i32_0 = arith.constant 0 : i32
    %c0_i32_1 = arith.constant 0 : i32
    return %arg0, %c0_i32, %c0_i32_0 : i32, i32, i32
  }
  func.func @transform_4(%arg0: i32) -> (i32, i32, i32) {
    %c0_i32 = arith.constant 0 : i32
    %c0_i32_0 = arith.constant 0 : i32
    %c0_i32_1 = arith.constant 0 : i32
    return %arg0, %c0_i32, %c0_i32_0 : i32, i32, i32
  }
}

</mosaic_0001>

<bundles_post_ra>
// kernel: patch_transformer_encoder.3
= control target key start
LH: loop header
LB: loop body
LE: loop exit
PB: predicated region body
PF: predicated region fallthrough
CT: control target
= control target key end

     0   :  { %s438_s15 = smov 0   ;;  %s479_s0 = inlined_call_operand.vmem [shape: bf16[2,16,64], index: 0, kind: input, shape index: {}]   ;;  %s480_s1 = inlined_call_operand.vmem [shape: bf16[64,64], index: 1, kind: input, shape index: {}]   ;;  %s481_s2 = inlined_call_operand.vmem [shape: f32[1,64], index: 2, kind: input, shape index: {}]   ;;  %s482_s3 = inlined_call_operand.vmem [shape: f32[16,64], index: 3, kind: input, shape index: {}]   ;;  %s483_s4 = inlined_call_operand.vmem [shape: f32[2,16,64], index: 4, kind: output, shape index: {}]  }
   0x1 LB: > { %s351_s16 = sadd.s32 4294967295, %s409_s15   ;;  %p355_p0 = scmp.ge.s32.totalorder %s409_s15, 1  ;;  %s409_s15 = sphi %s438_s15, %s14_s15  }
   0x2   : > { %p162_p1 = scmp.lt.s32.totalorder %s409_s15, 3 }
   0x4   : > { %p163_p2 = pnand %p355_p0, %p162_p1 }
   0x5   : > { %p188_p3 = scmp.lt.s32.totalorder (!%p163_p2), %s351_s16, 1 }
   0x6   : > { %166 = sbr.rel (%p163_p2) target bundleno = 230 (0xe6), region = 36 }
   0xb   : > { %v398_v0 = vld [vmem:[%s480_s1 + $0x18] sm:$0xff]   ;;  %v411_v1 = vmov 0.0   ;;  %v399_v2 = vld [vmem:[%s480_s1 + $0x10] sm:$0xff]   ;;  %vm412_vm0 = vmmov 0   ;;  %s485_s16 = smov (!%p188_p3, %s351_s16), 1  ;;  %v400_v3 = vld [vmem:[%s480_s1 + $0x8] sm:$0xff]  }
   0xc   : > { %376 = vmatprep.subr.bf16.mxu0 %v411_v1  ;;  %384 = vmatprep.mubr.msk.bf16.mxu0 %vm412_vm0, %v411_v1  ;;  %s369_s23 = sshll.u32 %s485_s16, 3  ;;  %v401_v4 = vld [vmem:[%s480_s1] sm:$0xff]   ;;  %vm245_vm1 = vcmask 523264   ;;  %s370_s5 = sshll.u32 %s485_s16, 4  ;;  %v291_v13 = vld [vmem:[%s482_s3 + $0x8] sm:$0xff] }
   0xd   : > { %377 = vmatpush3.bf16.msra.mxu0 %v398_v0  ;;  %s192_s26 = scalar_lea.vmem %s479_s0, %s369_s23  ;;  %v360_v6 = vld [vmem:[%s481_s2] ss:$0 sm:$0xff]  ;;  %s197_s10 = scalar_lea.vmem %s483_s4, %s370_s5 }
   0xe   : > { %378 = vmatprep.subr.bf16.mxu0 %v411_v1  ;;  %v402_v5 = vld [vmem:[%s192_s26] sm:$0xff]  }
   0xf   : > { %v290_v8 = vld [vmem:[%s482_s3] sm:$0xff] }
  0x11   : > { %379 = vmatpush3.bf16.msra.mxu0 %v399_v2 }
  0x12   : > { %380 = vmatprep.subr.bf16.mxu0 %v411_v1 }
  0x15   : > { %381 = vmatpush3.bf16.msra.mxu0 %v400_v3 }
  0x16   : > { %382 = vmatprep.subr.bf16.mxu0 %v411_v1 }
  0x19   : > { %383 = vmatpush3.bf16.msra.mxu0 %v401_v4 }
  0x1c   : > { %385 = vmatmul.mubr.msk.bf16.vlgmr.msra.gmra.mxu0 %vm245_vm1, %v402_v5 }
  0xdc   : > { %v283_v7 = vpop.f32.mrf.mxu0 }
  0xdd   : > { %v284_v9 = vadd.f32 %v360_v6, %v283_v7 }
  0xde   : > { %v386_v10 = vpop.f32.mrf.mxu0 }
  0xdf   : > { %v292_v11 = vadd.f32 %v290_v8, %v284_v9 }
  0xe0   : > { %v286_v12 = vpop.f32.mrf.mxu0 }
  0xe1   : > { %294 = vst.msk [vmem:[%s197_s10] sm:$0xff] %vm245_vm1, %v292_v11  ;;  %v287_v14 = vadd.f32 %v360_v6, %v286_v12 }
  0xe2   : > { %v387_v15 = vpop.f32.mrf.mxu0 }
  0xe3   : > { %v293_v16 = vadd.f32 %v291_v13, %v287_v14 }
  0xe5   : > { %295 = vst.msk [vmem:[%s197_s10 + $0x8] sm:$0xff] %vm245_vm1, %v293_v16 }
  0xe6 PF: > { %s14_s15 = sadd.s32 1, %s409_s15  }
  0xe7   : > { %p11_p4 = scmp.ge.s32.totalorder %s14_s15, 4  }
  0xe9   :  { %13 = sbr.rel (!%p11_p4) target bundleno = 1 (0x1), region = 66 }

// kernel: patch_transformer_encoder.4
= control target key start
LH: loop header
LB: loop body
LE: loop exit
PB: predicated region body
PF: predicated region fallthrough
CT: control target
= control target key end

     0   :  { %s4801_s25 = smov 0   ;;  %s5493_s0 = inlined_call_operand.vmem [shape: f32[32,64], index: 0, kind: input, shape index: {}]   ;;  %s5494_s1 = inlined_call_operand.vmem [shape: bf16[4,64,192], index: 1, kind: input, shape index: {}]   ;;  %s5495_s2 = inlined_call_operand.vmem [shape: f32[4,1,192], index: 2, kind: input, shape index: {}]   ;;  %s5496_s3 = inlined_call_operand.vmem [shape: bf16[4,64,64], index: 3, kind: input, shape index: {}]   ;;  %s5497_s4 = inlined_call_operand.vmem [shape: f32[4,1,64], index: 4, kind: input, shape index: {}]   ;;  %s5498_s5 = inlined_call_operand.vmem [shape: bf16[4,64,1024], index: 5, kind: input, shape index: {}]   ;;  %s5499_s6 = inlined_call_operand.vmem [shape: f32[4,1,1024], index: 6, kind: input, shape index: {}]   ;;  %s5500_s7 = inlined_call_operand.vmem [shape: bf16[4,1024,64], index: 7, kind: input, shape index: {}]   ;;  %s5501_s8 = inlined_call_operand.vmem [shape: f32[4,1,64], index: 8, kind: input, shape index: {}]   ;;  %s5502_s9 = inlined_call_operand.vmem [shape: f32[4,1,64], index: 9, kind: input, shape index: {}]   ;;  %s5503_s10 = inlined_call_operand.vmem [shape: f32[4,1,64], index: 10, kind: input, shape index: {}]   ;;  %s5504_s11 = inlined_call_operand.vmem [shape: f32[4,1,64], index: 11, kind: input, shape index: {}]   ;;  %s5505_s12 = inlined_call_operand.vmem [shape: f32[4,1,64], index: 12, kind: input, shape index: {}]   ;;  %s5506_s13 = inlined_call_operand.vmem [shape: f32[32,64], index: 13, kind: output, shape index: {}]  }
   0x1   :  { %5510 = sst [smem:[#allocation5_spill]] %s5494_s1 }
   0x2   :  { %5511 = sst [smem:[#allocation6_spill]] %s5495_s2 }
   0x3   :  { %5512 = sst [smem:[#allocation7_spill]] %s5496_s3 }
   0x4   :  { %5513 = sst [smem:[#allocation8_spill]] %s5498_s5 }
   0x5   :  { %5514 = sst [smem:[#allocation9_spill]] %s5499_s6 }
   0x6   :  { %5515 = sst [smem:[#allocation10_spill]] %s5506_s13 }
   0x7 LB: > { %5516 = sst [smem:[#allocation3_spill]] %s4721_s25  ;;  %s4036_s26 = sadd.s32 4294967295, %s4721_s25   ;;  %s4721_s25 = sphi %s4801_s25, %s23_s25  }
   0x8   : > { %p4039_p0 = scmp.ge.s32.totalorder %s4721_s25, 1  ;;  %p478_p1 = scmp.lt.s32.totalorder %s4721_s25, 5 }
   0xa   : > { %p479_p2 = pnand %p4039_p0, %p478_p1 }
   0xc   : > { %482 = sbr.rel (%p479_p2) target bundleno = 5160 (0x1428), region = 72 }
  0x11   : > { %p558_p3 = scmp.lt.s32.totalorder %s4036_s26, 3  ;;  %s5517_s1 = sld [smem:[#allocation5_spill]] }
  0x12   : > { %s5518_s2 = sld [smem:[#allocation6_spill]]  ;;  %p4050_p4 = scmp.ne.s32.totalorder %s4036_s26, 0 }
  0x13   : > { %s4809_s27 = scalar_select %p558_p3, %s4036_s26, 3 }
  0x14   : > { %s5519_s3 = sld [smem:[#allocation7_spill]] }
  0x15   : > { %s4227_s28 = sshll.u32 %s4809_s27, 6  ;;  %s4042_s29 = sshll.u32 %s4809_s27, 1 }
  0x16   : > { %s4228_s19 = sshll.u32 %s4809_s27, 5  ;;  %s4229_s13 = sshll.u32 %s4809_s27, 8 }
  0x17   : > { %s4816_s15 = scalar_lea.vmem %s5517_s1, %s4227_s28  ;;  %s5520_s5 = sld [smem:[#allocation8_spill]] }
  0x18   : > { %s4821_s18 = scalar_lea.vmem %s5518_s2, %s4042_s29  ;;  %s4047_s1 = sshll.u32 %s4809_s27, 3 }
  0x19   : > { %s5521_s6 = sld [smem:[#allocation9_spill]]  ;;  %s4230_s2 = sshll.u32 %s4809_s27, 9 }
  0x1a   : > { %s4831_s25 = scalar_lea.vmem %s5519_s3, %s4228_s19  ;;  %s4849_s22 = scalar_lea.vmem %s5500_s7, %s4230_s2 }
  0x1b   : > { %s591_s24 = scalar_lea.vmem %s5501_s8, %s4809_s27  ;;  %s597_s16 = scalar_lea.vmem %s5503_s10, %s4809_s27 }
  0x1c   : > { %608 = sbr.rel (%p4050_p4) target bundleno = 36 (0x24), region = 76  ;;  %s5523_s29 = sld [smem:[#allocation10_spill]] (!%p4050_p4) }
  0x1d   : > { %s4837_s28 = scalar_lea.vmem %s5520_s5, %s4229_s13  ;;  %s594_s13 = scalar_lea.vmem %s5502_s9, %s4809_s27 }
  0x1f   : > { %s4843_s17 = scalar_lea.vmem %s5521_s6, %s4047_s1  ;;  %s600_s6 = scalar_lea.vmem %s5504_s11, %s4809_s27 }
  0x20   : > { %5522 = sst [smem:[#allocation4_spill]] %s4843_s17 }
  0x21   : > { %v609_v0 = vld [vmem:[%s5493_s0] sm:$0xff]  ;;  %vm613_vm0 = vcmask 523264   ;;  %v610_v1 = vld [vmem:[%s5493_s0 + $0x8] sm:$0xff]  ;;  %v611_v2 = vld [vmem:[%s5493_s0 + $0x10] sm:$0xff] }
  0x22   : > { %614 = vst.msk [vmem:[%s5523_s29] sm:$0xff] %vm613_vm0, %v609_v0  ;;  %615 = vst.msk [vmem:[%s5523_s29 + $0x8] sm:$0xff] %vm613_vm0, %v610_v1  ;;  %v612_v3 = vld [vmem:[%s5493_s0 + $0x18] sm:$0xff] }
  0x23   : > { %616 = vst.msk [vmem:[%s5523_s29 + $0x10] sm:$0xff] %vm613_vm0, %v611_v2  ;;  %617 = vst.msk [vmem:[%s5523_s29 + $0x18] sm:$0xff] %vm613_vm0, %v612_v3 }
  0x24 PF: > { %v4553_v4 = vld [vmem:[%s4816_s15 + $0x34] ss:$8 sps:$4 sm:$0xff]   ;;  %v4555_v5 = vld [vmem:[%s4816_s15 + $0x30] ss:$8 sps:$4 sm:$0xff]   ;;  %v4723_v6 = vmov 0   ;;  %vm684_vm1 = vcmask 523264   ;;  %v634_v16 = vlaneseq  ;;  %s5525_s14 = scalar_lea.vmem %s5497_s4, %s4809_s27 }
  0x25   : > { %723 = vmatprep.mubr.bf16.mxu0 %v4723_v6  ;;  %699 = vmatprep.subr.bf16.mxu0 %v4553_v4  ;;  %v4556_v7 = vld [vmem:[%s4816_s15 + $0x24] ss:$8 sps:$4 sm:$0xff]   ;;  %v4558_v8 = vld [vmem:[%s4816_s15 + $0x20] ss:$8 sps:$4 sm:$0xff]   ;;  %v4559_v9 = vld [vmem:[%s4816_s15 + $0x14] ss:$8 sps:$4 sm:$0xff]  }
  0x26   : > { %700 = vmatpush1.bf16.msra.mxu0 %v4555_v5  ;;  %v4561_v10 = vld [vmem:[%s4816_s15 + $0x10] ss:$8 sps:$4 sm:$0xff]   ;;  %v4562_v11 = vld [vmem:[%s4816_s15 + $0x4] ss:$8 sps:$4 sm:$0xff]   ;;  %v4564_v12 = vld [vmem:[%s4816_s15] ss:$8 sps:$4 sm:$0xff]  }
  0x27   : > { %701 = vmatprep.subr.bf16.mxu0 %v4556_v7  ;;  %s5524_s30 = sld [smem:[#allocation10_spill]]  ;;  %v4912_v17 = vshrl.u32 %v634_v16, 7  ;;  %v632_v19 = vld [vmem:[%s4821_s18] sm:$0x3]  ;;  %vm750_vm2 = vcmask 130048   ;;  %s4724_s15 = smov 64  }
  0x28   : > { %s4725_s18 = smov 48   ;;  %s4726_s29 = smov 112   ;;  %vm1153_vm3 = vcmask 261248   ;;  %vm1366_vm4 = vcmask 392448   ;;  %vm1579_vm5 = vcmask 523648  }
  0x29   : > { %v636_v18 = vsub.s32 0, %v4912_v17  ;;  %v640_v26 = vsub.s32 1, %v4912_v17  ;;  %s4727_s19 = smov 32   ;;  %s4728_s3 = smov 96  }
  0x2a   : > { %702 = vmatpush1.bf16.msra.mxu0 %v4558_v8  ;;  %s4729_s23 = smov 16   ;;  %s4730_s2 = smov 80  }
  0x2b   : > { %703 = vmatprep.subr.bf16.mxu0 %v4559_v9  ;;  %v4918_v20 = vrot.slane %v632_v19, %v636_v18  ;;  %v4937_v29 = vrot.slane %v632_v19, %v640_v26 }
  0x2d   : > { %v618_v13 = vld [vmem:[%s5524_s30] sm:$0xff]  ;;  %v619_v14 = vld [vmem:[%s5524_s30 + $0x8] sm:$0xff]  ;;  %v4966_v49 = vld [vmem:[%s5524_s30 + $0x10] sm:$0xff] }
  0x2e   : > { %704 = vmatpush1.bf16.msra.mxu0 %v4561_v10  ;;  %v622_v15 = vpack.c.bf16 %v619_v14, %v618_v13  ;;  %v4971_v50 = vld [vmem:[%s5524_s30 + $0x18] sm:$0xff] }
  0x2f   : > { %705 = vmatprep.subr.bf16.mxu0 %v4562_v11  ;;  %v623_v51 = vpack.c.bf16 %v4971_v50, %v4966_v49 }
  0x32   : > { %706 = vmatpush1.bf16.msra.mxu0 %v4564_v12 }
  0x35   : > { %4059 = vmatmul.mubr.msk.bf16.vlgmr.msra.gmra.mxu0 %vm684_vm1, %v622_v15 }
  0x36   : > { %733 = vmatprep.mubr.bf16.mxu0 %v4723_v6 }
  0x3d   : > { %4060 = vmatmul.mubr.msk.bf16.gmra.mxu0 %vm684_vm1, %v623_v51 }
  0xf5   : > { %v725_v21 = vpop.f32.mrf.mxu0 }
  0xf6   : > { %v4921_v22 = vadd.f32 %v725_v21, %v4918_v20 }
  0xf7   : > { %v727_v23 = vpop.f32.mrf.mxu0 }
  0xf8   : > { %4417 = vmatprep.mubr.msk.f32.mxu1 %vm750_vm2, %v4921_v22  ;;  %v4946_v32 = vadd.f32 %v727_v23, %v4937_v29 }
  0xf9   : > { %v729_v24 = vpop.f32.mrf.mxu0 }
  0xfa   : > { %v4926_v25 = vadd.f32 %v729_v24, %v4918_v20 }
  0xfb   : > { %v731_v28 = vpop.f32.mrf.mxu0 }
  0xfc   : > { %748 = vrot.lane.b32.xlu0 %v4926_v25, %s4724_s15  ;;  %v4940_v31 = vadd.f32 %v731_v28, %v4937_v29 }
  0xfd   : > { %v5000_v2 = vpop.f32.mrf.mxu0 }
  0xff   : > { %v5003_v4 = vpop.f32.mrf.mxu0 }
 0x100   : > { %746 = vrot.lane.b32.xlu0 %v4921_v22, %s4724_s15 }
 0x101   : > { %v739_v7 = vpop.f32.mrf.mxu0 }
 0x103   : > { %v5006_v10 = vpop.f32.mrf.mxu0 }
 0x16e   : > { %v749_v27 = vpop.permute.xlu0 %748 }
 0x16f   : > { %4413 = vmatprep.subr.msk.mxu1 %vm750_vm2, %v749_v27 }
 0x170   : > { %4414 = vmatpush3.xpose.msk.msra.mxu1 %vm750_vm2, %v749_v27 }
 0x172   : > { %v747_v30 = vpop.permute.xlu0 %746 }
 0x173   : > { %4415 = vmatprep.subr.msk.mxu1 %vm750_vm2, %v747_v30 }
 0x174   : > { %4416 = vmatpush3.xpose.msk.msra.mxu1 %vm750_vm2, %v747_v30 }
 0x175   : > { %4420 = vmatprep.subr.mxu1 %v4940_v31 }
 0x177   : > { %4418 = vmatmul.mubr.msk.f32.vlgmr.msra.gmra.mxu1 %vm750_vm2, %v4926_v25 }
 0x178   : > { %4421 = vmatpush3.msra.mxu1 %v4940_v31 }
 0x179   : > { %4422 = vmatprep.subr.mxu1 %v4946_v32 }
 0x17a   : > { %4423 = vmatpush3.msra.mxu1 %v4946_v32 }
 0x237   : > { %v4419_v33 = vpop.f32.mrf.mxu1 }
 0x238   : > { %v835_v36 = vmul.f32 0.25, %v4419_v33 }
 0x239   : > { %v825_v34 = vpop.f32.mrf.mxu1 }
 0x23a   : > { %v834_v35 = vmul.f32 0.25, %v825_v34  ;;  %v839_v38 = vsel %vm750_vm2, %v835_v36, -inf }
 0x23c   : > { %v836_v37 = vsel %vm750_vm2, %v834_v35, -inf }
 0x23d   : > { %837 = vmax.xlane.f32.xlu1 %v836_v37 }
 0x241   : > { %840 = vmax.xlane.f32.xlu1 %v839_v38 }
 0x2c6   : > { %v838_v39 = vpop.xlane.xlu1 %837 }
 0x2c7   : > { %v842_v40 = vsub.f32 %v834_v35, %v838_v39 }
 0x2c9   : > { %v844_v41 = vmul.f32 1.442695, %v842_v40 }
 0x2ca   : > { %v841_v42 = vpop.xlane.xlu1 %840 }
 0x2cb   : > { %4633 = vpow2.f32 %v844_v41  ;;  %v843_v43 = vsub.f32 %v835_v36, %v841_v42 }
 0x2cd   : > { %v846_v44 = vmul.f32 1.442695, %v843_v43 }
 0x2cf   : > { %4635 = vpow2.f32 %v846_v44 }
 0x2d8   : > { %v4634_v45 = vpop.eup %4633 }
 0x2d9   : > { %v848_v46 = vsel %vm750_vm2, %v4634_v45, 0.0 }
 0x2da   : > { %849 = vadd.xlane.f32.xlu0 %v848_v46 }
 0x2dc   : > { %v4636_v47 = vpop.eup %4635 }
 0x2dd   : > { %v851_v48 = vsel %vm750_vm2, %v4636_v47, 0.0 }
 0x2de   : > { %852 = vadd.xlane.f32.xlu1 %v851_v48 }
 0x2ef   : > { %947 = vrot.lane.b32.xlu1 %v4926_v25, %s4725_s18 }
 0x2f0   : > { %943 = vrot.lane.b32.xlu0 %v4926_v25, %s4726_s29 }
 0x2f3   : > { %945 = vrot.lane.b32.xlu1 %v4921_v22, %s4725_s18 }
 0x2f7   : > { %1162 = vrot.lane.b32.xlu1 %v4926_v25, %s4727_s19 }
 0x2fb   : > { %941 = vrot.lane.b32.xlu1 %v4921_v22, %s4726_s29 }
 0x2ff   : > { %1160 = vrot.lane.b32.xlu1 %v4921_v22, %s4727_s19 }
 0x303   : > { %1156 = vrot.lane.b32.xlu1 %v4921_v22, %s4728_s3 }
 0x307   : > { %1158 = vrot.lane.b32.xlu1 %v4926_v25, %s4728_s3 }
 0x363   : > { %v850_v52 = vpop.xlane.xlu0 %849 }
 0x364   : > { %4637 = vrcp.f32 %v850_v52  ;;  %v5034_v52 = vadd.f32 %v739_v7, %v4918_v20 }
 0x367   : > { %v853_v53 = vpop.xlane.xlu1 %852  ;;  %v944_v63 = vpop.permute.xlu0 %943 }
 0x368   : > { %4639 = vrcp.f32 %v853_v53  ;;  %v5042_v53 = vadd.f32 %v5000_v2, %v4918_v20 }
 0x36b   : > { %v948_v54 = vpop.permute.xlu1 %947 }
 0x36c   : > { %4427 = vmatprep.subr.msk.mxu1 %vm750_vm2, %v948_v54 }
 0x36f   : > { %v946_v55 = vpop.permute.xlu1 %945 }
 0x371   : > { %v4638_v56 = vpop.eup %4637 }
 0x372   : > { %v856_v57 = vmul.f32 %v4638_v56, %v4634_v45 }
 0x373   : > { %v1163_v58 = vpop.permute.xlu1 %1162 }
 0x374   : > { %4424 = vmatprep.mubr.msk.f32.mxu1 %vm750_vm2, %v856_v57  ;;  %4441 = vmatprep.subr.msk.mxu0 %vm750_vm2, %v1163_v58 }
 0x375   : > { %v4640_v59 = vpop.eup %4639  ;;  %4442 = vmatpush3.xpose.msk.msra.mxu0 %vm750_vm2, %v1163_v58 }
 0x376   : > { %v857_v60 = vmul.f32 %v4640_v59, %v4636_v47 }
 0x377   : > { %v942_v61 = vpop.permute.xlu1 %941 }
 0x378   : > { %4425 = vmatmul.mubr.msk.f32.vlgmr.msra.gmra.mxu1 %vm750_vm2, %v857_v60 }
 0x379   : > { %4428 = vmatpush3.xpose.msk.msra.mxu1 %vm750_vm2, %v948_v54  ;;  %4431 = vmatprep.mubr.msk.f32.mxu1 %vm750_vm2, %v942_v61 }
 0x37a   : > { %4429 = vmatprep.subr.msk.mxu1 %vm750_vm2, %v946_v55 }
 0x37b   : > { %v1161_v62 = vpop.permute.xlu1 %1160 }
 0x37c   : > { %4443 = vmatprep.subr.msk.mxu0 %vm750_vm2, %v1161_v62 }
 0x37d   : > { %4430 = vmatpush3.xpose.msk.msra.mxu1 %vm750_vm2, %v946_v55  ;;  %4444 = vmatpush3.xpose.msk.msra.mxu0 %vm750_vm2, %v1161_v62 }
 0x37f   : > { %v1157_v0 = vpop.permute.xlu1 %1156 }
 0x380   : > { %4432 = vmatmul.mubr.msk.f32.vlgmr.msra.gmra.mxu1 %vm750_vm2, %v944_v63  ;;  %4445 = vmatprep.mubr.msk.f32.mxu0 %vm750_vm2, %v1157_v0 }
 0x383   : > { %v1159_v1 = vpop.permute.xlu1 %1158 }
 0x384   : > { %4446 = vmatmul.mubr.msk.f32.vlgmr.msra.gmra.mxu0 %vm750_vm2, %v1159_v1 }
 0x438   : > { %v4426_v3 = vpop.f32.mrf.mxu1 }
 0x439   : > { %940 = vst.msk [vmem:[#allocation2 + $0x8] sm:$0xff] %vm750_vm2, %v4426_v3 }
 0x43a   : > { %v930_v5 = vpop.f32.mrf.mxu1 }
 0x43b   : > { %939 = vst.msk [vmem:[#allocation2] sm:$0xff] %vm750_vm2, %v930_v5 }
 0x440   : > { %v4433_v8 = vpop.f32.mrf.mxu1 }
 0x441   : > { %v1033_v9 = vmul.f32 0.25, %v4433_v8 }
 0x442   : > { %v1023_v11 = vpop.f32.mrf.mxu1 }
 0x443   : > { %v1032_v12 = vmul.f32 0.25, %v1023_v11  ;;  %v1037_v13 = vsel %vm750_vm2, %v1033_v9, -inf }
 0x444   : > { %1038 = vmax.xlane.f32.xlu0 %v1037_v13  ;;  %v4447_v14 = vpop.f32.mrf.mxu0  ;;  %v5070_v13 = vadd.f32 %v5003_v4, %v4937_v29 }
 0x445   : > { %v1248_v15 = vmul.f32 0.25, %v4447_v14  ;;  %v1034_v16 = vsel %vm750_vm2, %v1032_v12, -inf }
 0x446   : > { %1035 = vmax.xlane.f32.xlu1 %v1034_v16  ;;  %v1238_v19 = vpop.f32.mrf.mxu0 }
 0x447   : > { %v1247_v21 = vmul.f32 0.25, %v1238_v19  ;;  %v1252_v23 = vsel %vm750_vm2, %v1248_v15, -inf }
 0x448   : > { %1253 = vmax.xlane.f32.xlu0 %v1252_v23 }
 0x449   : > { %v1249_v24 = vsel %vm750_vm2, %v1247_v21, -inf }
 0x44a   : > { %1250 = vmax.xlane.f32.xlu1 %v1249_v24 }
 0x4cd   : > { %v1039_v27 = vpop.xlane.xlu0 %1038 }
 0x4ce   : > { %v1041_v42 = vsub.f32 %v1033_v9, %v1039_v27 }
 0x4cf   : > { %v1036_v28 = vpop.xlane.xlu1 %1035 }
 0x4d0   : > { %v1044_v43 = vmul.f32 1.442695, %v1041_v42  ;;  %v1040_v44 = vsub.f32 %v1032_v12, %v1036_v28  ;;  %v5064_v12 = vadd.f32 %v5006_v10, %v4937_v29 }
 0x4d1   : > { %v1254_v30 = vpop.xlane.xlu0 %1253 }
 0x4d2   : > { %v1256_v33 = vsub.f32 %v1248_v15, %v1254_v30  ;;  %v1042_v45 = vmul.f32 1.442695, %v1040_v44 }
 0x4d3   : > { %v1251_v34 = vpop.xlane.xlu1 %1250 }
 0x4d4   : > { %v1259_v35 = vmul.f32 1.442695, %v1256_v33  ;;  %v1255_v36 = vsub.f32 %v1247_v21, %v1251_v34 }
 0x4d6   : > { %4641 = vpow2.f32 %v1259_v35  ;;  %v1257_v37 = vmul.f32 1.442695, %v1255_v36 }
 0x4d8   : > { %4643 = vpow2.f32 %v1257_v37 }
 0x4d9   : > { %4645 = vpow2.f32 %v1044_v43 }
 0x4da   : > { %4647 = vpow2.f32 %v1042_v45 }
 0x4e3   : > { %v5012_v38 = vpop.eup %4641 }
 0x4e4   : > { %v1264_v39 = vsel %vm750_vm2, %v5012_v38, 0.0 }
 0x4e5   : > { %v4644_v40 = vpop.eup %4643  ;;  %1265 = vadd.xlane.f32.xlu0 %v1264_v39 }
 0x4e6   : > { %v1261_v41 = vsel %vm750_vm2, %v4644_v40, 0.0  ;;  %v4646_v46 = vpop.eup %4645 }
 0x4e7   : > { %1262 = vadd.xlane.f32.xlu1 %v1261_v41  ;;  %v1049_v47 = vsel %vm750_vm2, %v4646_v46, 0.0  ;;  %v4648_v48 = vpop.eup %4647 }
 0x4e8   : > { %v1046_v51 = vsel %vm750_vm2, %v4648_v48, 0.0 }
 0x4f8   : > { %1060 = vrot.lane.b32.xlu1 %v4940_v31, %s4726_s29 }
 0x4fb   : > { %1058 = vrot.lane.b32.xlu0 %v4946_v32, %s4726_s29 }
 0x4fc   : > { %1273 = vrot.lane.b32.xlu1 %v4940_v31, %s4728_s3 }
 0x500   : > { %1271 = vrot.lane.b32.xlu1 %v4946_v32, %s4728_s3 }
 0x51a   : > { %1050 = vadd.xlane.f32.xlu0 %v1049_v47 }
 0x524   : > { %1047 = vadd.xlane.f32.xlu1 %v1046_v51 }
 0x530   : > { %1375 = vrot.lane.b32.xlu0 %v4926_v25, %s4729_s23 }
 0x534   : > { %1369 = vrot.lane.b32.xlu0 %v4921_v22, %s4730_s2 }
 0x535   : > { %1373 = vrot.lane.b32.xlu1 %v4921_v22, %s4729_s23 }
 0x538   : > { %1371 = vrot.lane.b32.xlu0 %v4926_v25, %s4730_s2 }
 0x539   : > { %1586 = vrot.lane.b32.xlu1 %v5034_v52, %s4724_s15 }
 0x53d   : > { %1584 = vrot.lane.b32.xlu1 %v5042_v53, %s4724_s15 }
 0x56e   : > { %v1266_v54 = vpop.xlane.xlu0 %1265 }
 0x570   : > { %v1263_v55 = vpop.xlane.xlu1 %1262 }
 0x571   : > { %4649 = vrcp.f32 %v1263_v55 }
 0x572   : > { %v1059_v22 = vpop.permute.xlu0 %1058 }
 0x574   : > { %v1061_v56 = vpop.permute.xlu1 %1060 }
 0x575   : > { %4434 = vmatprep.subr.mxu1 %v1061_v56 }
 0x576   : > { %4435 = vmatpush3.msra.mxu1 %v1061_v56 }
 0x577   : > { %4436 = vmatprep.subr.mxu1 %v1059_v22 }
 0x578   : > { %4437 = vmatpush3.msra.mxu1 %v1059_v22  ;;  %v1274_v57 = vpop.permute.xlu1 %1273 }
 0x579   : > { %4448 = vmatprep.subr.mxu1 %v1274_v57 }
 0x57c   : > { %v1272_v25 = vpop.permute.xlu1 %1271 }
 0x57e   : > { %v4650_v20 = vpop.eup %4649 }
 0x57f   : > { %v1269_v2 = vmul.f32 %v4650_v20, %v4644_v40 }
 0x5a3   : > { %v1051_v58 = vpop.xlane.xlu0 %1050 }
 0x5a4   : > { %4651 = vrcp.f32 %v1051_v58 }
 0x5a7   : > { %v1376_v63 = vpop.permute.xlu0 %1375 }
 0x5ab   : > { %v1370_v7 = vpop.permute.xlu0 %1369 }
 0x5ad   : > { %v1048_v59 = vpop.xlane.xlu1 %1047 }
 0x5ae   : > { %4653 = vrcp.f32 %v1048_v59 }
 0x5af   : > { %4655 = vrcp.f32 %v1266_v54  ;;  %v1372_v9 = vpop.permute.xlu0 %1371 }
 0x5b1   : > { %v4652_v60 = vpop.eup %4651  ;;  %v1374_v3 = vpop.permute.xlu1 %1373 }
 0x5b2   : > { %v1055_v0 = vmul.f32 %v4652_v60, %v4646_v46 }
 0x5b5   : > { %v1587_v8 = vpop.permute.xlu1 %1586 }
 0x5b9   : > { %v1585_v11 = vpop.permute.xlu1 %1584 }
 0x5bb   : > { %v4654_v61 = vpop.eup %4653 }
 0x5bc   : > { %v1054_v62 = vmul.f32 %v4654_v61, %v4648_v48  ;;  %v4656_v1 = vpop.eup %4655 }
 0x5bd   : > { %v1270_v5 = vmul.f32 %v4656_v1, %v5012_v38 }
 0x5be   : > { %4438 = vmatprep.mubr.msk.f32.mxu1 %vm750_vm2, %v1054_v62 }
 0x5bf   : > { %4439 = vmatmul.mubr.msk.f32.vlgmr.msra.gmra.mxu1 %vm750_vm2, %v1055_v0 }
 0x5c0   : > { %4449 = vmatpush3.msra.mxu1 %v1274_v57  ;;  %4452 = vmatprep.mubr.msk.f32.mxu1 %vm750_vm2, %v1269_v2 }
 0x5c1   : > { %4450 = vmatprep.subr.mxu1 %v1272_v25 }
 0x5c2   : > { %4451 = vmatpush3.msra.mxu1 %v1272_v25 }
 0x5c3   : > { %4455 = vmatprep.subr.msk.mxu1 %vm750_vm2, %v1376_v63  ;;  %4453 = vmatmul.mubr.msk.f32.vlgmr.msra.gmra.mxu1 %vm750_vm2, %v1270_v5 }
 0x5c4   : > { %4456 = vmatpush3.xpose.msk.msra.mxu1 %vm750_vm2, %v1376_v63  ;;  %4459 = vmatprep.mubr.msk.f32.mxu1 %vm750_vm2, %v1370_v7 }
 0x5c5   : > { %4457 = vmatprep.subr.msk.mxu1 %vm750_vm2, %v1374_v3 }
 0x5c8   : > { %4458 = vmatpush3.xpose.msk.msra.mxu1 %vm750_vm2, %v1374_v3 }
 0x5c9   : > { %4469 = vmatprep.subr.msk.mxu1 %vm750_vm2, %v1587_v8 }
 0x5cb   : > { %4460 = vmatmul.mubr.msk.f32.vlgmr.msra.gmra.mxu1 %vm750_vm2, %v1372_v9 }
 0x5cc   : > { %4470 = vmatpush3.xpose.msk.msra.mxu1 %vm750_vm2, %v1587_v8  ;;  %4473 = vmatprep.mubr.msk.f32.mxu1 %vm750_vm2, %v5042_v53 }
 0x5cd   : > { %4471 = vmatprep.subr.msk.mxu1 %vm750_vm2, %v1585_v11 }
 0x5d0   : > { %4472 = vmatpush3.xpose.msk.msra.mxu1 %vm750_vm2, %v1585_v11 }
 0x5d1   : > { %4476 = vmatprep.subr.mxu1 %v5064_v12 }
 0x5d3   : > { %4474 = vmatmul.mubr.msk.f32.vlgmr.msra.gmra.mxu1 %vm750_vm2, %v5034_v52 }
 0x5d4   : > { %4477 = vmatpush3.msra.mxu1 %v5064_v12 }
 0x5d5   : > { %4478 = vmatprep.subr.mxu1 %v5070_v13 }
 0x5d6   : > { %4479 = vmatpush3.msra.mxu1 %v5070_v13 }
 0x67f   : > { %v5077_v14 = vpop.f32.mrf.mxu1 }
 0x681   : > { %v5079_v10 = vpop.f32.mrf.mxu1 }
 0x683   : > { %v5081_v15 = vpop.f32.mrf.mxu1 }
 0x685   : > { %v5083_v16 = vpop.f32.mrf.mxu1 }
 0x68b   : > { %v4461_v19 = vpop.f32.mrf.mxu1 }
 0x68c   : > { %v1461_v30 = vmul.f32 0.25, %v4461_v19 }
 0x68d   : > { %v1451_v29 = vpop.f32.mrf.mxu1 }
 0x68e   : > { %v1465_v33 = vsel %vm750_vm2, %v1461_v30, -inf  ;;  %v1460_v45 = vmul.f32 0.25, %v1451_v29 }
 0x690   : > { %v1462_v46 = vsel %vm750_vm2, %v1460_v45, -inf }
 0x693   : > { %v4475_v4 = vpop.f32.mrf.mxu1 }
 0x694   : > { %v1672_v21 = vmul.f32 0.25, %v4475_v4 }
 0x695   : > { %v1662_v23 = vpop.f32.mrf.mxu1 }
 0x696   : > { %v1671_v24 = vmul.f32 0.25, %v1662_v23  ;;  %v1676_v27 = vsel %vm750_vm2, %v1672_v21, -inf }
 0x697   : > { %1677 = vmax.xlane.f32.xlu1 %v1676_v27 }
 0x698   : > { %v1673_v28 = vsel %vm750_vm2, %v1671_v24, -inf }
 0x699   : > { %1674 = vmax.xlane.f32.xlu0 %v1673_v28 }
 0x6a8   : > { %1784 = vrot.lane.b32.xlu1 %v5034_v52, %s4725_s18 }
 0x6ac   : > { %1778 = vrot.lane.b32.xlu1 %v5042_v53, %s4726_s29 }
 0x6b0   : > { %1780 = vrot.lane.b32.xlu1 %v5034_v52, %s4726_s29 }
 0x6d4   : > { %1466 = vmax.xlane.f32.xlu1 %v1465_v33 }
 0x720   : > { %v1678_v34 = vpop.xlane.xlu1 %1677 }
 0x721   : > { %v1680_v35 = vsub.f32 %v1672_v21, %v1678_v34 }
 0x722   : > { %v1675_v36 = vpop.xlane.xlu0 %1674 }
 0x723   : > { %v1679_v37 = vsub.f32 %v1671_v24, %v1675_v36  ;;  %v1683_v39 = vmul.f32 1.442695, %v1680_v35 }
 0x724   : > { %v1785_v38 = vpop.permute.xlu1 %1784 }
 0x725   : > { %v1681_v40 = vmul.f32 1.442695, %v1679_v37  ;;  %4483 = vmatprep.subr.msk.mxu1 %vm750_vm2, %v1785_v38 }
 0x727   : > { %4657 = vpow2.f32 %v1681_v40 }
 0x728   : > { %4659 = vpow2.f32 %v1683_v39  ;;  %v1779_v22 = vpop.permute.xlu1 %1778 }
 0x72c   : > { %v1781_v25 = vpop.permute.xlu1 %1780 }
 0x734   : > { %v4658_v41 = vpop.eup %4657 }
 0x735   : > { %v1685_v42 = vsel %vm750_vm2, %v4658_v41, 0.0  ;;  %v4660_v43 = vpop.eup %4659 }
 0x736   : > { %1686 = vadd.xlane.f32.xlu0 %v1685_v42  ;;  %v1688_v44 = vsel %vm750_vm2, %v4660_v43, 0.0 }
 0x73a   : > { %1689 = vadd.xlane.f32.xlu0 %v1688_v44 }
 0x750   : > { %1782 = vrot.lane.b32.xlu0 %v5042_v53, %s4725_s18 }
 0x75d   : > { %v1467_v62 = vpop.xlane.xlu1 %1466 }
 0x75e   : > { %v1469_v63 = vsub.f32 %v1461_v30, %v1467_v62 }
 0x760   : > { %v1472_v1 = vmul.f32 1.442695, %v1469_v63 }
 0x76f   : > { %1463 = vmax.xlane.f32.xlu0 %v1462_v46 }
 0x7bf   : > { %v1687_v47 = vpop.xlane.xlu0 %1686 }
 0x7c0   : > { %4661 = vrcp.f32 %v1687_v47 }
 0x7c3   : > { %v1690_v48 = vpop.xlane.xlu0 %1689 }
 0x7c4   : > { %4663 = vrcp.f32 %v1690_v48 }
 0x7c7   : > { %v1783_v57 = vpop.permute.xlu0 %1782 }
 0x7cd   : > { %v4662_v51 = vpop.eup %4661 }
 0x7ce   : > { %v1693_v54 = vmul.f32 %v4662_v51, %v4658_v41 }
 0x7d0   : > { %4480 = vmatprep.mubr.msk.f32.mxu1 %vm750_vm2, %v1693_v54 }
 0x7d1   : > { %v4664_v55 = vpop.eup %4663 }
 0x7d2   : > { %v1694_v56 = vmul.f32 %v4664_v55, %v4660_v43 }
 0x7d4   : > { %4481 = vmatmul.mubr.msk.f32.vlgmr.msra.gmra.mxu1 %vm750_vm2, %v1694_v56 }
 0x7d5   : > { %4484 = vmatpush3.xpose.msk.msra.mxu1 %vm750_vm2, %v1785_v38  ;;  %4487 = vmatprep.mubr.msk.f32.mxu1 %vm750_vm2, %v1779_v22 }
 0x7d6   : > { %4485 = vmatprep.subr.msk.mxu1 %vm750_vm2, %v1783_v57 }
 0x7d9   : > { %4486 = vmatpush3.xpose.msk.msra.mxu1 %vm750_vm2, %v1783_v57 }
 0x7dc   : > { %4488 = vmatmul.mubr.msk.f32.vlgmr.msra.gmra.mxu1 %vm750_vm2, %v1781_v25 }
 0x7f8   : > { %v1464_v58 = vpop.xlane.xlu0 %1463 }
 0x7f9   : > { %v1468_v59 = vsub.f32 %v1460_v45, %v1464_v58 }
 0x7fb   : > { %v1470_v20 = vmul.f32 1.442695, %v1468_v59 }
 0x7fd   : > { %4665 = vpow2.f32 %v1470_v20 }
 0x80a   : > { %v4666_v60 = vpop.eup %4665 }
 0x80b   : > { %v1474_v61 = vsel %vm750_vm2, %v4666_v60, 0.0 }
 0x80c   : > { %1475 = vadd.xlane.f32.xlu1 %v1474_v61 }
 0x81d   : > { %1486 = vrot.lane.b32.xlu1 %v4940_v31, %s4730_s2 }
 0x821   : > { %1897 = vrot.lane.b32.xlu1 %v5064_v12, %s4726_s29 }
 0x825   : > { %1895 = vrot.lane.b32.xlu1 %v5070_v13, %s4726_s29 }
 0x829   : > { %1996 = vrot.lane.b32.xlu1 %v5042_v53, %s4727_s19 }
 0x894   : > { %v4482_v0 = vpop.f32.mrf.mxu1 }
 0x895   : > { %1777 = vst.msk [vmem:[#allocation2 + $0x18] sm:$0xff] %vm750_vm2, %v4482_v0  ;;  %v1476_v2 = vpop.xlane.xlu1 %1475 }
 0x896   : > { %4667 = vrcp.f32 %v1476_v2  ;;  %v1767_v3 = vpop.f32.mrf.mxu1 }
 0x897   : > { %1776 = vst.msk [vmem:[#allocation2 + $0x10] sm:$0xff] %vm750_vm2, %v1767_v3  ;;  %4669 = vpow2.f32 %v1472_v1 }
 0x899   : > { %v1487_v31 = vpop.permute.xlu1 %1486 }
 0x89a   : > { %4462 = vmatprep.subr.mxu0 %v1487_v31 }
 0x89b   : > { %4463 = vmatpush3.msra.mxu0 %v1487_v31 }
 0x89c   : > { %v4489_v5 = vpop.f32.mrf.mxu1 }
 0x89d   : > { %v1870_v9 = vmul.f32 0.25, %v4489_v5  ;;  %v1898_v37 = vpop.permute.xlu1 %1897 }
 0x89e   : > { %v1860_v7 = vpop.f32.mrf.mxu1 }
 0x89f   : > { %v1869_v8 = vmul.f32 0.25, %v1860_v7  ;;  %v1874_v4 = vsel %vm750_vm2, %v1870_v9, -inf }
 0x8a1   : > { %v1871_v11 = vsel %vm750_vm2, %v1869_v8, -inf  ;;  %v1896_v43 = vpop.permute.xlu1 %1895 }
 0x8a2   : > { %1872 = vmax.xlane.f32.xlu0 %v1871_v11 }
 0x8a3   : > { %v4668_v19 = vpop.eup %4667 }
 0x8a4   : > { %v1482_v29 = vmul.f32 %v4668_v19, %v4666_v60  ;;  %v4670_v21 = vpop.eup %4669 }
 0x8a5   : > { %v1477_v23 = vsel %vm750_vm2, %v4670_v21, 0.0  ;;  %v1997_v44 = vpop.permute.xlu1 %1996 }
 0x8a6   : > { %1875 = vmax.xlane.f32.xlu0 %v1874_v4  ;;  %4466 = vmatprep.mubr.msk.f32.mxu0 %vm750_vm2, %v1482_v29 }
 0x8aa   : > { %1478 = vadd.xlane.f32.xlu0 %v1477_v23 }
 0x8c0   : > { %1484 = vrot.lane.b32.xlu0 %v4946_v32, %s4730_s2 }
 0x92b   : > { %v1873_v24 = vpop.xlane.xlu0 %1872 }
 0x92c   : > { %v1877_v27 = vsub.f32 %v1869_v8, %v1873_v24 }
 0x92e   : > { %v1879_v28 = vmul.f32 1.442695, %v1877_v27 }
 0x92f   : > { %v1876_v30 = vpop.xlane.xlu0 %1875 }
 0x930   : > { %4671 = vpow2.f32 %v1879_v28  ;;  %v1878_v33 = vsub.f32 %v1870_v9, %v1876_v30 }
 0x932   : > { %v1881_v34 = vmul.f32 1.442695, %v1878_v33 }
 0x933   : > { %v1479_v35 = vpop.xlane.xlu0 %1478 }
 0x934   : > { %4673 = vpow2.f32 %v1881_v34 }
 0x935   : > { %4675 = vrcp.f32 %v1479_v35 }
 0x937   : > { %v1485_v36 = vpop.permute.xlu0 %1484 }
 0x938   : > { %4464 = vmatprep.subr.mxu0 %v1485_v36 }
 0x939   : > { %4465 = vmatpush3.msra.mxu0 %v1485_v36 }
 0x93a   : > { %4490 = vmatprep.subr.mxu0 %v1898_v37 }
 0x93d   : > { %v4672_v38 = vpop.eup %4671 }
 0x93e   : > { %v1883_v39 = vsel %vm750_vm2, %v4672_v38, 0.0 }
 0x93f   : > { %1884 = vadd.xlane.f32.xlu1 %v1883_v39 }
 0x941   : > { %v4674_v32 = vpop.eup %4673 }
 0x942   : > { %v4676_v40 = vpop.eup %4675  ;;  %v1886_v41 = vsel %vm750_vm2, %v4674_v32, 0.0 }
 0x943   : > { %1887 = vadd.xlane.f32.xlu0 %v1886_v41  ;;  %v1483_v42 = vmul.f32 %v4676_v40, %v4670_v21 }
 0x945   : > { %4467 = vmatmul.mubr.msk.f32.vlgmr.msra.gmra.mxu0 %vm750_vm2, %v1483_v42 }
 0x946   : > { %4491 = vmatpush3.msra.mxu0 %v1898_v37 }
 0x947   : > { %4492 = vmatprep.subr.mxu0 %v1896_v43 }
 0x948   : > { %4493 = vmatpush3.msra.mxu0 %v1896_v43 }
 0x950   : > { %1994 = vrot.lane.b32.xlu1 %v5034_v52, %s4728_s3 }
 0x959   : > { %1998 = vrot.lane.b32.xlu0 %v5034_v52, %s4727_s19 }
 0x95d   : > { %1992 = vrot.lane.b32.xlu0 %v5042_v53, %s4728_s3 }
 0x9c8   : > { %v1885_v45 = vpop.xlane.xlu1 %1884 }
 0x9c9   : > { %4677 = vrcp.f32 %v1885_v45 }
 0x9cc   : > { %v1888_v46 = vpop.xlane.xlu0 %1887  ;;  %v1995_v22 = vpop.permute.xlu1 %1994 }
 0x9cd   : > { %4679 = vrcp.f32 %v1888_v46 }
 0x9d0   : > { %v1999_v47 = vpop.permute.xlu0 %1998 }
 0x9d1   : > { %4497 = vmatprep.subr.msk.mxu0 %vm750_vm2, %v1999_v47 }
 0x9d4   : > { %v1993_v56 = vpop.permute.xlu0 %1992 }
 0x9d6   : > { %v4678_v48 = vpop.eup %4677 }
 0x9d7   : > { %v1891_v51 = vmul.f32 %v4678_v48, %v4672_v38 }
 0x9d9   : > { %4494 = vmatprep.mubr.msk.f32.mxu0 %vm750_vm2, %v1891_v51 }
 0x9da   : > { %v4680_v54 = vpop.eup %4679 }
 0x9db   : > { %v1892_v55 = vmul.f32 %v4680_v54, %v4674_v32 }
 0x9dd   : > { %4495 = vmatmul.mubr.msk.f32.vlgmr.msra.gmra.mxu0 %vm750_vm2, %v1892_v55 }
 0x9de   : > { %4498 = vmatpush3.xpose.msk.msra.mxu0 %vm750_vm2, %v1999_v47  ;;  %4501 = vmatprep.mubr.msk.f32.mxu0 %vm750_vm2, %v1993_v56 }
 0x9df   : > { %4499 = vmatprep.subr.msk.mxu0 %vm750_vm2, %v1997_v44 }
 0x9e2   : > { %4500 = vmatpush3.xpose.msk.msra.mxu0 %vm750_vm2, %v1997_v44 }
 0x9e5   : > { %4502 = vmatmul.mubr.msk.f32.vlgmr.msra.gmra.mxu0 %vm750_vm2, %v1995_v22 }
 0xa05   : > { %v5141_v57 = vpop.f32.mrf.mxu0 }
 0xa07   : > { %v5143_v25 = vpop.f32.mrf.mxu0 }
 0xa9d   : > { %v5145_v58 = vpop.f32.mrf.mxu0 }
 0xa9f   : > { %v5147_v59 = vpop.f32.mrf.mxu0 }
 0xaa5   : > { %v4503_v20 = vpop.f32.mrf.mxu0 }
 0xaa6   : > { %v2084_v60 = vmul.f32 0.25, %v4503_v20 }
 0xaa7   : > { %v2074_v61 = vpop.f32.mrf.mxu0 }
 0xaa8   : > { %v2083_v62 = vmul.f32 0.25, %v2074_v61  ;;  %v2088_v63 = vsel %vm750_vm2, %v2084_v60, -inf }
 0xaa9   : > { %2089 = vmax.xlane.f32.xlu1 %v2088_v63 }
 0xaaa   : > { %v2085_v0 = vsel %vm750_vm2, %v2083_v62, -inf }
 0xaab   : > { %2086 = vmax.xlane.f32.xlu0 %v2085_v0 }
 0xaba   : > { %2109 = vrot.lane.b32.xlu1 %v5064_v12, %s4728_s3 }
 0xabe   : > { %2210 = vrot.lane.b32.xlu1 %v5034_v52, %s4729_s23 }
 0xac2   : > { %2208 = vrot.lane.b32.xlu1 %v5042_v53, %s4729_s23 }
 0xac6   : > { %2206 = vrot.lane.b32.xlu1 %v5034_v52, %s4730_s2 }
 0xb32   : > { %v2090_v1 = vpop.xlane.xlu1 %2089 }
 0xb33   : > { %v2092_v2 = vsub.f32 %v2084_v60, %v2090_v1 }
 0xb34   : > { %v2087_v3 = vpop.xlane.xlu0 %2086 }
 0xb35   : > { %v2095_v31 = vmul.f32 1.442695, %v2092_v2  ;;  %v2091_v5 = vsub.f32 %v2083_v62, %v2087_v3 }
 0xb36   : > { %v2110_v7 = vpop.permute.xlu1 %2109 }
 0xb37   : > { %4681 = vpow2.f32 %v2095_v31  ;;  %v2093_v8 = vmul.f32 1.442695, %v2091_v5  ;;  %4504 = vmatprep.subr.mxu1 %v2110_v7  ;;  %v4565_v31 = vld [vmem:[%s4831_s25 + $0x18] sm:$0xff]   ;;  %v4566_v5 = vld [vmem:[%s4831_s25 + $0x10] sm:$0xff]  }
 0xb38   : > { %4505 = vmatpush3.msra.mxu1 %v2110_v7  ;;  %v4567_v7 = vld [vmem:[%s4831_s25 + $0x8] sm:$0xff]  }
 0xb39   : > { %4683 = vpow2.f32 %v2093_v8  ;;  %v4568_v8 = vld [vmem:[%s4831_s25] sm:$0xff]  }
 0xb3a   : > { %v2211_v23 = vpop.permute.xlu1 %2210 }
 0xb44   : > { %v4682_v9 = vpop.eup %4681 }
 0xb45   : > { %v2100_v11 = vsel %vm750_vm2, %v4682_v9, 0.0 }
 0xb46   : > { %v4684_v19 = vpop.eup %4683  ;;  %2101 = vadd.xlane.f32.xlu0 %v2100_v11 }
 0xb47   : > { %v2097_v29 = vsel %vm750_vm2, %v4684_v19, 0.0 }
 0xb4a   : > { %2098 = vadd.xlane.f32.xlu0 %v2097_v29 }
 0xb60   : > { %2107 = vrot.lane.b32.xlu0 %v5070_v13, %s4728_s3 }
 0xb64   : > { %2204 = vrot.lane.b32.xlu0 %v5042_v53, %s4730_s2  ;;  %v2209_v53 = vpop.permute.xlu1 %2208 }
 0xb68   : > { %v2207_v34 = vpop.permute.xlu1 %2206 }
 0xbcf   : > { %v2102_v52 = vpop.xlane.xlu0 %2101 }
 0xbd0   : > { %4685 = vrcp.f32 %v2102_v52 }
 0xbd3   : > { %v2099_v4 = vpop.xlane.xlu0 %2098 }
 0xbd4   : > { %4687 = vrcp.f32 %v2099_v4 }
 0xbd7   : > { %v2108_v21 = vpop.permute.xlu0 %2107 }
 0xbd8   : > { %4506 = vmatprep.subr.mxu1 %v2108_v21 }
 0xbd9   : > { %4507 = vmatpush3.msra.mxu1 %v2108_v21 }
 0xbda   : > { %4511 = vmatprep.subr.msk.mxu1 %vm750_vm2, %v2211_v23 }
 0xbdb   : > { %v2205_v33 = vpop.permute.xlu0 %2204 }
 0xbdd   : > { %v4686_v24 = vpop.eup %4685 }
 0xbde   : > { %v2106_v30 = vmul.f32 %v4686_v24, %v4682_v9  ;;  %v4109_v24 = vld [vmem:[%s5525_s14] ss:$0 sm:$0xff] }
 0xbe1   : > { %v4688_v27 = vpop.eup %4687 }
 0xbe2   : > { %v2105_v28 = vmul.f32 %v4688_v27, %v4684_v19 }
 0xbe4   : > { %4508 = vmatprep.mubr.msk.f32.mxu1 %vm750_vm2, %v2105_v28 }
 0xbe5   : > { %4509 = vmatmul.mubr.msk.f32.vlgmr.msra.gmra.mxu1 %vm750_vm2, %v2106_v30 }
 0xbe6   : > { %4512 = vmatpush3.xpose.msk.msra.mxu1 %vm750_vm2, %v2211_v23  ;;  %4515 = vmatprep.mubr.msk.f32.mxu1 %vm750_vm2, %v2205_v33 }
 0xbe7   : > { %4513 = vmatprep.subr.msk.mxu1 %vm750_vm2, %v2209_v53 }
 0xbea   : > { %4514 = vmatpush3.xpose.msk.msra.mxu1 %vm750_vm2, %v2209_v53  ;;  %v4713_v53 = vld [vmem:[%s5524_s30] sm:$0xff] }
 0xbed   : > { %4516 = vmatmul.mubr.msk.f32.vlgmr.msra.gmra.mxu1 %vm750_vm2, %v2207_v34 }
 0xbee   : > { %2869 = vmatprep.mubr.bf16.mxu1 %v4723_v6 }
 0xca5   : > { %v4510_v35 = vpop.f32.mrf.mxu1 }
 0xca7   : > { %v2185_v36 = vpop.f32.mrf.mxu1 }
 0xcad   : > { %v4517_v37 = vpop.f32.mrf.mxu1 }
 0xcae   : > { %v2296_v38 = vmul.f32 0.25, %v4517_v37 }
 0xcaf   : > { %v2286_v39 = vpop.f32.mrf.mxu1 }
 0xcb0   : > { %v2295_v32 = vmul.f32 0.25, %v2286_v39  ;;  %v2300_v40 = vsel %vm750_vm2, %v2296_v38, -inf }
 0xcb1   : > { %2301 = vmax.xlane.f32.xlu1 %v2300_v40 }
 0xcb2   : > { %v2297_v41 = vsel %vm750_vm2, %v2295_v32, -inf }
 0xcb3   : > { %2298 = vmax.xlane.f32.xlu0 %v2297_v41 }
 0xcc2   : > { %2321 = vrot.lane.b32.xlu1 %v5064_v12, %s4730_s2 }
 0xcc6   : > { %1147 = vrot.lane.b32.xlu1 %v5079_v10, %s4729_s23 }
 0xcca   : > { %1149 = vrot.lane.b32.xlu1 %v5077_v14, %s4729_s23 }
 0xcce   : > { %1362 = vrot.lane.b32.xlu1 %v5081_v15, %s4727_s19 }
 0xcd2   : > { %1986 = vrot.lane.b32.xlu1 %v5145_v58, %s4729_s23 }
 0xcd6   : > { %1575 = vrot.lane.b32.xlu1 %v5141_v57, %s4725_s18 }
 0xcda   : > { %2198 = vrot.lane.b32.xlu1 %v4510_v35, %s4727_s19 }
 0xd3a   : > { %v2302_v42 = vpop.xlane.xlu1 %2301 }
 0xd3b   : > { %v2304_v43 = vsub.f32 %v2296_v38, %v2302_v42 }
 0xd3c   : > { %v2299_v12 = vpop.xlane.xlu0 %2298 }
 0xd3d   : > { %v2307_v44 = vmul.f32 1.442695, %v2304_v43  ;;  %v2303_v45 = vsub.f32 %v2295_v32, %v2299_v12  ;;  %v4714_v32 = vld [vmem:[%s5524_s30 + $0x8] sm:$0xff] }
 0xd3e   : > { %v2322_v10 = vpop.permute.xlu1 %2321 }
 0xd3f   : > { %4689 = vpow2.f32 %v2307_v44  ;;  %v2305_v46 = vmul.f32 1.442695, %v2303_v45  ;;  %4518 = vmatprep.subr.mxu0 %v2322_v10 }
 0xd40   : > { %4519 = vmatpush3.msra.mxu0 %v2322_v10 }
 0xd41   : > { %4691 = vpow2.f32 %v2305_v46 }
 0xd42   : > { %v1148_v14 = vpop.permute.xlu1 %1147 }
 0xd43   : > { %1154 = vst.msk [vmem:[#allocation2] sm:$0xff] %vm1153_vm3, %v1148_v14 }
 0xd46   : > { %v1150_v15 = vpop.permute.xlu1 %1149 }
 0xd47   : > { %1155 = vst.msk [vmem:[#allocation2 + $0x8] sm:$0xff] %vm1153_vm3, %v1150_v15 }
 0xd4a   : > { %v1363_v47 = vpop.permute.xlu1 %1362 }
 0xd4b   : > { %1368 = vst.msk [vmem:[#allocation2 + $0x8] sm:$0xff] %vm1366_vm4, %v1363_v47 }
 0xd4c   : > { %v4690_v48 = vpop.eup %4689 }
 0xd4d   : > { %v2312_v51 = vsel %vm750_vm2, %v4690_v48, 0.0 }
 0xd4e   : > { %v4692_v54 = vpop.eup %4691  ;;  %v1987_v55 = vpop.permute.xlu1 %1986  ;;  %2313 = vadd.xlane.f32.xlu0 %v2312_v51 }
 0xd4f   : > { %1991 = vst.msk [vmem:[#allocation2 + $0x18] sm:$0xff] %vm1153_vm3, %v1987_v55  ;;  %v2309_v56 = vsel %vm750_vm2, %v4692_v54, 0.0 }
 0xd52   : > { %v1576_v22 = vpop.permute.xlu1 %1575  ;;  %2310 = vadd.xlane.f32.xlu0 %v2309_v56 }
 0xd53   : > { %1581 = vst.msk [vmem:[#allocation2 + $0x8] sm:$0xff] %vm1579_vm5, %v1576_v22 }
 0xd56   : > { %v2199_v57 = vpop.permute.xlu1 %2198 }
 0xd57   : > { %2203 = vst.msk [vmem:[#allocation2 + $0x18] sm:$0xff] %vm1366_vm4, %v2199_v57 }
 0xd5a   : > { %v2417_v2 = vld [vmem:[#allocation2 + $0x8] sm:$0xff] }
 0xd68   : > { %2319 = vrot.lane.b32.xlu0 %v5070_v13, %s4730_s2 }
 0xd6c   : > { %1360 = vrot.lane.b32.xlu0 %v5083_v16, %s4727_s19 }
 0xd70   : > { %1984 = vrot.lane.b32.xlu0 %v5147_v59, %s4729_s23  ;;  %s5527_s23 = scalar_lea.vmem %s5505_s12, %s4809_s27 }
 0xd74   : > { %1573 = vrot.lane.b32.xlu0 %v5143_v25, %s4725_s18 }
 0xd78   : > { %2196 = vrot.lane.b32.xlu0 %v2185_v36, %s4727_s19 }
 0xdd7   : > { %v2314_v58 = vpop.xlane.xlu0 %2313 }
 0xdd8   : > { %4693 = vrcp.f32 %v2314_v58 }
 0xddb   : > { %v2311_v20 = vpop.xlane.xlu0 %2310 }
 0xddc   : > { %4695 = vrcp.f32 %v2311_v20 }
 0xddf   : > { %v2320_v60 = vpop.permute.xlu0 %2319 }
 0xde0   : > { %4520 = vmatprep.subr.mxu0 %v2320_v60 }
 0xde1   : > { %4521 = vmatpush3.msra.mxu0 %v2320_v60 }
 0xde2   : > { %4525 = vmatprep.subr.bf16.mxu0 %v4565_v31 }
 0xde3   : > { %v1361_v61 = vpop.permute.xlu0 %1360 }
 0xde4   : > { %1367 = vst.msk [vmem:[#allocation2] sm:$0xff] %vm1366_vm4, %v1361_v61 }
 0xde5   : > { %v4694_v16 = vpop.eup %4693 }
 0xde6   : > { %v2318_v63 = vmul.f32 %v4694_v16, %v4690_v48  ;;  %v2625_v16 = vld [vmem:[%s4837_s28 + $0xe0] sm:$0xff] }
 0xde7   : > { %v1985_v13 = vpop.permute.xlu0 %1984 }
 0xde8   : > { %1990 = vst.msk [vmem:[#allocation2 + $0x10] sm:$0xff] %vm1153_vm3, %v1985_v13  ;;  %v2621_v13 = vld [vmem:[%s4837_s28 + $0xc0] sm:$0xff] }
 0xde9   : > { %v4696_v59 = vpop.eup %4695 }
 0xdea   : > { %v2317_v25 = vmul.f32 %v4696_v59, %v4692_v54  ;;  %v2622_v59 = vld [vmem:[%s4837_s28 + $0xc8] sm:$0xff] }
 0xdeb   : > { %v1574_v62 = vpop.permute.xlu0 %1573 }
 0xdec   : > { %1580 = vst.msk [vmem:[#allocation2] sm:$0xff] %vm1579_vm5, %v1574_v62  ;;  %4522 = vmatprep.mubr.msk.f32.mxu0 %vm750_vm2, %v2317_v25  ;;  %v4143_v25 = vcombine.high %v2621_v13, %v2625_v16  ;;  %v2626_v62 = vld [vmem:[%s4837_s28 + $0xe8] sm:$0xff] }
 0xded   : > { %4523 = vmatmul.mubr.msk.f32.vlgmr.msra.gmra.mxu0 %vm750_vm2, %v2318_v63  ;;  %v4142_v63 = vcombine.low %v2621_v13, %v2625_v16 }
 0xdee   : > { %4526 = vmatpush3.bf16.msra.mxu0 %v4565_v31  ;;  %2845 = vmatprep.subr.bf16.mxu1 %v4143_v25  ;;  %v2614_v31 = vld [vmem:[%s4837_s28 + $0x88] sm:$0xff]  ;;  %v4117_v25 = vld [vmem:[%s597_s16] ss:$0 sm:$0xff] }
 0xdef   : > { %v2197_v0 = vpop.permute.xlu0 %2196  ;;  %4527 = vmatprep.subr.bf16.mxu0 %v4566_v5  ;;  %2846 = vmatpush1.bf16.msra.mxu1 %v4142_v63  ;;  %v2615_v63 = vld [vmem:[%s4837_s28 + $0x90] sm:$0xff] }
 0xdf0   : > { %2202 = vst.msk [vmem:[#allocation2 + $0x10] sm:$0xff] %vm1366_vm4, %v2197_v0  ;;  %v4144_v0 = vcombine.low %v2622_v59, %v2626_v62 }
 0xdf2   : > { %4528 = vmatpush3.bf16.msra.mxu0 %v4566_v5 }
 0xdf3   : > { %v2416_v1 = vld [vmem:[#allocation2] sm:$0xff]  ;;  %4529 = vmatprep.subr.bf16.mxu0 %v4567_v7 }
 0xdf4   : > { %v2420_v3 = vpack.c.bf16 %v2417_v2, %v2416_v1  ;;  %v4145_v1 = vcombine.high %v2622_v59, %v2626_v62  ;;  %v2613_v2 = vld [vmem:[%s4837_s28 + $0x80] sm:$0xff] }
 0xdf6   : > { %4533 = vmatprep.mubr.msk.bf16.mxu0 %vm684_vm1, %v2420_v3  ;;  %4530 = vmatpush3.bf16.msra.mxu0 %v4567_v7  ;;  %v2617_v3 = vld [vmem:[%s4837_s28 + $0xa0] sm:$0xff]  ;;  %v2618_v7 = vld [vmem:[%s4837_s28 + $0xa8] sm:$0xff] }
 0xdf7   : > { %4531 = vmatprep.subr.bf16.mxu0 %v4568_v8  ;;  %v4135_v5 = vcombine.high %v2613_v2, %v2617_v3 }
 0xdf9   : > { %2847 = vmatprep.subr.bf16.mxu1 %v4135_v5 }
 0xdfa   : > { %4532 = vmatpush3.bf16.msra.mxu0 %v4568_v8  ;;  %v4134_v8 = vcombine.low %v2613_v2, %v2617_v3  ;;  %v2620_v2 = vld [vmem:[%s4837_s28 + $0xb8] sm:$0xff] }
 0xdfb   : > { %2898 = vmatprep.subr.bf16.mxu0 %v4145_v1  ;;  %v2616_v1 = vld [vmem:[%s4837_s28 + $0x98] sm:$0xff] }
 0xdfc   : > { %2848 = vmatpush1.bf16.msra.mxu1 %v4134_v8 }
 0xead   : > { %v4524_v9 = vpop.f32.mrf.mxu0 }
 0xeae   : > { %2410 = vrot.lane.b32.xlu1 %v4524_v9, %s4725_s18  ;;  %v4136_v9 = vcombine.low %v2614_v31, %v2618_v7 }
 0xeaf   : > { %v2397_v11 = vpop.f32.mrf.mxu0 }
 0xeb0   : > { %2408 = vrot.lane.b32.xlu0 %v2397_v11, %s4725_s18  ;;  %v4137_v11 = vcombine.high %v2614_v31, %v2618_v7 }
 0xf20   : > { %v2411_v19 = vpop.permute.xlu1 %2410 }
 0xf21   : > { %2415 = vst.msk [vmem:[#allocation2 + $0x18] sm:$0xff] %vm1579_vm5, %v2411_v19  ;;  %v2605_v19 = vld [vmem:[%s4837_s28 + $0x40] sm:$0xff] }
 0xf22   : > { %v2409_v29 = vpop.permute.xlu0 %2408 }
 0xf23   : > { %2414 = vst.msk [vmem:[#allocation2 + $0x10] sm:$0xff] %vm1579_vm5, %v2409_v29  ;;  %v2609_v29 = vld [vmem:[%s4837_s28 + $0x60] sm:$0xff] }
 0xf28   : > { %v2419_v4 = vld [vmem:[#allocation2 + $0x18] sm:$0xff] }
 0xf2a   : > { %v2418_v52 = vld [vmem:[#allocation2 + $0x10] sm:$0xff] }
 0xf2b   : > { %v2421_v21 = vpack.c.bf16 %v2419_v4, %v2418_v52  ;;  %v2606_v52 = vld [vmem:[%s4837_s28 + $0x48] sm:$0xff]  ;;  %v4127_v4 = vcombine.high %v2605_v19, %v2609_v29 }
 0xf2d   : > { %4534 = vmatmul.mubr.msk.bf16.vlgmr.msra.gmra.mxu0 %vm684_vm1, %v2421_v21  ;;  %v2610_v21 = vld [vmem:[%s4837_s28 + $0x68] sm:$0xff]  ;;  %2849 = vmatprep.subr.bf16.mxu1 %v4127_v4  ;;  %v2612_v4 = vld [vmem:[%s4837_s28 + $0x78] sm:$0xff] }
 0xf2e   : > { %2922 = vmatprep.mubr.bf16.mxu0 %v4723_v6  ;;  %2899 = vmatpush1.bf16.msra.mxu0 %v4144_v0  ;;  %v2619_v0 = vld [vmem:[%s4837_s28 + $0xb0] sm:$0xff] }
 0xf2f   : > { %2900 = vmatprep.subr.bf16.mxu0 %v4137_v11  ;;  %v4139_v8 = vcombine.high %v2615_v63, %v2619_v0 }
 0xf32   : > { %2901 = vmatpush1.bf16.msra.mxu0 %v4136_v9  ;;  %v4141_v9 = vcombine.high %v2616_v1, %v2620_v2 }
 0xfed   : > { %v4535_v23 = vpop.f32.mrf.mxu0 }
 0xfee   : > { %v2510_v28 = vadd.f32 %v4535_v23, %v4109_v24  ;;  %v4126_v23 = vcombine.low %v2605_v19, %v2609_v29  ;;  %v2607_v19 = vld [vmem:[%s4837_s28 + $0x50] sm:$0xff] }
 0xfef   : > { %v2501_v27 = vpop.f32.mrf.mxu0  ;;  %v2611_v29 = vld [vmem:[%s4837_s28 + $0x70] sm:$0xff] }
 0xff0   : > { %v2502_v30 = vadd.f32 %v4109_v24, %v2501_v27  ;;  %v2518_v39 = vadd.f32 %v2510_v28, %v4966_v49  ;;  %v4129_v27 = vcombine.high %v2606_v52, %v2610_v21  ;;  %v2597_v28 = vld [vmem:[%s4837_s28] sm:$0xff]  ;;  %2850 = vmatpush1.bf16.msra.mxu1 %v4126_v23 }
 0xff1   : > { %v4536_v33 = vpop.f32.mrf.mxu0 }
 0xff2   : > { %v2516_v34 = vadd.f32 %v4713_v53, %v2502_v30  ;;  %v2513_v36 = vadd.f32 %v4536_v33, %v4109_v24  ;;  %v2528_v42 = vsel %vm684_vm1, %v2518_v39, 0.0  ;;  %v2601_v30 = vld [vmem:[%s4837_s28 + $0x20] sm:$0xff]  ;;  %v2598_v33 = vld [vmem:[%s4837_s28 + $0x8] sm:$0xff]  ;;  %2902 = vmatprep.subr.bf16.mxu0 %v4129_v27 }
 0xff3   : > { %v2504_v35 = vpop.f32.mrf.mxu0  ;;  %v4118_v53 = vcombine.low %v2597_v28, %v2601_v30 }
 0xff4   : > { %v2505_v37 = vadd.f32 %v4109_v24, %v2504_v35  ;;  %v2522_v38 = vsel %vm684_vm1, %v2516_v34, 0.0  ;;  %v2519_v43 = vadd.f32 %v2513_v36, %v4971_v50  ;;  %v4128_v24 = vcombine.low %v2606_v52, %v2610_v21  ;;  %v2602_v35 = vld [vmem:[%s4837_s28 + $0x28] sm:$0xff]  ;;  %v2608_v52 = vld [vmem:[%s4837_s28 + $0x58] sm:$0xff] }
 0xff5   : > { %2523 = vadd.xlane.f32.xlu0 %v2522_v38  ;;  %v4120_v36 = vcombine.low %v2598_v33, %v2602_v35  ;;  %v2623_v38 = vld [vmem:[%s4837_s28 + $0xd0] sm:$0xff]  ;;  %v4140_v21 = vcombine.low %v2616_v1, %v2620_v2  ;;  %v4133_v27 = vcombine.high %v2608_v52, %v2612_v4  ;;  %v4598_v1 = vld [vmem:[%s4849_s22 + $0xc0] sm:$0xff]  }
 0xff6   : > { %v2517_v40 = vadd.f32 %v4714_v32, %v2505_v37  ;;  %v2531_v12 = vsel %vm684_vm1, %v2519_v43, 0.0  ;;  %2903 = vmatpush1.bf16.msra.mxu0 %v4128_v24  ;;  %v4121_v37 = vcombine.high %v2598_v33, %v2602_v35  ;;  %v2624_v32 = vld [vmem:[%s4837_s28 + $0xd8] sm:$0xff]  ;;  %v4131_v24 = vcombine.high %v2607_v19, %v2611_v29  ;;  %v4599_v2 = vld [vmem:[%s4849_s22] sm:$0xff]  }
 0xff7   : > { %v2600_v33 = vld [vmem:[%s4837_s28 + $0x18] sm:$0xff]  ;;  %v4130_v35 = vcombine.low %v2607_v19, %v2611_v29 }
 0xff8   : > { %v2525_v41 = vsel %vm684_vm1, %v2517_v40, 0.0  ;;  %2904 = vmatprep.subr.bf16.mxu0 %v4121_v37 }
 0xff9   : > { %2526 = vadd.xlane.f32.xlu1 %v2525_v41  ;;  %2529 = vadd.xlane.f32.xlu0 %v2528_v42  ;;  %v2628_v41 = vld [vmem:[%s4837_s28 + $0xf8] sm:$0xff] }
 0xffa   : > { %2905 = vmatpush1.bf16.msra.mxu0 %v4120_v36  ;;  %v4132_v36 = vcombine.low %v2608_v52, %v2612_v4 }
 0xffd   : > { %2532 = vadd.xlane.f32.xlu0 %v2531_v12  ;;  %v4149_v12 = vcombine.high %v2624_v32, %v2628_v41 }
 0xfff   : > { %3004 = vmatprep.subr.bf16.mxu0 %v4149_v12  ;;  %v4572_v12 = vld [vmem:[%s4849_s22 + $0xb8] sm:$0xff]  }
0x107e   : > { %v2524_v44 = vpop.xlane.xlu0 %2523 }
0x107f   : > { %v2535_v45 = vmul.f32 0.015625, %v2524_v44 }
0x1081   : > { %v5240_v49 = vsub.f32 %v2516_v34, %v2535_v45  ;;  %v4119_v34 = vcombine.high %v2597_v28, %v2601_v30  ;;  %v2599_v28 = vld [vmem:[%s4837_s28 + $0x10] sm:$0xff] }
0x1082   : > { %v2527_v10 = vpop.xlane.xlu1 %2526  ;;  %v2530_v46 = vpop.xlane.xlu0 %2529  ;;  %v2603_v30 = vld [vmem:[%s4837_s28 + $0x30] sm:$0xff] }
0x1083   : > { %v2536_v14 = vmul.f32 0.015625, %v2527_v10  ;;  %v2537_v15 = vmul.f32 0.015625, %v2530_v46  ;;  %v2543_v47 = vmul.f32 %v5240_v49, %v5240_v49  ;;  %2851 = vmatprep.subr.bf16.mxu1 %v4119_v34 }
0x1084   : > { %2852 = vmatpush1.bf16.msra.mxu1 %v4118_v53  ;;  %v2604_v53 = vld [vmem:[%s4837_s28 + $0x38] sm:$0xff] }
0x1085   : > { %v5244_v48 = vsub.f32 %v2517_v40, %v2536_v14  ;;  %v5246_v50 = vsub.f32 %v2518_v39, %v2537_v15  ;;  %v2547_v51 = vsel %vm684_vm1, %v2543_v47, 0.0  ;;  %v2627_v39 = vld [vmem:[%s4837_s28 + $0xf0] sm:$0xff]  ;;  %s5526_s28 = sld [smem:[#allocation4_spill]] }
0x1086   : > { %2548 = vadd.xlane.f32.xlu1 %v2547_v51  ;;  %v2533_v54 = vpop.xlane.xlu0 %2532  ;;  %v4147_v40 = vcombine.high %v2623_v38, %v2627_v39  ;;  %v4146_v42 = vcombine.low %v2623_v38, %v2627_v39  ;;  %v4123_v38 = vcombine.high %v2599_v28, %v2603_v30  ;;  %v4125_v39 = vcombine.high %v2600_v33, %v2604_v53 }
0x1087   : > { %v2538_v55 = vmul.f32 0.015625, %v2533_v54  ;;  %v2544_v56 = vmul.f32 %v5244_v48, %v5244_v48  ;;  %v2545_v22 = vmul.f32 %v5246_v50, %v5246_v50 }
0x1088   : > { %2951 = vmatprep.subr.bf16.mxu1 %v4147_v40  ;;  %v4124_v40 = vcombine.low %v2600_v33, %v2604_v53 }
0x1089   : > { %v5253_v57 = vsub.f32 %v2519_v43, %v2538_v55  ;;  %v2550_v58 = vsel %vm684_vm1, %v2544_v56, 0.0  ;;  %v2553_v20 = vsel %vm684_vm1, %v2545_v22, 0.0  ;;  %v4148_v43 = vcombine.low %v2624_v32, %v2628_v41  ;;  %v4569_v41 = vld [vmem:[%s4849_s22 + $0x78] sm:$0xff]  }
0x108a   : > { %2551 = vadd.xlane.f32.xlu0 %v2550_v58  ;;  %2554 = vadd.xlane.f32.xlu1 %v2553_v20  ;;  %v4122_v32 = vcombine.low %v2599_v28, %v2603_v30 }
0x108b   : > { %v2546_v60 = vmul.f32 %v5253_v57, %v5253_v57 }
0x108d   : > { %v2556_v61 = vsel %vm684_vm1, %v2546_v60, 0.0  ;;  %v4116_v60 = vld [vmem:[%s594_s13] ss:$0 sm:$0xff] }
0x108e   : > { %2557 = vadd.xlane.f32.xlu0 %v2556_v61 }
0x110f   : > { %v2549_v44 = vpop.xlane.xlu1 %2548 }
0x1110   : > { %v2559_v45 = vmul.f32 0.015625, %v2549_v44  ;;  %v4573_v44 = vld [vmem:[%s4849_s22 + $0x70] sm:$0xff]  }
0x1112   : > { %v2563_v10 = vadd.f32 1e-05, %v2559_v45  ;;  %v4574_v45 = vld [vmem:[%s4849_s22 + $0xf0] sm:$0xff]  }
0x1113   : > { %v2555_v46 = vpop.xlane.xlu1 %2554  ;;  %v2552_v14 = vpop.xlane.xlu0 %2551 }
0x1114   : > { %4697 = vrsqrt.f32 %v2563_v10  ;;  %v2561_v15 = vmul.f32 0.015625, %v2555_v46  ;;  %v2560_v47 = vmul.f32 0.015625, %v2552_v14  ;;  %v4575_v10 = vld [vmem:[%s4849_s22 + $0x30] sm:$0xff]   ;;  %v4577_v14 = vld [vmem:[%s4849_s22 + $0x68] sm:$0xff]  }
0x1115   : > { %v4576_v46 = vld [vmem:[%s4849_s22 + $0xb0] sm:$0xff]  }
0x1116   : > { %v2564_v51 = vadd.f32 1e-05, %v2560_v47  ;;  %v2565_v54 = vadd.f32 1e-05, %v2561_v15  ;;  %v4578_v15 = vld [vmem:[%s4849_s22 + $0xe8] sm:$0xff]  }
0x1117   : > { %v2558_v55 = vpop.xlane.xlu0 %2557  ;;  %v4579_v47 = vld [vmem:[%s4849_s22 + $0x28] sm:$0xff]  }
0x1118   : > { %v2562_v56 = vmul.f32 0.015625, %v2558_v55  ;;  %4699 = vrsqrt.f32 %v2564_v51  ;;  %v4580_v51 = vld [vmem:[%s4849_s22 + $0xa8] sm:$0xff]   ;;  %v4583_v55 = vld [vmem:[%s4849_s22 + $0x20] sm:$0xff]  }
0x1119   : > { %4701 = vrsqrt.f32 %v2565_v54  ;;  %v4582_v54 = vld [vmem:[%s4849_s22 + $0xe0] sm:$0xff]  }
0x111a   : > { %v2566_v22 = vadd.f32 1e-05, %v2562_v56  ;;  %v4584_v56 = vld [vmem:[%s4849_s22 + $0xa0] sm:$0xff]  }
0x111c   : > { %4703 = vrsqrt.f32 %v2566_v22  ;;  %v4585_v22 = vld [vmem:[%s4849_s22 + $0x58] sm:$0xff]  }
0x1121   : > { %v4698_v58 = vpop.eup %4697 }
0x1122   : > { %v2571_v20 = vmul.f32 %v4698_v58, %v5240_v49  ;;  %v4586_v58 = vld [vmem:[%s4849_s22 + $0xd8] sm:$0xff]  }
0x1124   : > { %v2581_v16 = vmul.f32 %v4116_v60, %v2571_v20  ;;  %v4587_v20 = vld [vmem:[%s4849_s22 + $0x18] sm:$0xff]  }
0x1125   : > { %v4700_v61 = vpop.eup %4699 }
0x1126   : > { %v2572_v13 = vmul.f32 %v4700_v61, %v5244_v48  ;;  %v4702_v59 = vpop.eup %4701  ;;  %v5297_v48 = vadd.f32 %v4117_v25, %v2581_v16  ;;  %v4589_v61 = vld [vmem:[%s4849_s22 + $0x50] sm:$0xff]  }
0x1127   : > { %v2573_v5 = vmul.f32 %v4702_v59, %v5246_v50  ;;  %v4138_v50 = vcombine.low %v2615_v63, %v2619_v0  ;;  %v4591_v16 = vld [vmem:[%s4849_s22 + $0x10] sm:$0xff]   ;;  %v4596_v63 = vld [vmem:[%s4849_s22 + $0x88] sm:$0xff]   ;;  %v4597_v0 = vld [vmem:[%s4849_s22 + $0x40] sm:$0xff]  }
0x1128   : > { %v2582_v49 = vmul.f32 %v4116_v60, %v2572_v13  ;;  %v4590_v13 = vld [vmem:[%s4849_s22 + $0xd0] sm:$0xff]  }
0x1129   : > { %v4704_v62 = vpop.eup %4703  ;;  %v4592_v59 = vld [vmem:[%s4849_s22 + $0x90] sm:$0xff]  }
0x112a   : > { %v2574_v3 = vmul.f32 %v4704_v62, %v5253_v57  ;;  %v5299_v31 = vadd.f32 %v4117_v25, %v2582_v49  ;;  %v2583_v57 = vmul.f32 %v4116_v60, %v2573_v5  ;;  %v4594_v62 = vld [vmem:[%s4849_s22 + $0xc8] sm:$0xff]   ;;  %v4601_v5 = vld [vmem:[%s4849_s22 + $0x178] sm:$0xff]  }
0x112b   : > { %v4595_v49 = vld [vmem:[%s4849_s22 + $0x8] sm:$0xff]  }
0x112c   : > { %v2595_v7 = vpack.c.bf16 %v5299_v31, %v5297_v48  ;;  %v2584_v11 = vmul.f32 %v4116_v60, %v2574_v3  ;;  %v5318_v34 = vadd.f32 %v4117_v25, %v2583_v57  ;;  %v4588_v60 = vld [vmem:[%s4849_s22 + $0x98] sm:$0xff]   ;;  %v4600_v3 = vld [vmem:[%s4849_s22 + $0x80] sm:$0xff]  }
0x112e   : > { %4150 = vmatmul.mubr.msk.bf16.vlgmr.msra.gmra.mxu1 %vm684_vm1, %v2595_v7  ;;  %4152 = vmatmul.mubr.msk.bf16.vlgmr.msra.gmra.mxu0 %vm684_vm1, %v2595_v7  ;;  %v5310_v23 = vadd.f32 %v4117_v25, %v2584_v11  ;;  %v4593_v25 = vld [vmem:[%s4849_s22 + $0x48] sm:$0xff]   ;;  %v5369_v11 = vld [vmem:[%s5526_s28] sm:$0xff] }
0x112f   : > { %2952 = vmatpush1.bf16.msra.mxu1 %v4146_v42  ;;  %3005 = vmatpush1.bf16.msra.mxu0 %v4148_v43  ;;  %v4570_v42 = vld [vmem:[%s4849_s22 + $0xf8] sm:$0xff]   ;;  %v2638_v52 = vrot.slane %v5369_v11, %v640_v26  ;;  %v2634_v57 = vrot.slane %v5369_v11, %v636_v18 }
0x1130   : > { %2953 = vmatprep.subr.bf16.mxu1 %v4139_v8  ;;  %3006 = vmatprep.subr.bf16.mxu0 %v4141_v9  ;;  %v2596_v37 = vpack.c.bf16 %v5310_v23, %v5318_v34  ;;  %v4571_v43 = vld [vmem:[%s4849_s22 + $0x38] sm:$0xff]   ;;  %v2645_v8 = vsub.s32 3, %v4912_v17  ;;  %v2641_v9 = vsub.s32 2, %v4912_v17 }
0x1131   : > { %2879 = vmatprep.mubr.bf16.mxu1 %v4723_v6  ;;  %2932 = vmatprep.mubr.bf16.mxu0 %v4723_v6 }
0x1132   : > { %v2646_v4 = vrot.slane %v5369_v11, %v2645_v8 }
0x1133   : > { %2954 = vmatpush1.bf16.msra.mxu1 %v4138_v50  ;;  %3007 = vmatpush1.bf16.msra.mxu0 %v4140_v21  ;;  %v2642_v50 = vrot.slane %v5369_v11, %v2641_v9 }
0x1134   : > { %2955 = vmatprep.subr.bf16.mxu1 %v4131_v24  ;;  %3008 = vmatprep.subr.bf16.mxu0 %v4133_v27 }
0x1136   : > { %4151 = vmatmul.mubr.msk.bf16.gmra.mxu1 %vm684_vm1, %v2596_v37  ;;  %4153 = vmatmul.mubr.msk.bf16.gmra.mxu0 %vm684_vm1, %v2596_v37 }
0x1137   : > { %2956 = vmatpush1.bf16.msra.mxu1 %v4130_v35  ;;  %3009 = vmatpush1.bf16.msra.mxu0 %v4132_v36 }
0x1138   : > { %2957 = vmatprep.subr.bf16.mxu1 %v4123_v38  ;;  %3010 = vmatprep.subr.bf16.mxu0 %v4125_v39 }
0x1139   : > { %2975 = vmatprep.mubr.bf16.mxu1 %v4723_v6  ;;  %3028 = vmatprep.mubr.bf16.mxu0 %v4723_v6 }
0x113b   : > { %2958 = vmatpush1.bf16.msra.mxu1 %v4122_v32  ;;  %3011 = vmatpush1.bf16.msra.mxu0 %v4124_v40 }
0x113c   : > { %4301 = vmatprep.subr.bf16.mxu1 %v4569_v41  ;;  %4329 = vmatprep.subr.bf16.mxu0 %v4570_v42 }
0x113e   : > { %4154 = vmatmul.mubr.msk.bf16.vlgmr.msra.gmra.mxu1 %vm684_vm1, %v2595_v7  ;;  %4156 = vmatmul.mubr.msk.bf16.vlgmr.msra.gmra.mxu0 %vm684_vm1, %v2595_v7  ;;  %v4602_v7 = vld [vmem:[%s4849_s22 + $0x1f8] sm:$0xff]  }
0x113f   : > { %2985 = vmatprep.mubr.bf16.mxu1 %v4723_v6  ;;  %3038 = vmatprep.mubr.bf16.mxu0 %v4723_v6  ;;  %v4581_v6 = vld [vmem:[%s4849_s22 + $0x60] sm:$0xff]  }
0x1140   : > { %4302 = vmatpush3.bf16.msra.mxu1 %v4571_v43  ;;  %4330 = vmatpush3.bf16.msra.mxu0 %v4572_v12 }
0x1141   : > { %4303 = vmatprep.subr.bf16.mxu1 %v4573_v44  ;;  %4331 = vmatprep.subr.bf16.mxu0 %v4574_v45 }
0x1144   : > { %4304 = vmatpush3.bf16.msra.mxu1 %v4575_v10  ;;  %4332 = vmatpush3.bf16.msra.mxu0 %v4576_v46 }
0x1145   : > { %4305 = vmatprep.subr.bf16.mxu1 %v4577_v14  ;;  %4333 = vmatprep.subr.bf16.mxu0 %v4578_v15 }
0x1146   : > { %4155 = vmatmul.mubr.msk.bf16.gmra.mxu1 %vm684_vm1, %v2596_v37  ;;  %4157 = vmatmul.mubr.msk.bf16.gmra.mxu0 %vm684_vm1, %v2596_v37 }
0x1148   : > { %4306 = vmatpush3.bf16.msra.mxu1 %v4579_v47  ;;  %4334 = vmatpush3.bf16.msra.mxu0 %v4580_v51 }
0x1149   : > { %4307 = vmatprep.subr.bf16.mxu1 %v4581_v6  ;;  %4335 = vmatprep.subr.bf16.mxu0 %v4582_v54  ;;  %v4603_v6 = vld [vmem:[%s4849_s22 + $0x138] sm:$0xff]  }
0x114a   : > { %v4604_v54 = vld [vmem:[%s4849_s22 + $0x1b8] sm:$0xff]  }
0x114c   : > { %4308 = vmatpush3.bf16.msra.mxu1 %v4583_v55  ;;  %4336 = vmatpush3.bf16.msra.mxu0 %v4584_v56  ;;  %v2653_v55 = vsub.s32 5, %v4912_v17 }
0x114d   : > { %4309 = vmatprep.subr.bf16.mxu1 %v4585_v22  ;;  %4337 = vmatprep.subr.bf16.mxu0 %v4586_v58 }
0x1150   : > { %4310 = vmatpush3.bf16.msra.mxu1 %v4587_v20  ;;  %4338 = vmatpush3.bf16.msra.mxu0 %v4588_v60 }
0x1151   : > { %4311 = vmatprep.subr.bf16.mxu1 %v4589_v61  ;;  %4339 = vmatprep.subr.bf16.mxu0 %v4590_v13  ;;  %v4605_v61 = vld [vmem:[%s4849_s22 + $0x170] sm:$0xff]  }
0x1152   : > { %v4606_v13 = vld [vmem:[%s4849_s22 + $0x1f0] sm:$0xff]  }
0x1154   : > { %4312 = vmatpush3.bf16.msra.mxu1 %v4591_v16  ;;  %4340 = vmatpush3.bf16.msra.mxu0 %v4592_v59  ;;  %v2661_v16 = vsub.s32 7, %v4912_v17 }
0x1155   : > { %4313 = vmatprep.subr.bf16.mxu1 %v4593_v25  ;;  %4341 = vmatprep.subr.bf16.mxu0 %v4594_v62 }
0x1158   : > { %4314 = vmatpush3.bf16.msra.mxu1 %v4595_v49  ;;  %4342 = vmatpush3.bf16.msra.mxu0 %v4596_v63 }
0x1159   : > { %4315 = vmatprep.subr.bf16.mxu1 %v4597_v0  ;;  %4343 = vmatprep.subr.bf16.mxu0 %v4598_v1 }
0x115c   : > { %4316 = vmatpush3.bf16.msra.mxu1 %v4599_v2  ;;  %4344 = vmatpush3.bf16.msra.mxu0 %v4600_v3 }
0x115d   : > { %4357 = vmatprep.subr.bf16.mxu1 %v4601_v5  ;;  %4385 = vmatprep.subr.bf16.mxu0 %v4602_v7  ;;  %v4607_v5 = vld [vmem:[%s4849_s22 + $0x130] sm:$0xff]  }
0x11ee   : > { %v2871_v19 = vpop.f32.mrf.mxu1  ;;  %v2924_v29 = vpop.f32.mrf.mxu0 }
0x11ef   : > { %v2872_v36 = vadd.f32 %v2871_v19, %v2634_v57  ;;  %v2925_v37 = vadd.f32 %v2924_v29, %v2642_v50  ;;  %v5391_v29 = vrot.slane %v5369_v11, %v2653_v55 }
0x11f0   : > { %v2873_v21 = vpop.f32.mrf.mxu1  ;;  %v2926_v24 = vpop.f32.mrf.mxu0 }
0x11f1   : > { %v2874_v30 = vadd.f32 %v2873_v21, %v2638_v52  ;;  %v2927_v33 = vadd.f32 %v2926_v24, %v2646_v4  ;;  %v3049_v10 = vmax.f32 %v2872_v36, 0.0  ;;  %v3051_v46 = vmax.f32 %v2925_v37, 0.0 }
0x11f2   : > { %v2875_v27 = vpop.f32.mrf.mxu1  ;;  %v2928_v28 = vpop.f32.mrf.mxu0 }
0x11f3   : > { %v2876_v53 = vadd.f32 %v2875_v27, %v2634_v57  ;;  %v2929_v35 = vadd.f32 %v2928_v28, %v2642_v50  ;;  %v3050_v43 = vmax.f32 %v2874_v30, 0.0  ;;  %v3052_v12 = vmax.f32 %v2927_v33, 0.0 }
0x11f4   : > { %v2877_v38 = vpop.f32.mrf.mxu1  ;;  %v2930_v26 = vpop.f32.mrf.mxu0 }
0x11f5   : > { %v2878_v39 = vadd.f32 %v2877_v38, %v2638_v52  ;;  %v2931_v32 = vadd.f32 %v2930_v26, %v2646_v4  ;;  %v3057_v40 = vmax.f32 %v2876_v53, 0.0  ;;  %v3059_v18 = vmax.f32 %v2929_v35, 0.0  ;;  %v4610_v53 = vld [vmem:[%s4849_s22 + $0x1e8] sm:$0xff]  }
0x11f6   : > { %v2881_v41 = vpop.f32.mrf.mxu1  ;;  %v2934_v42 = vpop.f32.mrf.mxu0  ;;  %v4611_v38 = vld [vmem:[%s4849_s22 + $0x128] sm:$0xff]  }
0x11f7   : > { %v3058_v44 = vmax.f32 %v2878_v39, 0.0  ;;  %v3060_v45 = vmax.f32 %v2931_v32, 0.0  ;;  %v3081_v56 = vpack.c.bf16 %v3057_v40, %v3049_v10  ;;  %v3083_v22 = vpack.c.bf16 %v3059_v18, %v3051_v46  ;;  %v4612_v40 = vld [vmem:[%s4849_s22 + $0x1a8] sm:$0xff]   ;;  %v4613_v18 = vld [vmem:[%s4849_s22 + $0x160] sm:$0xff]  }
0x11f8   : > { %v2883_v14 = vpop.f32.mrf.mxu1  ;;  %v2936_v15 = vpop.f32.mrf.mxu0  ;;  %v2882_v49 = vadd.f32 %v2881_v41, %v2634_v57  ;;  %v2935_v1 = vadd.f32 %v2934_v42, %v2642_v50 }
0x11f9   : > { %v3082_v47 = vpack.c.bf16 %v3058_v44, %v3050_v43  ;;  %v3084_v51 = vpack.c.bf16 %v3060_v45, %v3052_v12  ;;  %v2884_v58 = vadd.f32 %v2883_v14, %v2638_v52  ;;  %v2937_v59 = vadd.f32 %v2936_v15, %v2646_v4  ;;  %v4614_v12 = vld [vmem:[%s4849_s22 + $0x1e0] sm:$0xff]  }
0x11fa   : > { %v2885_v20 = vpop.f32.mrf.mxu1  ;;  %v2938_v60 = vpop.f32.mrf.mxu0  ;;  %v3065_v28 = vmax.f32 %v2882_v49, 0.0  ;;  %v3067_v35 = vmax.f32 %v2935_v1, 0.0  ;;  %v4615_v14 = vld [vmem:[%s4849_s22 + $0x120] sm:$0xff]   ;;  %v2649_v49 = vsub.s32 4, %v4912_v17 }
0x11fb   : > { %v2886_v25 = vadd.f32 %v2885_v20, %v2634_v57  ;;  %v2939_v62 = vadd.f32 %v2938_v60, %v2642_v50  ;;  %3648 = vmatprep.mubr.bf16.mxu1 %v3082_v47  ;;  %3697 = vmatprep.mubr.bf16.mxu0 %v3084_v51  ;;  %v3066_v7 = vmax.f32 %v2884_v58, 0.0  ;;  %v5394_v57 = vrot.slane %v5369_v11, %v2661_v16  ;;  %v4616_v51 = vld [vmem:[%s4849_s22 + $0x1a0] sm:$0xff]   ;;  %v4618_v58 = vld [vmem:[%s4849_s22 + $0x1d8] sm:$0xff]  }
0x11fc   : > { %v2887_v63 = vpop.f32.mrf.mxu1  ;;  %v2940_v0 = vpop.f32.mrf.mxu0  ;;  %3649 = vmatmul.mubr.bf16.vlgmr.msra.gmra.mxu1 %v3081_v56  ;;  %3698 = vmatmul.mubr.bf16.vlgmr.msra.gmra.mxu0 %v3083_v22  ;;  %v3068_v50 = vmax.f32 %v2937_v59, 0.0  ;;  %v4619_v16 = vld [vmem:[%s4849_s22 + $0x118] sm:$0xff]  }
0x11fd   : > { %v2888_v2 = vadd.f32 %v2887_v63, %v2638_v52  ;;  %v2941_v3 = vadd.f32 %v2940_v0, %v2646_v4  ;;  %4358 = vmatpush3.bf16.msra.mxu1 %v4603_v6  ;;  %4386 = vmatpush3.bf16.msra.mxu0 %v4604_v54  ;;  %v3073_v8 = vmax.f32 %v2886_v25, 0.0  ;;  %v4608_v52 = vld [vmem:[%s4849_s22 + $0x1b0] sm:$0xff]   ;;  %v4609_v4 = vld [vmem:[%s4849_s22 + $0x168] sm:$0xff]   ;;  %v3075_v21 = vmax.f32 %v2939_v62, 0.0  ;;  %v4617_v6 = vld [vmem:[%s4849_s22 + $0x158] sm:$0xff]  }
0x11fe   : > { %v5386_v9 = vpop.f32.mrf.mxu1  ;;  %v5388_v19 = vpop.f32.mrf.mxu0  ;;  %4359 = vmatprep.subr.bf16.mxu1 %v4605_v61  ;;  %4387 = vmatprep.subr.bf16.mxu0 %v4606_v13  ;;  %v4620_v59 = vld [vmem:[%s4849_s22 + $0x198] sm:$0xff]   ;;  %v4621_v25 = vld [vmem:[%s4849_s22 + $0x150] sm:$0xff]   ;;  %v2657_v0 = vsub.s32 6, %v4912_v17  ;;  %v4627_v17 = vld [vmem:[%s4849_s22 + $0x108] sm:$0xff]  }
0x11ff   : > { %v3074_v24 = vmax.f32 %v2888_v2, 0.0  ;;  %v3076_v27 = vmax.f32 %v2941_v3, 0.0  ;;  %v3089_v26 = vpack.c.bf16 %v3073_v8, %v3065_v28  ;;  %v3091_v41 = vpack.c.bf16 %v3075_v21, %v3067_v35  ;;  %v4622_v62 = vld [vmem:[%s4849_s22 + $0x1d0] sm:$0xff]  }
0x1200   : > { %v2979_v30 = vpop.f32.mrf.mxu1  ;;  %v3032_v33 = vpop.f32.mrf.mxu0  ;;  %v4623_v2 = vld [vmem:[%s4849_s22 + $0x110] sm:$0xff]   ;;  %v2650_v8 = vrot.slane %v5369_v11, %v2649_v49 }
0x1201   : > { %v3090_v36 = vpack.c.bf16 %v3074_v24, %v3066_v7  ;;  %v3092_v37 = vpack.c.bf16 %v3076_v27, %v3068_v50  ;;  %4360 = vmatpush3.bf16.msra.mxu1 %v4607_v5  ;;  %4388 = vmatpush3.bf16.msra.mxu0 %v4608_v52  ;;  %v2980_v42 = vadd.f32 %v2979_v30, %v5391_v29  ;;  %v4624_v3 = vld [vmem:[%s4849_s22 + $0x190] sm:$0xff]   ;;  %v4625_v5 = vld [vmem:[%s4849_s22 + $0x148] sm:$0xff]   ;;  %v4629_v27 = vld [vmem:[%s4849_s22 + $0x140] sm:$0xff]  }
0x1202   : > { %v5400_v39 = vpop.f32.mrf.mxu1  ;;  %v5402_v32 = vpop.f32.mrf.mxu0  ;;  %4361 = vmatprep.subr.bf16.mxu1 %v4609_v4  ;;  %v3033_v43 = vadd.f32 %v3032_v33, %v5394_v57  ;;  %4389 = vmatprep.subr.bf16.mxu0 %v4610_v53  ;;  %v4626_v7 = vld [vmem:[%s4849_s22 + $0x1c8] sm:$0xff]   ;;  %v2658_v4 = vrot.slane %v5369_v11, %v2657_v0  ;;  %v4630_v33 = vld [vmem:[%s4849_s22 + $0x1c0] sm:$0xff]   ;;  %v2978_v53 = vadd.f32 %v5386_v9, %v2650_v8 }
0x1203   : > { %3656 = vmatprep.mubr.bf16.mxu1 %v3090_v36  ;;  %3705 = vmatprep.mubr.bf16.mxu0 %v3092_v37  ;;  %v3054_v54 = vmax.f32 %v2980_v42, 0.0  ;;  %v2982_v21 = vadd.f32 %v5400_v39, %v2650_v8  ;;  %v4628_v24 = vld [vmem:[%s4849_s22 + $0x188] sm:$0xff]   ;;  %v4631_v37 = vld [vmem:[%s4849_s22 + $0x100] sm:$0xff]  }
0x1204   : > { %v2983_v44 = vpop.f32.mrf.mxu1  ;;  %v3036_v45 = vpop.f32.mrf.mxu0  ;;  %3657 = vmatmul.mubr.bf16.gmra.mxu1 %v3089_v26  ;;  %3706 = vmatmul.mubr.bf16.gmra.mxu0 %v3091_v41  ;;  %v3056_v55 = vmax.f32 %v3033_v43, 0.0  ;;  %v3035_v28 = vadd.f32 %v5402_v32, %v2658_v4  ;;  %v3031_v35 = vadd.f32 %v5388_v19, %v2658_v4  ;;  %v4632_v39 = vld [vmem:[%s4849_s22 + $0x180] sm:$0xff]  }
0x1205   : > { %v2984_v10 = vadd.f32 %v2983_v44, %v5391_v29  ;;  %v3037_v46 = vadd.f32 %v3036_v45, %v5394_v57  ;;  %4362 = vmatpush3.bf16.msra.mxu1 %v4611_v38  ;;  %4390 = vmatpush3.bf16.msra.mxu0 %v4612_v40  ;;  %v3061_v38 = vmax.f32 %v2982_v21, 0.0 }
0x1206   : > { %v5412_v15 = vpop.f32.mrf.mxu1  ;;  %v5414_v47 = vpop.f32.mrf.mxu0  ;;  %4363 = vmatprep.subr.bf16.mxu1 %v4613_v18  ;;  %4391 = vmatprep.subr.bf16.mxu0 %v4614_v12  ;;  %v3063_v32 = vmax.f32 %v3035_v28, 0.0  ;;  %v3053_v18 = vmax.f32 %v2978_v53, 0.0  ;;  %v3055_v9 = vmax.f32 %v3031_v35, 0.0 }
0x1207   : > { %v3062_v56 = vmax.f32 %v2984_v10, 0.0  ;;  %v3064_v22 = vmax.f32 %v3037_v46, 0.0  ;;  %v3041_v46 = vadd.f32 %v5414_v47, %v2658_v4 }
0x1208   : > { %v2989_v20 = vpop.f32.mrf.mxu1  ;;  %v3042_v13 = vpop.f32.mrf.mxu0  ;;  %v3085_v43 = vpack.c.bf16 %v3061_v38, %v3053_v18 }
0x1209   : > { %v3086_v60 = vpack.c.bf16 %v3062_v56, %v3054_v54  ;;  %v3088_v61 = vpack.c.bf16 %v3064_v22, %v3056_v55  ;;  %4364 = vmatpush3.bf16.msra.mxu1 %v4615_v14  ;;  %4392 = vmatpush3.bf16.msra.mxu0 %v4616_v51  ;;  %v2990_v36 = vadd.f32 %v2989_v20, %v5391_v29  ;;  %v3071_v54 = vmax.f32 %v3041_v46, 0.0 }
0x120a   : > { %4365 = vmatprep.subr.bf16.mxu1 %v4617_v6  ;;  %4393 = vmatprep.subr.bf16.mxu0 %v4618_v58  ;;  %v2991_v63 = vpop.f32.mrf.mxu1  ;;  %v3044_v1 = vpop.f32.mrf.mxu0  ;;  %v3043_v26 = vadd.f32 %v3042_v13, %v5394_v57 }
0x120b   : > { %3746 = vmatprep.mubr.bf16.mxu1 %v3086_v60  ;;  %3795 = vmatprep.mubr.bf16.mxu0 %v3088_v61  ;;  %v3070_v42 = vmax.f32 %v2990_v36, 0.0  ;;  %v2992_v12 = vadd.f32 %v2991_v63, %v2650_v8  ;;  %v3045_v44 = vadd.f32 %v3044_v1, %v2658_v4  ;;  %v4158_v1 = vld [vmem:[%s591_s24] ss:$0 sm:$0xff] }
0x120c   : > { %v2993_v52 = vpop.f32.mrf.mxu1  ;;  %v3046_v50 = vpop.f32.mrf.mxu0  ;;  %v3072_v19 = vmax.f32 %v3043_v26, 0.0 }
0x120d   : > { %4366 = vmatpush3.bf16.msra.mxu1 %v4619_v16  ;;  %4394 = vmatpush3.bf16.msra.mxu0 %v4620_v59  ;;  %v2994_v30 = vadd.f32 %v2993_v52, %v5391_v29  ;;  %v3047_v11 = vadd.f32 %v3046_v50, %v5394_v57  ;;  %v3087_v29 = vpack.c.bf16 %v3063_v32, %v3055_v9  ;;  %v3077_v14 = vmax.f32 %v2992_v12, 0.0 }
0x120e   : > { %4367 = vmatprep.subr.bf16.mxu1 %v4621_v25  ;;  %4395 = vmatprep.subr.bf16.mxu0 %v4622_v62  ;;  %v2988_v57 = vadd.f32 %v5412_v15, %v2650_v8  ;;  %v3079_v51 = vmax.f32 %v3045_v44, 0.0 }
0x120f   : > { %v3078_v40 = vmax.f32 %v2994_v30, 0.0  ;;  %v3080_v41 = vmax.f32 %v3047_v11, 0.0 }
0x1210   : > { %v3069_v6 = vmax.f32 %v2988_v57, 0.0  ;;  %v3095_v56 = vpack.c.bf16 %v3079_v51, %v3071_v54 }
0x1211   : > { %4368 = vmatpush3.bf16.msra.mxu1 %v4623_v2  ;;  %4396 = vmatpush3.bf16.msra.mxu0 %v4624_v3  ;;  %v3094_v45 = vpack.c.bf16 %v3078_v40, %v3070_v42  ;;  %v3096_v10 = vpack.c.bf16 %v3080_v41, %v3072_v19 }
0x1212   : > { %4369 = vmatprep.subr.bf16.mxu1 %v4625_v5  ;;  %4397 = vmatprep.subr.bf16.mxu0 %v4626_v7  ;;  %v3093_v55 = vpack.c.bf16 %v3077_v14, %v3069_v6 }
0x1215   : > { %4370 = vmatpush3.bf16.msra.mxu1 %v4627_v17  ;;  %4398 = vmatpush3.bf16.msra.mxu0 %v4628_v24 }
0x1216   : > { %4371 = vmatprep.subr.bf16.mxu1 %v4629_v27  ;;  %4399 = vmatprep.subr.bf16.mxu0 %v4630_v33 }
0x1219   : > { %4372 = vmatpush3.bf16.msra.mxu1 %v4631_v37  ;;  %4400 = vmatpush3.bf16.msra.mxu0 %v4632_v39 }
0x121c   : > { %3747 = vmatmul.mubr.bf16.vlgmr.msra.gmra.mxu1 %v3085_v43  ;;  %3796 = vmatmul.mubr.bf16.vlgmr.msra.gmra.mxu0 %v3087_v29 }
0x121d   : > { %3754 = vmatprep.mubr.bf16.mxu1 %v3094_v45  ;;  %3803 = vmatprep.mubr.bf16.mxu0 %v3096_v10 }
0x1224   : > { %3755 = vmatmul.mubr.bf16.gmra.mxu1 %v3093_v55  ;;  %3804 = vmatmul.mubr.bf16.gmra.mxu0 %v3095_v56 }
0x12bc   : > { %v4317_v22 = vpop.f32.mrf.mxu1  ;;  %v4345_v58 = vpop.f32.mrf.mxu0 }
0x12be   : > { %v4318_v20 = vpop.f32.mrf.mxu1  ;;  %v4346_v15 = vpop.f32.mrf.mxu0 }
0x12bf   : > { %v4319_v63 = vadd.f32 %v4318_v20, %v4317_v22  ;;  %v4347_v52 = vadd.f32 %v4346_v15, %v4345_v58 }
0x12c0   : > { %v4320_v60 = vpop.f32.mrf.mxu1  ;;  %v4348_v61 = vpop.f32.mrf.mxu0 }
0x12c1   : > { %v3651_v3 = vadd.f32 %v4319_v63, %v4158_v1 }
0x12c2   : > { %v4321_v13 = vpop.f32.mrf.mxu1  ;;  %v4349_v47 = vpop.f32.mrf.mxu0 }
0x12c3   : > { %v4322_v5 = vadd.f32 %v4321_v13, %v4320_v60  ;;  %v3700_v21 = vadd.f32 %v4347_v52, %v3651_v3  ;;  %v4350_v33 = vadd.f32 %v4349_v47, %v4348_v61 }
0x12c4   : > { %v4323_v16 = vpop.f32.mrf.mxu1  ;;  %v4351_v59 = vpop.f32.mrf.mxu0 }
0x12c5   : > { %v3654_v24 = vadd.f32 %v4322_v5, %v4158_v1 }
0x12c6   : > { %v4324_v25 = vpop.f32.mrf.mxu1  ;;  %v4352_v62 = vpop.f32.mrf.mxu0 }
0x12c7   : > { %v4325_v50 = vadd.f32 %v4324_v25, %v4323_v16  ;;  %v3703_v38 = vadd.f32 %v4350_v33, %v3654_v24  ;;  %v4353_v18 = vadd.f32 %v4352_v62, %v4351_v59 }
0x12c8   : > { %v4326_v49 = vpop.f32.mrf.mxu1  ;;  %v4354_v0 = vpop.f32.mrf.mxu0 }
0x12c9   : > { %v3659_v36 = vadd.f32 %v4325_v50, %v4158_v1 }
0x12ca   : > { %v4327_v2 = vpop.f32.mrf.mxu1  ;;  %v4355_v7 = vpop.f32.mrf.mxu0 }
0x12cb   : > { %v4328_v26 = vadd.f32 %v4327_v2, %v4326_v49  ;;  %v3708_v12 = vadd.f32 %v4353_v18, %v3659_v36  ;;  %v4356_v51 = vadd.f32 %v4355_v7, %v4354_v0 }
0x12cd   : > { %v3662_v44 = vadd.f32 %v4328_v26, %v4158_v1 }
0x12cf   : > { %v3711_v58 = vadd.f32 %v4356_v51, %v3662_v44 }
0x12dc   : > { %v4373_v8 = vpop.f32.mrf.mxu1  ;;  %v4401_v4 = vpop.f32.mrf.mxu0 }
0x12de   : > { %v4374_v17 = vpop.f32.mrf.mxu1  ;;  %v4402_v28 = vpop.f32.mrf.mxu0 }
0x12df   : > { %v4375_v27 = vadd.f32 %v4374_v17, %v4373_v8  ;;  %v4403_v11 = vadd.f32 %v4402_v28, %v4401_v4 }
0x12e0   : > { %v4376_v30 = vpop.f32.mrf.mxu1  ;;  %v4404_v35 = vpop.f32.mrf.mxu0 }
0x12e1   : > { %v3749_v53 = vadd.f32 %v4375_v27, %v3700_v21 }
0x12e2   : > { %v4377_v37 = vpop.f32.mrf.mxu1  ;;  %v4405_v40 = vpop.f32.mrf.mxu0 }
0x12e3   : > { %v3798_v39 = vadd.f32 %v4403_v11, %v3749_v53  ;;  %v4378_v32 = vadd.f32 %v4377_v37, %v4376_v30  ;;  %v4406_v42 = vadd.f32 %v4405_v40, %v4404_v35 }
0x12e4   : > { %v4379_v41 = vpop.f32.mrf.mxu1  ;;  %v4407_v43 = vpop.f32.mrf.mxu0 }
0x12e5   : > { %v3752_v9 = vadd.f32 %v4378_v32, %v3703_v38  ;;  %v3812_v19 = vadd.f32 %v3798_v39, %v5297_v48 }
0x12e6   : > { %v4380_v29 = vpop.f32.mrf.mxu1  ;;  %v4408_v10 = vpop.f32.mrf.mxu0 }
0x12e7   : > { %v3801_v45 = vadd.f32 %v4406_v42, %v3752_v9  ;;  %v4381_v57 = vadd.f32 %v4380_v29, %v4379_v41  ;;  %v3818_v46 = vsel %vm684_vm1, %v3812_v19, 0.0  ;;  %v4409_v54 = vadd.f32 %v4408_v10, %v4407_v43  ;;  %v4223_v41 = vld [vmem:[%s600_s6] ss:$0 sm:$0xff] }
0x12e8   : > { %v4382_v14 = vpop.f32.mrf.mxu1  ;;  %3819 = vadd.xlane.f32.xlu1 %v3818_v46  ;;  %v4410_v55 = vpop.f32.mrf.mxu0  ;;  %v4224_v42 = vld [vmem:[%s5527_s23] ss:$0 sm:$0xff] }
0x12e9   : > { %v3757_v6 = vadd.f32 %v4381_v57, %v3708_v12  ;;  %v3813_v56 = vadd.f32 %v3801_v45, %v5299_v31 }
0x12ea   : > { %v4383_v22 = vpop.f32.mrf.mxu1  ;;  %v4411_v15 = vpop.f32.mrf.mxu0 }
0x12eb   : > { %v3806_v20 = vadd.f32 %v4409_v54, %v3757_v6  ;;  %v4384_v48 = vadd.f32 %v4383_v22, %v4382_v14  ;;  %v3821_v60 = vsel %vm684_vm1, %v3813_v56, 0.0  ;;  %v4412_v13 = vadd.f32 %v4411_v15, %v4410_v55 }
0x12ec   : > { %3822 = vadd.xlane.f32.xlu0 %v3821_v60 }
0x12ed   : > { %v3760_v61 = vadd.f32 %v4384_v48, %v3711_v58  ;;  %v3814_v47 = vadd.f32 %v3806_v20, %v5318_v34 }
0x12ef   : > { %v3809_v16 = vadd.f32 %v4412_v13, %v3760_v61  ;;  %v3824_v59 = vsel %vm684_vm1, %v3814_v47, 0.0 }
0x12f0   : > { %3825 = vadd.xlane.f32.xlu1 %v3824_v59 }
0x12f1   : > { %v3815_v25 = vadd.f32 %v3809_v16, %v5310_v23 }
0x12f3   : > { %v3827_v31 = vsel %vm684_vm1, %v3815_v25, 0.0 }
0x12f4   : > { %3828 = vadd.xlane.f32.xlu0 %v3827_v31 }
0x1371   : > { %v3820_v62 = vpop.xlane.xlu1 %3819 }
0x1372   : > { %v3830_v49 = vmul.f32 0.015625, %v3820_v62 }
0x1374   : > { %v3834_v63 = vsub.f32 %v3812_v19, %v3830_v49 }
0x1375   : > { %v3823_v0 = vpop.xlane.xlu0 %3822 }
0x1376   : > { %v3831_v1 = vmul.f32 0.015625, %v3823_v0  ;;  %v3838_v2 = vmul.f32 %v3834_v63, %v3834_v63 }
0x1378   : > { %v3835_v3 = vsub.f32 %v3813_v56, %v3831_v1  ;;  %v3842_v5 = vsel %vm684_vm1, %v3838_v2, 0.0 }
0x1379   : > { %3843 = vadd.xlane.f32.xlu1 %v3842_v5  ;;  %v3826_v34 = vpop.xlane.xlu1 %3825 }
0x137a   : > { %v3832_v7 = vmul.f32 0.015625, %v3826_v34  ;;  %v3839_v8 = vmul.f32 %v3835_v3, %v3835_v3 }
0x137c   : > { %v3836_v52 = vsub.f32 %v3814_v47, %v3832_v7  ;;  %v3845_v4 = vsel %vm684_vm1, %v3839_v8, 0.0 }
0x137d   : > { %3846 = vadd.xlane.f32.xlu0 %v3845_v4  ;;  %v3829_v23 = vpop.xlane.xlu0 %3828 }
0x137e   : > { %v3833_v50 = vmul.f32 0.015625, %v3829_v23  ;;  %v3840_v17 = vmul.f32 %v3836_v52, %v3836_v52 }
0x1380   : > { %v3837_v21 = vsub.f32 %v3815_v25, %v3833_v50  ;;  %v3848_v24 = vsel %vm684_vm1, %v3840_v17, 0.0 }
0x1381   : > { %3849 = vadd.xlane.f32.xlu1 %v3848_v24 }
0x1382   : > { %v3841_v27 = vmul.f32 %v3837_v21, %v3837_v21 }
0x1384   : > { %v3851_v28 = vsel %vm684_vm1, %v3841_v27, 0.0 }
0x1385   : > { %3852 = vadd.xlane.f32.xlu0 %v3851_v28 }
0x1402   : > { %v3844_v30 = vpop.xlane.xlu1 %3843 }
0x1403   : > { %v3854_v33 = vmul.f32 0.015625, %v3844_v30 }
0x1405   : > { %v3858_v53 = vadd.f32 1e-05, %v3854_v33 }
0x1406   : > { %v3847_v11 = vpop.xlane.xlu0 %3846 }
0x1407   : > { %4705 = vrsqrt.f32 %v3858_v53  ;;  %v3855_v35 = vmul.f32 0.015625, %v3847_v11 }
0x1409   : > { %v3859_v36 = vadd.f32 1e-05, %v3855_v35 }
0x140a   : > { %v3850_v37 = vpop.xlane.xlu1 %3849 }
0x140b   : > { %4707 = vrsqrt.f32 %v3859_v36  ;;  %v3856_v38 = vmul.f32 0.015625, %v3850_v37 }
0x140d   : > { %v3860_v26 = vadd.f32 1e-05, %v3856_v38 }
0x140e   : > { %v3853_v39 = vpop.xlane.xlu0 %3852 }
0x140f   : > { %4709 = vrsqrt.f32 %v3860_v26  ;;  %v3857_v32 = vmul.f32 0.015625, %v3853_v39 }
0x1411   : > { %v3861_v40 = vadd.f32 1e-05, %v3857_v32 }
0x1413   : > { %4711 = vrsqrt.f32 %v3861_v40 }
0x1414   : > { %v4706_v18 = vpop.eup %4705 }
0x1415   : > { %v3866_v9 = vmul.f32 %v4706_v18, %v3834_v63 }
0x1417   : > { %v3876_v43 = vmul.f32 %v4223_v41, %v3866_v9 }
0x1418   : > { %v4708_v19 = vpop.eup %4707 }
0x1419   : > { %v3886_v12 = vadd.f32 %v4224_v42, %v3876_v43  ;;  %v3867_v29 = vmul.f32 %v4708_v19, %v3835_v3 }
0x141b   : > { %3890 = vst.msk [vmem:[%s5524_s30] sm:$0xff] %vm684_vm1, %v3886_v12  ;;  %v3877_v44 = vmul.f32 %v4223_v41, %v3867_v29 }
0x141c   : > { %v4710_v45 = vpop.eup %4709 }
0x141d   : > { %v3887_v57 = vadd.f32 %v4224_v42, %v3877_v44  ;;  %v3868_v10 = vmul.f32 %v4710_v45, %v3836_v52 }
0x141f   : > { %3891 = vst.msk [vmem:[%s5524_s30 + $0x8] sm:$0xff] %vm684_vm1, %v3887_v57  ;;  %v3878_v46 = vmul.f32 %v4223_v41, %v3868_v10 }
0x1420   : > { %v4712_v14 = vpop.eup %4711 }
0x1421   : > { %v3888_v51 = vadd.f32 %v4224_v42, %v3878_v46  ;;  %v3869_v6 = vmul.f32 %v4712_v14, %v3837_v21 }
0x1423   : > { %3892 = vst.msk [vmem:[%s5524_s30 + $0x10] sm:$0xff] %vm684_vm1, %v3888_v51  ;;  %v3879_v54 = vmul.f32 %v4223_v41, %v3869_v6 }
0x1425   : > { %v3889_v55 = vadd.f32 %v4224_v42, %v3879_v54 }
0x1427   : > { %3893 = vst.msk [vmem:[%s5524_s30 + $0x18] sm:$0xff] %vm684_vm1, %v3889_v55 }
0x1428 PF: > { %s5528_s18 = sld [smem:[#allocation3_spill]] }
0x142e   : > { %s23_s25 = sadd.s32 1, %s5528_s18  }
0x142f   : > { %p20_p5 = scmp.ge.s32.totalorder %s23_s25, 6  }
0x1431   :  { %22 = sbr.rel (!%p20_p5) target bundleno = 7 (0x7), region = 135 }

// kernel: patch_transformer_encoder.5
= control target key start
LH: loop header
LB: loop body
LE: loop exit
PB: predicated region body
PF: predicated region fallthrough
CT: control target
= control target key end

     0   :  { %s3402_s15 = smov 0   ;;  %s4133_s0 = inlined_call_operand.vmem [shape: f32[2,4,328], index: 0, kind: input, shape index: {}]   ;;  %s4134_s1 = inlined_call_operand.vmem [shape: bf16[9,64,4], index: 1, kind: input, shape index: {}]   ;;  %s4135_s2 = inlined_call_operand.vmem [shape: f32[64,1], index: 2, kind: input, shape index: {}]   ;;  %s4136_s3 = inlined_call_operand.vmem [shape: f32[2,16,64], index: 3, kind: input, shape index: {}]   ;;  %s4137_s4 = inlined_call_operand.vmem [shape: f32[2,16,288], index: 4, kind: output, shape index: {}]  }
   0x1 LB: > { %s2940_s16 = sadd.s32 4294967295, %s3364_s15   ;;  %p2944_p0 = scmp.ge.s32.totalorder %s3364_s15, 1  ;;  %s3364_s15 = sphi %s3402_s15, %s14_s15  }
   0x2   : > { %p172_p1 = scmp.lt.s32.totalorder %s3364_s15, 3 }
   0x4   : > { %p173_p2 = pnand %p2944_p0, %p172_p1 }
   0x6   : > { %176 = sbr.rel (%p173_p2) target bundleno = 753 (0x2f1), region = 36 }
   0xb   : > { %p203_p3 = scmp.lt.s32.totalorder %s2940_s16, 1  ;;  %v3366_v0 = vmov 0   ;;  %vm317_vm0 = vcmask 1041408   ;;  %s3367_s21 = smov 127   ;;  %v3322_v8 = vld [vmem:[%s4134_s1] sm:$0xff]   ;;  %vm304_vm1 = vcmask 31744  }
   0xc   : > { %359 = vmatprep.mubr.bf16.mxu0 %v3366_v0  ;;  %389 = vmatprep.mubr.bf16.mxu1 %v3366_v0  ;;  %v3323_v9 = vld [vmem:[%s4134_s1 + $0x18] sm:$0xff]   ;;  %s3368_s26 = smov 126   ;;  %v3324_v11 = vld [vmem:[%s4134_s1 + $0x8] sm:$0xff]   ;;  %s3369_s29 = smov 110   ;;  %v3325_v12 = vld [vmem:[%s4134_s1 + $0x10] sm:$0xff]   ;;  %vm575_vm2 = vcmask 1039360  }
   0xd   : > { %s4159_s16 = smov (!%p203_p3, %s2940_s16), 1  ;;  %3320 = vset.pattern.permute.xlu1 %v3366_v0  ;;  %3319 = vset.pattern.permute.xlu0 %v3366_v0  ;;  %v3326_v13 = vld [vmem:[%s4134_s1 + $0x20] sm:$0xff]   ;;  %s3370_s8 = smov 109   ;;  %v3327_v16 = vld [vmem:[%s4134_s1 + $0x28] sm:$0xff]   ;;  %v3328_v18 = vld [vmem:[%s4134_s1 + $0x30] sm:$0xff]   ;;  %vm844_vm3 = vcmask 1031168  }
   0xe   : > { %s3298_s17 = smul.u32 12, %s4159_s16  ;;  %s3371_s9 = smov 108   ;;  %v3329_v25 = vld [vmem:[%s4134_s1 + $0x38] sm:$0xff]   ;;  %vm1113_vm4 = vcmask 900096   ;;  %v3330_v34 = vld [vmem:[%s4134_s1 + $0x40] sm:$0xff]   ;;  %vm1382_vm5 = vcmask 891904  }
   0xf   : > { %s3372_s10 = smov 92   ;;  %s3373_s11 = smov 91   ;;  %v3331_v41 = vld [vmem:[%s4134_s1 + $0x48] sm:$0xff]   ;;  %v3332_v42 = vld [vmem:[%s4134_s1 + $0x50] sm:$0xff]   ;;  %v3333_v45 = vld [vmem:[%s4134_s1 + $0x58] sm:$0xff]   ;;  %vm223_vm6 = vcmask 261120  }
  0x10   : > { %s207_s20 = scalar_lea.vmem %s4133_s0, %s3298_s17  ;;  %s3374_s12 = smov 90   ;;  %v3334_v46 = vld [vmem:[%s4134_s1 + $0x60] sm:$0xff]   ;;  %v3335_v49 = vld [vmem:[%s4134_s1 + $0x68] sm:$0xff]   ;;  %v3336_v50 = vld [vmem:[%s4134_s1 + $0x70] sm:$0xff]   ;;  %v4138_v52 = vmov 0.0   ;;  %vm1651_vm7 = vcmask 883712  }
  0x11   : > { %v220_v1 = vld [vmem:[%s207_s20 + $0x8] sm:$0xf]  ;;  %v219_v2 = vld [vmem:[%s207_s20] sm:$0xff]  ;;  %230 = vst.msk [vmem:[#allocation2 + $0x40] sm:$0xff] %vm223_vm6, %v4138_v52  ;;  %224 = vst.msk [vmem:[#allocation2 + $0x10] sm:$0xff] %vm223_vm6, %v4138_v52  ;;  %vm1920_vm8 = vcmask 752640  }
  0x12   : > { %v251_v3 = vpack.c.bf16 %v220_v1, %v220_v1  ;;  %v247_v4 = vcombine.high %v219_v2, %v219_v2  ;;  %v249_v5 = vpack.c.bf16 %v219_v2, %v219_v2  ;;  %227 = vst.msk [vmem:[#allocation2 + $0x28] sm:$0xff] %vm223_vm6, %v4138_v52  ;;  %233 = vst.msk [vmem:[#allocation2 + $0x58] sm:$0xff] %vm223_vm6, %v4138_v52  ;;  %v3337_v56 = vld [vmem:[%s4134_s1 + $0x78] sm:$0xff]   ;;  %v3338_v59 = vld [vmem:[%s4134_s1 + $0x80] sm:$0xff]   ;;  %vm2189_vm9 = vcmask 744448   ;;  %s3299_s25 = smul.u32 48, %s4159_s16 }
  0x13   : > { %236 = vst.msk [vmem:[#allocation2 + $0x70] sm:$0xff] %vm223_vm6, %v4138_v52  ;;  %239 = vst.msk [vmem:[#allocation2 + $0x88] sm:$0xff] %vm223_vm6, %v4138_v52  ;;  %v3339_v1 = vld [vmem:[%s4134_s1 + $0x88] sm:$0xff]   ;;  %v3340_v2 = vld [vmem:[%s4134_s1 + $0x90] sm:$0xff]   ;;  %vm2458_vm10 = vcmask 736256   ;;  %vm3376_vm11 = vmmov 0  }
  0x14   : > { %573 = vrot.lane.b32.xlu0 %v251_v3, %s3367_s21  ;;  %v250_v6 = vpack.c.bf16 %v247_v4, %v247_v4  ;;  %v319_v7 = vsel %vm317_vm0, %v249_v5, 0  ;;  %v325_v10 = vsel %vm317_vm0, %v251_v3, 0  ;;  %242 = vst.msk [vmem:[#allocation2 + $0xa0] sm:$0xff] %vm223_vm6, %v4138_v52  ;;  %245 = vst.msk [vmem:[#allocation2 + $0xb8] sm:$0xff] %vm223_vm6, %v4138_v52  ;;  %vm2779_vm12 = vcmask 523264   ;;  %s217_s28 = scalar_lea.vmem %s4137_s4, %s3299_s25 }
  0x16   : > { %571 = vrot.lane.b32.xlu1 %v250_v6, %s3367_s21  ;;  %2953 = vmatprep.subr.msk.bf16.mxu0 %vm317_vm0, %v250_v6 }
  0x17   : > { %342 = vmatpush1.bf16.msra.mxu0 %v319_v7  ;;  %3287 = vmatprep.subr.msk.bf16.mxu1 %vm317_vm0, %v250_v6 }
  0x18   : > { %569 = vrot.lane.b32.xlu0 %v249_v5, %s3367_s21  ;;  %3288 = vmatpush1.bf16.msra.mxu1 %v319_v7  ;;  %v3341_v7 = vld [vmem:[%s4134_s1 + $0x98] sm:$0xff]   ;;  %s3134_s21 = sshll.u32 %s4159_s16, 4 }
  0x19   : > { %3289 = vmatprep.subr.msk.bf16.mxu1 %vm317_vm0, %v251_v3  ;;  %s212_s24 = scalar_lea.vmem %s4136_s3, %s3134_s21 }
  0x1a   : > { %838 = vrot.lane.b32.xlu1 %v249_v5, %s3368_s26  ;;  %2954 = vmatmul.mubr.msk.bf16.vlgmr.msra.gmra.mxu0 %vm304_vm1, %v3322_v8 }
  0x1b   : > { %2957 = vmatmul.mubr.msk.bf16.vlgmr.msra.gmra.mxu1 %vm304_vm1, %v3323_v9  ;;  %369 = vmatprep.mubr.bf16.mxu0 %v3366_v0 }
  0x1c   : > { %840 = vrot.lane.b32.xlu0 %v250_v6, %s3368_s26  ;;  %3186 = vmatpush3.bf16.msra.mxu1 %v325_v10 }
  0x1d   : > { %3187 = vmatprep.mubr.msk.bf16.mxu1 %vm304_vm1, %v3322_v8 }
  0x1e   : > { %842 = vrot.lane.b32.xlu1 %v251_v3, %s3368_s26 }
  0x20   : > { %1111 = vrot.lane.b32.xlu0 %v251_v3, %s3369_s29 }
  0x22   : > { %1107 = vrot.lane.b32.xlu1 %v249_v5, %s3369_s29  ;;  %2955 = vmatmul.mubr.msk.bf16.gmra.mxu0 %vm304_vm1, %v3324_v11 }
  0x23   : > { %3188 = vmatmul.mubr.msk.bf16.vlgmr.msra.gmra.mxu1 %vm304_vm1, %v3324_v11  ;;  %379 = vmatprep.mubr.bf16.mxu0 %v3366_v0  ;;  %v260_v11 = vld [vmem:[#allocation2 + $0x40] sm:$0xff] }
  0x24   : > { %1109 = vrot.lane.b32.xlu0 %v250_v6, %s3369_s29  ;;  %3191 = vmatprep.mubr.msk.bf16.mxu1 %vm304_vm1, %v3325_v12 }
  0x26   : > { %1376 = vrot.lane.b32.xlu1 %v249_v5, %s3370_s8 }
  0x28   : > { %1378 = vrot.lane.b32.xlu0 %v250_v6, %s3370_s8 }
  0x2a   : > { %1380 = vrot.lane.b32.xlu1 %v251_v3, %s3370_s8  ;;  %2956 = vmatmul.mubr.msk.bf16.gmra.mxu0 %vm304_vm1, %v3325_v12 }
  0x2b   : > { %3192 = vmatmul.mubr.msk.bf16.gmra.mxu1 %vm304_vm1, %v3323_v9  ;;  %3197 = vmatprep.mubr.msk.bf16.mxu0 %vm304_vm1, %v3326_v13  ;;  %v3342_v9 = vld [vmem:[%s4134_s1 + $0xa0] sm:$0xff]  }
  0x2c   : > { %1649 = vrot.lane.b32.xlu0 %v251_v3, %s3371_s9  ;;  %631 = vmatprep.mubr.bf16.mxu1 %v3366_v0 }
  0x2e   : > { %1645 = vrot.lane.b32.xlu1 %v249_v5, %s3371_s9 }
  0x30   : > { %1647 = vrot.lane.b32.xlu0 %v250_v6, %s3371_s9 }
  0x32   : > { %1914 = vrot.lane.b32.xlu1 %v249_v5, %s3372_s10 }
  0x34   : > { %1916 = vrot.lane.b32.xlu0 %v250_v6, %s3372_s10 }
  0x36   : > { %1918 = vrot.lane.b32.xlu1 %v251_v3, %s3372_s10 }
  0x38   : > { %2187 = vrot.lane.b32.xlu0 %v251_v3, %s3373_s11 }
  0x3a   : > { %2183 = vrot.lane.b32.xlu1 %v249_v5, %s3373_s11 }
  0x3c   : > { %2185 = vrot.lane.b32.xlu0 %v250_v6, %s3373_s11 }
  0x3e   : > { %2452 = vrot.lane.b32.xlu1 %v249_v5, %s3374_s12 }
  0x40   : > { %2454 = vrot.lane.b32.xlu0 %v250_v6, %s3374_s12 }
  0x42   : > { %2456 = vrot.lane.b32.xlu1 %v251_v3, %s3374_s12 }
  0x86   : > { %v574_v14 = vpop.permute.xlu0 %573 }
  0x87   : > { %3290 = vmatprep.subr.msk.bf16.mxu0 %vm317_vm0, %v574_v14  ;;  %v597_v15 = vsel %vm317_vm0, %v574_v14, 0 }
  0x88   : > { %v572_v17 = vpop.permute.xlu1 %571  ;;  %3196 = vmatpush3.bf16.msra.mxu0 %v597_v15 }
  0x89   : > { %v577_v19 = vsel %vm575_vm2, %v572_v17, %v574_v14 }
  0x8a   : > { %v570_v20 = vpop.permute.xlu0 %569  ;;  %2974 = vmatprep.subr.msk.bf16.mxu1 %vm317_vm0, %v577_v19 }
  0x8b   : > { %v576_v21 = vsel %vm575_vm2, %v570_v20, %v572_v17  ;;  %3198 = vmatmul.mubr.msk.bf16.vlgmr.msra.gmra.mxu0 %vm304_vm1, %v3327_v16  ;;  %v2699_v17 = vld [vmem:[%s4135_s2 + $0x38] sm:$0xff] }
  0x8c   : > { %v591_v22 = vsel %vm317_vm0, %v576_v21, 0  ;;  %v839_v23 = vpop.permute.xlu1 %838  ;;  %3201 = vmatprep.mubr.msk.bf16.mxu0 %vm304_vm1, %v3328_v18  ;;  %2737 = vperm.xlu1 %3320, %v2699_v17   ;;  %v3613_v21 = vld [vmem:[%s4134_s1 + $0xa8] sm:$0xff]  }
  0x8d   : > { %614 = vmatpush1.bf16.msra.mxu1 %v591_v22 }
  0x8e   : > { %v841_v24 = vpop.permute.xlu0 %840 }
  0x8f   : > { %v845_v26 = vsel %vm844_vm3, %v839_v23, %v841_v24  ;;  %v257_v23 = vld [vmem:[#allocation2 + $0x28] sm:$0xff] }
  0x90   : > { %2975 = vmatmul.mubr.msk.bf16.vlgmr.msra.gmra.mxu1 %vm304_vm1, %v3326_v13  ;;  %v843_v27 = vpop.permute.xlu1 %842  ;;  %v860_v28 = vsel %vm317_vm0, %v845_v26, 0  ;;  %v254_v13 = vld [vmem:[#allocation2 + $0x10] sm:$0xff] }
  0x91   : > { %641 = vmatprep.mubr.bf16.mxu1 %v3366_v0  ;;  %v846_v29 = vsel %vm844_vm3, %v841_v24, %v843_v27  ;;  %3291 = vmatprep.subr.msk.bf16.mxu1 %vm317_vm0, %v843_v27  ;;  %v866_v30 = vsel %vm317_vm0, %v843_v27, 0  ;;  %v3619_v24 = vld [vmem:[%s4134_s1 + $0xb0] sm:$0xff]  }
  0x92   : > { %2995 = vmatprep.subr.msk.bf16.mxu0 %vm317_vm0, %v846_v29  ;;  %3206 = vmatpush3.bf16.msra.mxu1 %v866_v30  ;;  %v1112_v31 = vpop.permute.xlu0 %1111  ;;  %v2698_v29 = vld [vmem:[%s4135_s2 + $0x30] sm:$0xff]  ;;  %v2696_v30 = vld [vmem:[%s4135_s2 + $0x20] sm:$0xff] }
  0x93   : > { %3202 = vmatmul.mubr.msk.bf16.gmra.mxu0 %vm304_vm1, %v3329_v25  ;;  %v1135_v37 = vsel %vm317_vm0, %v1112_v31, 0  ;;  %2732 = vperm.xlu0 %3319, %v2698_v29  }
  0x94   : > { %883 = vmatpush1.bf16.msra.mxu0 %v860_v28  ;;  %900 = vmatprep.mubr.bf16.mxu0 %v3366_v0  ;;  %v1108_v32 = vpop.permute.xlu1 %1107  ;;  %v272_v28 = vld [vmem:[#allocation2 + $0xa0] sm:$0xff] }
  0x95   : > { %3292 = vmatprep.subr.msk.bf16.mxu0 %vm317_vm0, %v1112_v31  ;;  %2722 = vperm.xlu1 %3320, %v2696_v30  }
  0x96   : > { %v1110_v33 = vpop.permute.xlu0 %1109 }
  0x97   : > { %v1115_v35 = vsel %vm1113_vm4, %v1110_v33, %v1112_v31  ;;  %v1114_v43 = vsel %vm1113_vm4, %v1108_v32, %v1110_v33  ;;  %v266_v33 = vld [vmem:[#allocation2 + $0x70] sm:$0xff] }
  0x98   : > { %2976 = vmatmul.mubr.msk.bf16.gmra.mxu1 %vm304_vm1, %v3327_v16  ;;  %3016 = vmatprep.subr.msk.bf16.mxu1 %vm317_vm0, %v1115_v35  ;;  %v1377_v36 = vpop.permute.xlu1 %1376  ;;  %v1129_v44 = vsel %vm317_vm0, %v1114_v43, 0  ;;  %v263_v16 = vld [vmem:[#allocation2 + $0x58] sm:$0xff] }
  0x99   : > { %651 = vmatprep.mubr.bf16.mxu1 %v3366_v0  ;;  %v3345_v43 = vld [vmem:[%s4134_s1 + $0xb8] sm:$0xff]  }
  0x9a   : > { %v1379_v38 = vpop.permute.xlu0 %1378 }
  0x9b   : > { %2996 = vmatmul.mubr.msk.bf16.vlgmr.msra.gmra.mxu0 %vm304_vm1, %v3330_v34  ;;  %v1383_v47 = vsel %vm1382_vm5, %v1377_v36, %v1379_v38 }
  0x9c   : > { %910 = vmatprep.mubr.bf16.mxu0 %v3366_v0  ;;  %3216 = vmatpush3.bf16.msra.mxu0 %v1135_v37  ;;  %v1381_v39 = vpop.permute.xlu1 %1380  ;;  %v1398_v51 = vsel %vm317_vm0, %v1383_v47, 0 }
  0x9d   : > { %v1384_v40 = vsel %vm1382_vm5, %v1379_v38, %v1381_v39  ;;  %v1404_v55 = vsel %vm317_vm0, %v1381_v39, 0  ;;  %v275_v38 = vld [vmem:[#allocation2 + $0xb8] sm:$0xff] }
  0x9e   : > { %3037 = vmatprep.subr.msk.bf16.mxu0 %vm317_vm0, %v1384_v40  ;;  %v1650_v48 = vpop.permute.xlu0 %1649  ;;  %v2694_v40 = vld [vmem:[%s4135_s2 + $0x10] sm:$0xff] }
  0x9f   : > { %v1673_v62 = vsel %vm317_vm0, %v1650_v48, 0  ;;  %2712 = vperm.xlu1 %3320, %v2694_v40  }
  0xa0   : > { %2977 = vmatmul.mubr.msk.bf16.gmra.mxu1 %vm304_vm1, %v3328_v18  ;;  %v1646_v54 = vpop.permute.xlu1 %1645 }
  0xa1   : > { %661 = vmatprep.mubr.bf16.mxu1 %v3366_v0 }
  0xa2   : > { %v1648_v53 = vpop.permute.xlu0 %1647 }
  0xa3   : > { %2997 = vmatmul.mubr.msk.bf16.gmra.mxu0 %vm304_vm1, %v3331_v41  ;;  %v1653_v57 = vsel %vm1651_vm7, %v1648_v53, %v1650_v48  ;;  %v1652_v3 = vsel %vm1651_vm7, %v1646_v54, %v1648_v53  ;;  %v2693_v54 = vld [vmem:[%s4135_s2 + $0x8] sm:$0xff] }
  0xa4   : > { %920 = vmatprep.mubr.bf16.mxu0 %v3366_v0  ;;  %v1915_v58 = vpop.permute.xlu1 %1914  ;;  %v1667_v6 = vsel %vm317_vm0, %v1652_v3, 0 }
  0xa6   : > { %v1917_v60 = vpop.permute.xlu0 %1916 }
  0xa7   : > { %v1921_v18 = vsel %vm1920_vm8, %v1915_v58, %v1917_v60 }
  0xa8   : > { %2978 = vmatmul.mubr.msk.bf16.gmra.mxu1 %vm304_vm1, %v3329_v25  ;;  %v3557_v61 = vpop.permute.xlu1 %1918  ;;  %v1936_v26 = vsel %vm317_vm0, %v1921_v18, 0 }
  0xa9   : > { %3207 = vmatprep.mubr.msk.bf16.mxu1 %vm304_vm1, %v3330_v34  ;;  %v1922_v63 = vsel %vm1920_vm8, %v1917_v60, %v3557_v61  ;;  %v3347_v60 = vld [vmem:[%s4134_s1 + $0xc8] sm:$0xff]  }
  0xaa   : > { %v3607_v19 = vpop.permute.xlu0 %2187 }
  0xab   : > { %2998 = vmatmul.mubr.msk.bf16.gmra.mxu0 %vm304_vm1, %v3332_v42  ;;  %v2211_v58 = vsel %vm317_vm0, %v3607_v19, 0 }
  0xac   : > { %930 = vmatprep.mubr.bf16.mxu0 %v3366_v0  ;;  %v2184_v36 = vpop.permute.xlu1 %2183 }
  0xae   : > { %v2186_v34 = vpop.permute.xlu0 %2185 }
  0xb0   : > { %3208 = vmatmul.mubr.msk.bf16.vlgmr.msra.gmra.mxu1 %vm304_vm1, %v3331_v41  ;;  %v1942_v41 = vsel %vm317_vm0, %v3557_v61, 0 }
  0xb1   : > { %3211 = vmatprep.mubr.msk.bf16.mxu1 %vm304_vm1, %v3332_v42  ;;  %1152 = vmatpush1.bf16.msra.mxu1 %v1129_v44  ;;  %v2191_v44 = vsel %vm2189_vm9, %v2186_v34, %v3607_v19 }
  0xb2   : > { %3293 = vmatprep.subr.msk.bf16.mxu1 %vm317_vm0, %v1381_v39  ;;  %v2697_v39 = vld [vmem:[%s4135_s2 + $0x28] sm:$0xff] }
  0xb3   : > { %2999 = vmatmul.mubr.msk.bf16.gmra.mxu0 %vm304_vm1, %v3333_v45  ;;  %2727 = vperm.xlu0 %3319, %v2697_v39  }
  0xb4   : > { %3217 = vmatprep.mubr.msk.bf16.mxu0 %vm304_vm1, %v3334_v46 }
  0xb8   : > { %3212 = vmatmul.mubr.msk.bf16.gmra.mxu1 %vm304_vm1, %v3333_v45 }
  0xb9   : > { %1169 = vmatprep.mubr.bf16.mxu1 %v3366_v0 }
  0xbb   : > { %3218 = vmatmul.mubr.msk.bf16.vlgmr.msra.gmra.mxu0 %vm304_vm1, %v3335_v49 }
  0xbc   : > { %3221 = vmatprep.mubr.msk.bf16.mxu0 %vm304_vm1, %v3336_v50  ;;  %1421 = vmatpush1.bf16.msra.mxu0 %v1398_v51  ;;  %v2692_v51 = vld [vmem:[%s4135_s2] sm:$0xff] }
  0xbd   : > { %3294 = vmatprep.subr.msk.bf16.mxu0 %vm317_vm0, %v1650_v48  ;;  %v2453_v48 = vpop.permute.xlu1 %2452  ;;  %2702 = vperm.xlu1 %3320, %v2692_v51  }
  0xc0   : > { %3017 = vmatmul.mubr.msk.bf16.vlgmr.msra.gmra.mxu1 %vm304_vm1, %v3334_v46  ;;  %v269_v46 = vld [vmem:[#allocation2 + $0x88] sm:$0xff] }
  0xc1   : > { %1179 = vmatprep.mubr.bf16.mxu1 %v3366_v0  ;;  %3226 = vmatpush3.bf16.msra.mxu1 %v1404_v55  ;;  %v3346_v55 = vld [vmem:[%s4134_s1 + $0xc0] sm:$0xff]  }
  0xc2   : > { %3058 = vmatprep.subr.msk.bf16.mxu1 %vm317_vm0, %v1653_v57  ;;  %v2457_v57 = vpop.permute.xlu1 %2456 }
  0xc3   : > { %3222 = vmatmul.mubr.msk.bf16.gmra.mxu0 %vm304_vm1, %v3337_v56 }
  0xc4   : > { %1438 = vmatprep.mubr.bf16.mxu0 %v3366_v0 }
  0xc8   : > { %3018 = vmatmul.mubr.msk.bf16.gmra.mxu1 %vm304_vm1, %v3335_v49 }
  0xc9   : > { %1189 = vmatprep.mubr.bf16.mxu1 %v3366_v0 }
  0xcb   : > { %3038 = vmatmul.mubr.msk.bf16.vlgmr.msra.gmra.mxu0 %vm304_vm1, %v3338_v59 }
  0xcc   : > { %1448 = vmatprep.mubr.bf16.mxu0 %v3366_v0  ;;  %3236 = vmatpush3.bf16.msra.mxu0 %v1673_v62  ;;  %v2190_v62 = vsel %vm2189_vm9, %v2184_v36, %v2186_v34 }
  0xcd   : > { %3079 = vmatprep.subr.msk.bf16.mxu0 %vm317_vm0, %v1922_v63  ;;  %v2205_v63 = vsel %vm317_vm0, %v2190_v62, 0 }
  0xd0   : > { %3019 = vmatmul.mubr.msk.bf16.gmra.mxu1 %vm304_vm1, %v3336_v50  ;;  %v2695_v50 = vld [vmem:[%s4135_s2 + $0x18] sm:$0xff] }
  0xd1   : > { %1199 = vmatprep.mubr.bf16.mxu1 %v3366_v0  ;;  %2717 = vperm.xlu0 %3319, %v2695_v50  }
  0xd3   : > { %3039 = vmatmul.mubr.msk.bf16.gmra.mxu0 %vm304_vm1, %v3339_v1 }
  0xd4   : > { %1458 = vmatprep.mubr.bf16.mxu0 %v3366_v0 }
  0xd5   : > { %2707 = vperm.xlu0 %3319, %v2693_v54  }
  0xd8   : > { %3020 = vmatmul.mubr.msk.bf16.gmra.mxu1 %vm304_vm1, %v3337_v56  ;;  %v2455_v56 = vpop.permute.xlu0 %2454 }
  0xd9   : > { %3227 = vmatprep.mubr.msk.bf16.mxu1 %vm304_vm1, %v3338_v59  ;;  %v2460_v59 = vsel %vm2458_vm10, %v2455_v56, %v2457_v57  ;;  %v2459_v3 = vsel %vm2458_vm10, %v2453_v48, %v2455_v56 }
  0xdb   : > { %3040 = vmatmul.mubr.msk.bf16.gmra.mxu0 %vm304_vm1, %v3340_v2  ;;  %v3581_v4 = vpop.f32.mrf.mxu1 }
  0xdc   : > { %1468 = vmatprep.mubr.bf16.mxu0 %v3366_v0 }
  0xdd   : > { %v3584_v5 = vpop.f32.mrf.mxu1 }
  0xdf   : > { %v3590_v8 = vpop.f32.mrf.mxu1 }
  0xe0   : > { %3228 = vmatmul.mubr.msk.bf16.vlgmr.msra.gmra.mxu1 %vm304_vm1, %v3339_v1  ;;  %v3349_v1 = vld [vmem:[%s4134_s1 + $0xd8] sm:$0xff]  }
  0xe1   : > { %3231 = vmatprep.mubr.msk.bf16.mxu1 %vm304_vm1, %v3340_v2  ;;  %1690 = vmatpush1.bf16.msra.mxu1 %v1667_v6  ;;  %v3597_v10 = vpop.f32.mrf.mxu1  ;;  %v3350_v2 = vld [vmem:[%s4134_s1 + $0xe0] sm:$0xff]   ;;  %v3351_v6 = vld [vmem:[%s4134_s1 + $0xe8] sm:$0xff]  }
  0xe2   : > { %3295 = vmatprep.subr.msk.bf16.mxu1 %vm317_vm0, %v3557_v61  ;;  %v3348_v61 = vld [vmem:[%s4134_s1 + $0xd0] sm:$0xff]  }
  0xe3   : > { %3041 = vmatmul.mubr.msk.bf16.gmra.mxu0 %vm304_vm1, %v3341_v7  ;;  %v3189_v12 = vpop.f32.mrf.mxu1 }
  0xe4   : > { %3237 = vmatprep.mubr.msk.bf16.mxu0 %vm304_vm1, %v3342_v9  ;;  %v473_v14 = vadd.f32 %v3189_v12, %v260_v11  ;;  %v361_v11 = vpop.f32.mrf.mxu0  ;;  %v2480_v12 = vsel %vm317_vm0, %v2457_v57, 0 }
  0xe5   : > { %v434_v15 = vpop.f32.mrf.mxu1 }
  0xe6   : > { %497 = vst.msk [vmem:[#allocation2 + $0x40] sm:$0xff] %vm223_vm6, %v473_v14  ;;  %v467_v20 = vadd.f32 %v434_v15, %v254_v13  ;;  %v3353_v13 = vld [vmem:[%s4134_s1 + $0xf8] sm:$0xff]   ;;  %v363_v14 = vpop.f32.mrf.mxu0 }
  0xe7   : > { %v3190_v22 = vpop.f32.mrf.mxu1 }
  0xe8   : > { %3232 = vmatmul.mubr.msk.bf16.gmra.mxu1 %vm304_vm1, %v3341_v7  ;;  %491 = vst.msk [vmem:[#allocation2 + $0x10] sm:$0xff] %vm223_vm6, %v467_v20  ;;  %v476_v25 = vadd.f32 %v3190_v22, %v263_v16  ;;  %v3352_v7 = vld [vmem:[%s4134_s1 + $0xf0] sm:$0xff]   ;;  %v365_v15 = vpop.f32.mrf.mxu0  ;;  %v3354_v16 = vld [vmem:[%s4134_s1 + $0x100] sm:$0xff]  }
  0xe9   : > { %1707 = vmatprep.mubr.bf16.mxu1 %v3366_v0  ;;  %v437_v27 = vpop.f32.mrf.mxu1  ;;  %v3356_v22 = vld [vmem:[%s4134_s1 + $0x110] sm:$0xff]  }
  0xea   : > { %500 = vst.msk [vmem:[#allocation2 + $0x58] sm:$0xff] %vm223_vm6, %v476_v25  ;;  %v470_v31 = vadd.f32 %v437_v27, %v257_v23  ;;  %v367_v17 = vpop.f32.mrf.mxu0  ;;  %v3357_v25 = vld [vmem:[%s4134_s1 + $0x118] sm:$0xff]  }
  0xeb   : > { %3238 = vmatmul.mubr.msk.bf16.vlgmr.msra.gmra.mxu0 %vm304_vm1, %v3613_v21  ;;  %v3193_v32 = vpop.f32.mrf.mxu1 }
  0xec   : > { %3241 = vmatprep.mubr.msk.bf16.mxu0 %vm304_vm1, %v3619_v24  ;;  %1959 = vmatpush1.bf16.msra.mxu0 %v1936_v26  ;;  %494 = vst.msk [vmem:[#allocation2 + $0x28] sm:$0xff] %vm223_vm6, %v470_v31  ;;  %v485_v35 = vadd.f32 %v3193_v32, %v272_v28  ;;  %v371_v18 = vpop.f32.mrf.mxu0 }
  0xed   : > { %3296 = vmatprep.subr.msk.bf16.mxu0 %vm317_vm0, %v3607_v19  ;;  %v450_v37 = vpop.f32.mrf.mxu1  ;;  %v3355_v19 = vld [vmem:[%s4134_s1 + $0x108] sm:$0xff]   ;;  %v521_v29 = vld [vmem:[#allocation2 + $0x40] sm:$0xff] }
  0xee   : > { %509 = vst.msk [vmem:[#allocation2 + $0xa0] sm:$0xff] %vm223_vm6, %v485_v35  ;;  %v479_v42 = vadd.f32 %v450_v37, %v266_v33  ;;  %v3740_v20 = vpop.f32.mrf.mxu0 }
  0xef   : > { %v3194_v45 = vpop.f32.mrf.mxu1  ;;  %v515_v32 = vld [vmem:[#allocation2 + $0x10] sm:$0xff] }
  0xf0   : > { %3059 = vmatmul.mubr.msk.bf16.vlgmr.msra.gmra.mxu1 %vm304_vm1, %v3342_v9  ;;  %503 = vst.msk [vmem:[#allocation2 + $0x70] sm:$0xff] %vm223_vm6, %v479_v42  ;;  %v488_v47 = vadd.f32 %v3194_v45, %v275_v38  ;;  %v2474_v9 = vsel %vm317_vm0, %v2459_v3, 0 }
  0xf1   : > { %1717 = vmatprep.mubr.bf16.mxu1 %v3366_v0  ;;  %3246 = vmatpush3.bf16.msra.mxu1 %v1942_v41  ;;  %v453_v49 = vpop.f32.mrf.mxu1  ;;  %v524_v35 = vld [vmem:[#allocation2 + $0x58] sm:$0xff] }
  0xf2   : > { %3100 = vmatprep.subr.msk.bf16.mxu1 %vm317_vm0, %v2191_v44  ;;  %512 = vst.msk [vmem:[#allocation2 + $0xb8] sm:$0xff] %vm223_vm6, %v488_v47  ;;  %v482_v53 = vadd.f32 %v453_v49, %v269_v46 }
  0xf3   : > { %3242 = vmatmul.mubr.msk.bf16.gmra.mxu0 %vm304_vm1, %v3345_v43  ;;  %v518_v40 = vld [vmem:[#allocation2 + $0x28] sm:$0xff] }
  0xf4   : > { %1976 = vmatprep.mubr.bf16.mxu0 %v3366_v0  ;;  %506 = vst.msk [vmem:[#allocation2 + $0x88] sm:$0xff] %vm223_vm6, %v482_v53 }
  0xf5   : > { %v533_v42 = vld [vmem:[#allocation2 + $0xa0] sm:$0xff] }
  0xf7   : > { %v527_v49 = vld [vmem:[#allocation2 + $0x70] sm:$0xff] }
  0xf8   : > { %3060 = vmatmul.mubr.msk.bf16.gmra.mxu1 %vm304_vm1, %v3613_v21  ;;  %v3745_v21 = vpop.f32.mrf.mxu0 }
  0xf9   : > { %1727 = vmatprep.mubr.bf16.mxu1 %v3366_v0 }
  0xfa   : > { %v3751_v23 = vpop.f32.mrf.mxu0 }
  0xfb   : > { %3080 = vmatmul.mubr.msk.bf16.vlgmr.msra.gmra.mxu0 %vm304_vm1, %v3346_v55 }
  0xfc   : > { %1986 = vmatprep.mubr.bf16.mxu0 %v3366_v0  ;;  %3256 = vmatpush3.bf16.msra.mxu0 %v2211_v58 }
  0xfd   : > { %3121 = vmatprep.subr.msk.bf16.mxu0 %vm317_vm0, %v2460_v59 }
 0x100   : > { %3061 = vmatmul.mubr.msk.bf16.gmra.mxu1 %vm304_vm1, %v3619_v24  ;;  %v3756_v24 = vpop.f32.mrf.mxu0 }
 0x101   : > { %1737 = vmatprep.mubr.bf16.mxu1 %v3366_v0 }
 0x102   : > { %v3762_v26 = vpop.f32.mrf.mxu0 }
 0x103   : > { %3081 = vmatmul.mubr.msk.bf16.gmra.mxu0 %vm304_vm1, %v3347_v60 }
 0x104   : > { %1996 = vmatprep.mubr.bf16.mxu0 %v3366_v0  ;;  %v3767_v27 = vpop.f32.mrf.mxu0 }
 0x106   : > { %v3769_v28 = vpop.f32.mrf.mxu0 }
 0x108   : > { %3062 = vmatmul.mubr.msk.bf16.gmra.mxu1 %vm304_vm1, %v3345_v43 }
 0x109   : > { %3247 = vmatprep.mubr.msk.bf16.mxu1 %vm304_vm1, %v3346_v55  ;;  %v536_v55 = vld [vmem:[#allocation2 + $0xb8] sm:$0xff] }
 0x10b   : > { %3082 = vmatmul.mubr.msk.bf16.gmra.mxu0 %vm304_vm1, %v3348_v61 }
 0x10c   : > { %2006 = vmatprep.mubr.bf16.mxu0 %v3366_v0 }
 0x110   : > { %3248 = vmatmul.mubr.msk.bf16.vlgmr.msra.gmra.mxu1 %vm304_vm1, %v3347_v60  ;;  %v530_v60 = vld [vmem:[#allocation2 + $0x88] sm:$0xff] }
 0x111   : > { %3251 = vmatprep.mubr.msk.bf16.mxu1 %vm304_vm1, %v3348_v61  ;;  %2228 = vmatpush1.bf16.msra.mxu1 %v2205_v63 }
 0x112   : > { %3297 = vmatprep.subr.msk.bf16.mxu1 %vm317_vm0, %v2457_v57 }
 0x113   : > { %3083 = vmatmul.mubr.msk.bf16.gmra.mxu0 %vm304_vm1, %v3349_v1 }
 0x114   : > { %3257 = vmatprep.mubr.msk.bf16.mxu0 %vm304_vm1, %v3350_v2 }
 0x118   : > { %3252 = vmatmul.mubr.msk.bf16.gmra.mxu1 %vm304_vm1, %v3349_v1 }
 0x119   : > { %2245 = vmatprep.mubr.bf16.mxu1 %v3366_v0 }
 0x11b   : > { %3258 = vmatmul.mubr.msk.bf16.vlgmr.msra.gmra.mxu0 %vm304_vm1, %v3351_v6 }
 0x11c   : > { %3261 = vmatprep.mubr.msk.bf16.mxu0 %vm304_vm1, %v3352_v7  ;;  %2497 = vmatpush1.bf16.msra.mxu0 %v2474_v9 }
 0x11d   : > { %3275 = vmatprep.subr.bf16.mxu0 %v4138_v52 }
 0x120   : > { %3101 = vmatmul.mubr.msk.bf16.vlgmr.msra.gmra.mxu1 %vm304_vm1, %v3350_v2 }
 0x121   : > { %2255 = vmatprep.mubr.bf16.mxu1 %v3366_v0  ;;  %3266 = vmatpush3.bf16.msra.mxu1 %v2480_v12 }
 0x123   : > { %3262 = vmatmul.mubr.msk.bf16.gmra.mxu0 %vm304_vm1, %v3353_v13 }
 0x124   : > { %2514 = vmatprep.mubr.bf16.mxu0 %v3366_v0 }
 0x128   : > { %3102 = vmatmul.mubr.msk.bf16.gmra.mxu1 %vm304_vm1, %v3351_v6 }
 0x129   : > { %2265 = vmatprep.mubr.bf16.mxu1 %v3366_v0 }
 0x12b   : > { %3122 = vmatmul.mubr.msk.bf16.vlgmr.msra.gmra.mxu0 %vm304_vm1, %v3354_v16 }
 0x12c   : > { %2524 = vmatprep.mubr.bf16.mxu0 %v3366_v0 }
 0x130   : > { %3103 = vmatmul.mubr.msk.bf16.gmra.mxu1 %vm304_vm1, %v3352_v7 }
 0x131   : > { %2275 = vmatprep.mubr.bf16.mxu1 %v3366_v0 }
 0x133   : > { %3123 = vmatmul.mubr.msk.bf16.gmra.mxu0 %vm304_vm1, %v3355_v19 }
 0x134   : > { %2534 = vmatprep.mubr.bf16.mxu0 %v3366_v0 }
 0x138   : > { %3104 = vmatmul.mubr.msk.bf16.gmra.mxu1 %vm304_vm1, %v3353_v13 }
 0x139   : > { %3267 = vmatprep.mubr.msk.bf16.mxu1 %vm304_vm1, %v3354_v16 }
 0x13b   : > { %3124 = vmatmul.mubr.msk.bf16.gmra.mxu0 %vm304_vm1, %v3356_v22 }
 0x13c   : > { %2544 = vmatprep.mubr.bf16.mxu0 %v3366_v0 }
 0x140   : > { %3268 = vmatmul.mubr.msk.bf16.vlgmr.msra.gmra.mxu1 %vm304_vm1, %v3355_v19 }
 0x141   : > { %3271 = vmatprep.mubr.msk.bf16.mxu1 %vm304_vm1, %v3356_v22 }
 0x143   : > { %3125 = vmatmul.mubr.msk.bf16.gmra.mxu0 %vm304_vm1, %v3357_v25 }
 0x144   : > { %3283 = vmatprep.mubr.msk.bf16.mxu0 %vm3376_vm11, %v4138_v52 }
 0x148   : > { %3272 = vmatmul.mubr.msk.bf16.gmra.mxu1 %vm304_vm1, %v3357_v25 }
 0x149   : > { %2815 = vmatprep.mubr.bf16.mxu1 %v3366_v0 }
 0x14b   : > { %v3199_v30 = vpop.f32.mrf.mxu0 }
 0x14c   : > { %v745_v31 = vadd.f32 %v3199_v30, %v521_v29 }
 0x14d   : > { %v706_v33 = vpop.f32.mrf.mxu0 }
 0x14e   : > { %769 = vst.msk [vmem:[#allocation2 + $0x40] sm:$0xff] %vm223_vm6, %v745_v31  ;;  %v739_v34 = vadd.f32 %v706_v33, %v515_v32 }
 0x14f   : > { %v3200_v36 = vpop.f32.mrf.mxu0 }
 0x150   : > { %763 = vst.msk [vmem:[#allocation2 + $0x10] sm:$0xff] %vm223_vm6, %v739_v34  ;;  %v748_v37 = vadd.f32 %v3200_v36, %v524_v35  ;;  %v633_v38 = vpop.f32.mrf.mxu1 }
 0x151   : > { %v737_v39 = vadd.f32 %v633_v38, %v361_v11  ;;  %v709_v41 = vpop.f32.mrf.mxu0 }
 0x152   : > { %772 = vst.msk [vmem:[#allocation2 + $0x58] sm:$0xff] %vm223_vm6, %v748_v37  ;;  %v742_v0 = vadd.f32 %v709_v41, %v518_v40  ;;  %v635_v43 = vpop.f32.mrf.mxu1 }
 0x153   : > { %v738_v44 = vadd.f32 %v635_v43, %v363_v14  ;;  %v3203_v45 = vpop.f32.mrf.mxu0 }
 0x154   : > { %766 = vst.msk [vmem:[#allocation2 + $0x28] sm:$0xff] %vm223_vm6, %v742_v0  ;;  %v757_v46 = vadd.f32 %v3203_v45, %v533_v42  ;;  %v637_v47 = vpop.f32.mrf.mxu1 }
 0x155   : > { %v740_v48 = vadd.f32 %v637_v47, %v365_v15  ;;  %v722_v50 = vpop.f32.mrf.mxu0  ;;  %v793_v47 = vld [vmem:[#allocation2 + $0x40] sm:$0xff] }
 0x156   : > { %781 = vst.msk [vmem:[#allocation2 + $0xa0] sm:$0xff] %vm223_vm6, %v757_v46  ;;  %v751_v51 = vadd.f32 %v722_v50, %v527_v49  ;;  %v639_v53 = vpop.f32.mrf.mxu1 }
 0x157   : > { %v741_v54 = vadd.f32 %v639_v53, %v367_v17  ;;  %v3204_v56 = vpop.f32.mrf.mxu0 }
 0x158   : > { %775 = vst.msk [vmem:[#allocation2 + $0x70] sm:$0xff] %vm223_vm6, %v751_v51  ;;  %v760_v57 = vadd.f32 %v3204_v56, %v536_v55  ;;  %v643_v58 = vpop.f32.mrf.mxu1  ;;  %v787_v51 = vld [vmem:[#allocation2 + $0x10] sm:$0xff] }
 0x159   : > { %v743_v59 = vadd.f32 %v643_v58, %v371_v18  ;;  %v725_v61 = vpop.f32.mrf.mxu0 }
 0x15a   : > { %784 = vst.msk [vmem:[#allocation2 + $0xb8] sm:$0xff] %vm223_vm6, %v760_v57  ;;  %v754_v62 = vadd.f32 %v725_v61, %v530_v60  ;;  %v645_v63 = vpop.f32.mrf.mxu1 }
 0x15b   : > { %v744_v1 = vadd.f32 %v645_v63, %v3740_v20  ;;  %v902_v2 = vpop.f32.mrf.mxu0 }
 0x15c   : > { %778 = vst.msk [vmem:[#allocation2 + $0x88] sm:$0xff] %vm223_vm6, %v754_v62  ;;  %v3782_v3 = vadd.f32 %v902_v2, %v737_v39  ;;  %v647_v6 = vpop.f32.mrf.mxu1 }
 0x15d   : > { %v746_v7 = vadd.f32 %v647_v6, %v3745_v21  ;;  %v904_v9 = vpop.f32.mrf.mxu0 }
 0x15e   : > { %v3785_v11 = vadd.f32 %v904_v9, %v738_v44  ;;  %v649_v12 = vpop.f32.mrf.mxu1 }
 0x15f   : > { %v747_v13 = vadd.f32 %v649_v12, %v3751_v23  ;;  %v906_v14 = vpop.f32.mrf.mxu0  ;;  %v799_v12 = vld [vmem:[#allocation2 + $0x70] sm:$0xff] }
 0x160   : > { %v3788_v15 = vadd.f32 %v906_v14, %v740_v48  ;;  %v653_v16 = vpop.f32.mrf.mxu1 }
 0x161   : > { %v749_v17 = vadd.f32 %v653_v16, %v3756_v24  ;;  %v908_v18 = vpop.f32.mrf.mxu0 }
 0x162   : > { %v3791_v19 = vadd.f32 %v908_v18, %v741_v54  ;;  %v655_v20 = vpop.f32.mrf.mxu1 }
 0x163   : > { %v750_v22 = vadd.f32 %v655_v20, %v3762_v26  ;;  %v912_v25 = vpop.f32.mrf.mxu0  ;;  %v808_v20 = vld [vmem:[#allocation2 + $0xb8] sm:$0xff] }
 0x164   : > { %v3794_v21 = vadd.f32 %v912_v25, %v743_v59  ;;  %v657_v29 = vpop.f32.mrf.mxu1  ;;  %v790_v59 = vld [vmem:[#allocation2 + $0x28] sm:$0xff] }
 0x165   : > { %v752_v30 = vadd.f32 %v657_v29, %v3767_v27  ;;  %v914_v31 = vpop.f32.mrf.mxu0 }
 0x166   : > { %v3797_v23 = vadd.f32 %v914_v31, %v744_v1  ;;  %v659_v32 = vpop.f32.mrf.mxu1  ;;  %v805_v1 = vld [vmem:[#allocation2 + $0xa0] sm:$0xff] }
 0x167   : > { %v916_v33 = vpop.f32.mrf.mxu0 }
 0x168   : > { %v3799_v34 = vadd.f32 %v916_v33, %v746_v7  ;;  %v663_v24 = vpop.f32.mrf.mxu1 }
 0x169   : > { %v755_v35 = vadd.f32 %v663_v24, %v3581_v4  ;;  %v918_v36 = vpop.f32.mrf.mxu0  ;;  %v753_v4 = vadd.f32 %v659_v32, %v3769_v28  ;;  %v802_v32 = vld [vmem:[#allocation2 + $0x88] sm:$0xff] }
 0x16a   : > { %v3802_v37 = vadd.f32 %v918_v36, %v747_v13  ;;  %v665_v26 = vpop.f32.mrf.mxu1 }
 0x16b   : > { %v756_v38 = vadd.f32 %v665_v26, %v3584_v5  ;;  %v922_v39 = vpop.f32.mrf.mxu0 }
 0x16c   : > { %v3805_v40 = vadd.f32 %v922_v39, %v749_v17  ;;  %v667_v27 = vpop.f32.mrf.mxu1 }
 0x16d   : > { %v758_v41 = vadd.f32 %v667_v27, %v3590_v8  ;;  %v924_v42 = vpop.f32.mrf.mxu0 }
 0x16e   : > { %v3808_v0 = vadd.f32 %v924_v42, %v750_v22  ;;  %v669_v43 = vpop.f32.mrf.mxu1 }
 0x16f   : > { %v759_v44 = vadd.f32 %v669_v43, %v3597_v10  ;;  %v926_v45 = vpop.f32.mrf.mxu0  ;;  %v796_v10 = vld [vmem:[#allocation2 + $0x58] sm:$0xff] }
 0x170   : > { %v3812_v46 = vadd.f32 %v926_v45, %v752_v30  ;;  %v3209_v48 = vpop.f32.mrf.mxu1 }
 0x171   : > { %v1014_v5 = vadd.f32 %v3209_v48, %v793_v47  ;;  %v928_v49 = vpop.f32.mrf.mxu0 }
 0x172   : > { %v3814_v50 = vadd.f32 %v928_v49, %v753_v4  ;;  %v975_v53 = vpop.f32.mrf.mxu1 }
 0x173   : > { %1038 = vst.msk [vmem:[#allocation2 + $0x40] sm:$0xff] %vm223_vm6, %v1014_v5  ;;  %v1008_v8 = vadd.f32 %v975_v53, %v787_v51  ;;  %v932_v54 = vpop.f32.mrf.mxu0 }
 0x174   : > { %v3817_v55 = vadd.f32 %v932_v54, %v755_v35  ;;  %v3210_v56 = vpop.f32.mrf.mxu1 }
 0x175   : > { %1032 = vst.msk [vmem:[#allocation2 + $0x10] sm:$0xff] %vm223_vm6, %v1008_v8  ;;  %v1017_v28 = vadd.f32 %v3210_v56, %v796_v10  ;;  %v934_v57 = vpop.f32.mrf.mxu0 }
 0x176   : > { %v3820_v58 = vadd.f32 %v934_v57, %v756_v38  ;;  %v978_v60 = vpop.f32.mrf.mxu1 }
 0x177   : > { %1041 = vst.msk [vmem:[#allocation2 + $0x58] sm:$0xff] %vm223_vm6, %v1017_v28  ;;  %v1011_v61 = vadd.f32 %v978_v60, %v790_v59  ;;  %v936_v62 = vpop.f32.mrf.mxu0 }
 0x178   : > { %v3823_v63 = vadd.f32 %v936_v62, %v758_v41  ;;  %v3213_v2 = vpop.f32.mrf.mxu1 }
 0x179   : > { %1035 = vst.msk [vmem:[#allocation2 + $0x28] sm:$0xff] %vm223_vm6, %v1011_v61  ;;  %v1026_v6 = vadd.f32 %v3213_v2, %v805_v1  ;;  %v938_v7 = vpop.f32.mrf.mxu0 }
 0x17a   : > { %v3826_v9 = vadd.f32 %v938_v7, %v759_v44  ;;  %v991_v13 = vpop.f32.mrf.mxu1  ;;  %v1062_v14 = vld [vmem:[#allocation2 + $0x40] sm:$0xff] }
 0x17b   : > { %1050 = vst.msk [vmem:[#allocation2 + $0xa0] sm:$0xff] %vm223_vm6, %v1026_v6  ;;  %v1020_v16 = vadd.f32 %v991_v13, %v799_v12  ;;  %v3219_v17 = vpop.f32.mrf.mxu0 }
 0x17c   : > { %v1283_v18 = vadd.f32 %v3219_v17, %v1062_v14  ;;  %v3214_v22 = vpop.f32.mrf.mxu1  ;;  %v1056_v25 = vld [vmem:[#allocation2 + $0x10] sm:$0xff] }
 0x17d   : > { %1044 = vst.msk [vmem:[#allocation2 + $0x70] sm:$0xff] %vm223_vm6, %v1020_v16  ;;  %v1029_v29 = vadd.f32 %v3214_v22, %v808_v20  ;;  %v1244_v30 = vpop.f32.mrf.mxu0 }
 0x17e   : > { %1307 = vst.msk [vmem:[#allocation2 + $0x40] sm:$0xff] %vm223_vm6, %v1283_v18  ;;  %v1277_v31 = vadd.f32 %v1244_v30, %v1056_v25  ;;  %v994_v33 = vpop.f32.mrf.mxu1  ;;  %v1065_v24 = vld [vmem:[#allocation2 + $0x58] sm:$0xff] }
 0x17f   : > { %1053 = vst.msk [vmem:[#allocation2 + $0xb8] sm:$0xff] %vm223_vm6, %v1029_v29  ;;  %v1023_v35 = vadd.f32 %v994_v33, %v802_v32  ;;  %v3220_v36 = vpop.f32.mrf.mxu0 }
 0x180   : > { %1301 = vst.msk [vmem:[#allocation2 + $0x10] sm:$0xff] %vm223_vm6, %v1277_v31  ;;  %v1286_v26 = vadd.f32 %v3220_v36, %v1065_v24  ;;  %v1171_v38 = vpop.f32.mrf.mxu1  ;;  %v1059_v39 = vld [vmem:[#allocation2 + $0x28] sm:$0xff] }
 0x181   : > { %1047 = vst.msk [vmem:[#allocation2 + $0x88] sm:$0xff] %vm223_vm6, %v1023_v35  ;;  %v1275_v27 = vadd.f32 %v1171_v38, %v3782_v3  ;;  %v1247_v41 = vpop.f32.mrf.mxu0 }
 0x182   : > { %1310 = vst.msk [vmem:[#allocation2 + $0x58] sm:$0xff] %vm223_vm6, %v1286_v26  ;;  %v1280_v42 = vadd.f32 %v1247_v41, %v1059_v39  ;;  %v1173_v43 = vpop.f32.mrf.mxu1  ;;  %v1074_v44 = vld [vmem:[#allocation2 + $0xa0] sm:$0xff] }
 0x183   : > { %v1276_v45 = vadd.f32 %v1173_v43, %v3785_v11  ;;  %v3223_v4 = vpop.f32.mrf.mxu0 }
 0x184   : > { %1304 = vst.msk [vmem:[#allocation2 + $0x28] sm:$0xff] %vm223_vm6, %v1280_v42  ;;  %v1295_v47 = vadd.f32 %v3223_v4, %v1074_v44  ;;  %v1175_v48 = vpop.f32.mrf.mxu1  ;;  %v1068_v5 = vld [vmem:[#allocation2 + $0x70] sm:$0xff] }
 0x185   : > { %v1278_v49 = vadd.f32 %v1175_v48, %v3788_v15  ;;  %v1260_v51 = vpop.f32.mrf.mxu0 }
 0x186   : > { %1319 = vst.msk [vmem:[#allocation2 + $0xa0] sm:$0xff] %vm223_vm6, %v1295_v47  ;;  %v1289_v3 = vadd.f32 %v1260_v51, %v1068_v5  ;;  %v1177_v53 = vpop.f32.mrf.mxu1  ;;  %v1077_v8 = vld [vmem:[#allocation2 + $0xb8] sm:$0xff]  ;;  %v1331_v47 = vld [vmem:[#allocation2 + $0x40] sm:$0xff] }
 0x187   : > { %v1279_v54 = vadd.f32 %v1177_v53, %v3791_v19  ;;  %v3224_v10 = vpop.f32.mrf.mxu0  ;;  %v1325_v51 = vld [vmem:[#allocation2 + $0x10] sm:$0xff] }
 0x188   : > { %1313 = vst.msk [vmem:[#allocation2 + $0x70] sm:$0xff] %vm223_vm6, %v1289_v3  ;;  %v1298_v11 = vadd.f32 %v3224_v10, %v1077_v8  ;;  %v1181_v56 = vpop.f32.mrf.mxu1  ;;  %v1071_v28 = vld [vmem:[#allocation2 + $0x88] sm:$0xff] }
 0x189   : > { %v1281_v57 = vadd.f32 %v1181_v56, %v3794_v21  ;;  %v1263_v59 = vpop.f32.mrf.mxu0 }
 0x18a   : > { %1322 = vst.msk [vmem:[#allocation2 + $0xb8] sm:$0xff] %vm223_vm6, %v1298_v11  ;;  %v1292_v15 = vadd.f32 %v1263_v59, %v1071_v28  ;;  %v1183_v60 = vpop.f32.mrf.mxu1 }
 0x18b   : > { %v1282_v61 = vadd.f32 %v1183_v60, %v3797_v23  ;;  %v1440_v62 = vpop.f32.mrf.mxu0  ;;  %v1328_v28 = vld [vmem:[#allocation2 + $0x28] sm:$0xff] }
 0x18c   : > { %1316 = vst.msk [vmem:[#allocation2 + $0x88] sm:$0xff] %vm223_vm6, %v1292_v15  ;;  %v3846_v1 = vadd.f32 %v1440_v62, %v1275_v27  ;;  %v1185_v19 = vpop.f32.mrf.mxu1 }
 0x18d   : > { %v1284_v2 = vadd.f32 %v1185_v19, %v3799_v34  ;;  %v1442_v6 = vpop.f32.mrf.mxu0 }
 0x18e   : > { %v3849_v7 = vadd.f32 %v1442_v6, %v1276_v45  ;;  %v1187_v12 = vpop.f32.mrf.mxu1 }
 0x18f   : > { %v1285_v21 = vadd.f32 %v1187_v12, %v3802_v37  ;;  %v1444_v13 = vpop.f32.mrf.mxu0  ;;  %v1337_v12 = vld [vmem:[#allocation2 + $0x70] sm:$0xff] }
 0x190   : > { %v3852_v14 = vadd.f32 %v1444_v13, %v1278_v49  ;;  %v1191_v16 = vpop.f32.mrf.mxu1 }
 0x191   : > { %v1287_v23 = vadd.f32 %v1191_v16, %v3805_v40  ;;  %v1446_v17 = vpop.f32.mrf.mxu0 }
 0x192   : > { %v3855_v18 = vadd.f32 %v1446_v17, %v1279_v54  ;;  %v1193_v20 = vpop.f32.mrf.mxu1  ;;  %v1334_v54 = vld [vmem:[#allocation2 + $0x58] sm:$0xff] }
 0x193   : > { %v1288_v22 = vadd.f32 %v1193_v20, %v3808_v0  ;;  %v1450_v25 = vpop.f32.mrf.mxu0  ;;  %v1346_v20 = vld [vmem:[#allocation2 + $0xb8] sm:$0xff] }
 0x194   : > { %v3858_v34 = vadd.f32 %v1450_v25, %v1281_v57  ;;  %v1195_v29 = vpop.f32.mrf.mxu1 }
 0x195   : > { %v1290_v30 = vadd.f32 %v1195_v29, %v3812_v46  ;;  %v1452_v31 = vpop.f32.mrf.mxu0 }
 0x196   : > { %v3861_v37 = vadd.f32 %v1452_v31, %v1282_v61  ;;  %v1197_v32 = vpop.f32.mrf.mxu1  ;;  %v1343_v61 = vld [vmem:[#allocation2 + $0xa0] sm:$0xff] }
 0x197   : > { %v1291_v33 = vadd.f32 %v1197_v32, %v3814_v50  ;;  %v1454_v24 = vpop.f32.mrf.mxu0  ;;  %v1340_v32 = vld [vmem:[#allocation2 + $0x88] sm:$0xff] }
 0x198   : > { %v3864_v40 = vadd.f32 %v1454_v24, %v1284_v2  ;;  %v1201_v35 = vpop.f32.mrf.mxu1 }
 0x199   : > { %v1293_v36 = vadd.f32 %v1201_v35, %v3817_v55  ;;  %v1456_v26 = vpop.f32.mrf.mxu0 }
 0x19a   : > { %v3867_v0 = vadd.f32 %v1456_v26, %v1285_v21  ;;  %v1203_v38 = vpop.f32.mrf.mxu1 }
 0x19b   : > { %v1294_v39 = vadd.f32 %v1203_v38, %v3820_v58  ;;  %v1460_v27 = vpop.f32.mrf.mxu0 }
 0x19c   : > { %v3870_v46 = vadd.f32 %v1460_v27, %v1287_v23  ;;  %v1205_v41 = vpop.f32.mrf.mxu1 }
 0x19d   : > { %v1296_v42 = vadd.f32 %v1205_v41, %v3823_v63  ;;  %v1462_v43 = vpop.f32.mrf.mxu0 }
 0x19e   : > { %v3873_v50 = vadd.f32 %v1462_v43, %v1288_v22  ;;  %v1207_v44 = vpop.f32.mrf.mxu1 }
 0x19f   : > { %v1297_v45 = vadd.f32 %v1207_v44, %v3826_v9  ;;  %v1464_v4 = vpop.f32.mrf.mxu0 }
 0x1a0   : > { %v3876_v55 = vadd.f32 %v1464_v4, %v1290_v30  ;;  %v3229_v48 = vpop.f32.mrf.mxu1 }
 0x1a1   : > { %v1552_v5 = vadd.f32 %v3229_v48, %v1331_v47  ;;  %v1466_v49 = vpop.f32.mrf.mxu0 }
 0x1a2   : > { %v3878_v58 = vadd.f32 %v1466_v49, %v1291_v33  ;;  %v1513_v3 = vpop.f32.mrf.mxu1 }
 0x1a3   : > { %1576 = vst.msk [vmem:[#allocation2 + $0x40] sm:$0xff] %vm223_vm6, %v1552_v5  ;;  %v1546_v63 = vadd.f32 %v1513_v3, %v1325_v51  ;;  %v1470_v53 = vpop.f32.mrf.mxu0 }
 0x1a4   : > { %v3881_v8 = vadd.f32 %v1470_v53, %v1293_v36  ;;  %v3230_v10 = vpop.f32.mrf.mxu1 }
 0x1a5   : > { %1570 = vst.msk [vmem:[#allocation2 + $0x10] sm:$0xff] %vm223_vm6, %v1546_v63  ;;  %v1555_v9 = vadd.f32 %v3230_v10, %v1334_v54  ;;  %v1472_v11 = vpop.f32.mrf.mxu0 }
 0x1a6   : > { %v3884_v56 = vadd.f32 %v1472_v11, %v1294_v39  ;;  %v1516_v57 = vpop.f32.mrf.mxu1 }
 0x1a7   : > { %1579 = vst.msk [vmem:[#allocation2 + $0x58] sm:$0xff] %vm223_vm6, %v1555_v9  ;;  %v1549_v59 = vadd.f32 %v1516_v57, %v1328_v28  ;;  %v1474_v15 = vpop.f32.mrf.mxu0 }
 0x1a8   : > { %v3887_v60 = vadd.f32 %v1474_v15, %v1296_v42  ;;  %v3233_v62 = vpop.f32.mrf.mxu1 }
 0x1a9   : > { %1573 = vst.msk [vmem:[#allocation2 + $0x28] sm:$0xff] %vm223_vm6, %v1549_v59  ;;  %v1564_v19 = vadd.f32 %v3233_v62, %v1343_v61  ;;  %v1476_v2 = vpop.f32.mrf.mxu0 }
 0x1aa   : > { %v3891_v6 = vadd.f32 %v1476_v2, %v1297_v45  ;;  %v1529_v21 = vpop.f32.mrf.mxu1  ;;  %v1600_v13 = vld [vmem:[#allocation2 + $0x40] sm:$0xff] }
 0x1ab   : > { %1588 = vst.msk [vmem:[#allocation2 + $0xa0] sm:$0xff] %vm223_vm6, %v1564_v19  ;;  %v1558_v16 = vadd.f32 %v1529_v21, %v1337_v12  ;;  %v3239_v23 = vpop.f32.mrf.mxu0 }
 0x1ac   : > { %4143 = vst [vmem:[#allocation3_spill] sm:$0xff] %v3891_v6  ;;  %v1821_v17 = vadd.f32 %v3239_v23, %v1600_v13  ;;  %v3234_v22 = vpop.f32.mrf.mxu1  ;;  %v1594_v25 = vld [vmem:[#allocation2 + $0x10] sm:$0xff] }
 0x1ad   : > { %1582 = vst.msk [vmem:[#allocation2 + $0x70] sm:$0xff] %vm223_vm6, %v1558_v16  ;;  %v1567_v29 = vadd.f32 %v3234_v22, %v1346_v20  ;;  %v1782_v30 = vpop.f32.mrf.mxu0 }
 0x1ae   : > { %1845 = vst.msk [vmem:[#allocation2 + $0x40] sm:$0xff] %vm223_vm6, %v1821_v17  ;;  %v1815_v31 = vadd.f32 %v1782_v30, %v1594_v25  ;;  %v1532_v33 = vpop.f32.mrf.mxu1  ;;  %v1603_v24 = vld [vmem:[#allocation2 + $0x58] sm:$0xff] }
 0x1af   : > { %1591 = vst.msk [vmem:[#allocation2 + $0xb8] sm:$0xff] %vm223_vm6, %v1567_v29  ;;  %v1561_v35 = vadd.f32 %v1532_v33, %v1340_v32  ;;  %v3240_v36 = vpop.f32.mrf.mxu0 }
 0x1b0   : > { %1839 = vst.msk [vmem:[#allocation2 + $0x10] sm:$0xff] %vm223_vm6, %v1815_v31  ;;  %v1824_v26 = vadd.f32 %v3240_v36, %v1603_v24  ;;  %v3898_v38 = vpop.f32.mrf.mxu1  ;;  %v1597_v39 = vld [vmem:[#allocation2 + $0x28] sm:$0xff] }
 0x1b1   : > { %1585 = vst.msk [vmem:[#allocation2 + $0x88] sm:$0xff] %vm223_vm6, %v1561_v35  ;;  %v1785_v27 = vpop.f32.mrf.mxu0 }
 0x1b2   : > { %1848 = vst.msk [vmem:[#allocation2 + $0x58] sm:$0xff] %vm223_vm6, %v1824_v26  ;;  %v1818_v41 = vadd.f32 %v1785_v27, %v1597_v39  ;;  %v3902_v42 = vpop.f32.mrf.mxu1  ;;  %v1612_v43 = vld [vmem:[#allocation2 + $0xa0] sm:$0xff] }
 0x1b3   : > { %v3243_v44 = vpop.f32.mrf.mxu0 }
 0x1b4   : > { %1842 = vst.msk [vmem:[#allocation2 + $0x28] sm:$0xff] %vm223_vm6, %v1818_v41  ;;  %v1833_v45 = vadd.f32 %v3243_v44, %v1612_v43  ;;  %v3905_v4 = vpop.f32.mrf.mxu1  ;;  %v1606_v47 = vld [vmem:[#allocation2 + $0x70] sm:$0xff] }
 0x1b5   : > { %v1798_v48 = vpop.f32.mrf.mxu0  ;;  %v1869_v33 = vld [vmem:[#allocation2 + $0x40] sm:$0xff] }
 0x1b6   : > { %1857 = vst.msk [vmem:[#allocation2 + $0xa0] sm:$0xff] %vm223_vm6, %v1833_v45  ;;  %v1827_v5 = vadd.f32 %v1798_v48, %v1606_v47  ;;  %v3908_v49 = vpop.f32.mrf.mxu1  ;;  %v1615_v51 = vld [vmem:[#allocation2 + $0xb8] sm:$0xff] }
 0x1b7   : > { %v3244_v3 = vpop.f32.mrf.mxu0  ;;  %v1863_v26 = vld [vmem:[#allocation2 + $0x10] sm:$0xff] }
 0x1b8   : > { %1851 = vst.msk [vmem:[#allocation2 + $0x70] sm:$0xff] %vm223_vm6, %v1827_v5  ;;  %v1836_v63 = vadd.f32 %v3244_v3, %v1615_v51  ;;  %v3911_v53 = vpop.f32.mrf.mxu1  ;;  %v1609_v54 = vld [vmem:[#allocation2 + $0x88] sm:$0xff] }
 0x1b9   : > { %v1801_v10 = vpop.f32.mrf.mxu0  ;;  %v1872_v43 = vld [vmem:[#allocation2 + $0x58] sm:$0xff] }
 0x1ba   : > { %1860 = vst.msk [vmem:[#allocation2 + $0xb8] sm:$0xff] %vm223_vm6, %v1836_v63  ;;  %v1830_v9 = vadd.f32 %v1801_v10, %v1609_v54  ;;  %v3914_v11 = vpop.f32.mrf.mxu1 }
 0x1bb   : > { %v3916_v28 = vpop.f32.mrf.mxu0  ;;  %v1866_v48 = vld [vmem:[#allocation2 + $0x28] sm:$0xff] }
 0x1bc   : > { %1854 = vst.msk [vmem:[#allocation2 + $0x88] sm:$0xff] %vm223_vm6, %v1830_v9  ;;  %v3919_v57 = vpop.f32.mrf.mxu1 }
 0x1bd   : > { %v3921_v59 = vpop.f32.mrf.mxu0  ;;  %v1881_v63 = vld [vmem:[#allocation2 + $0xa0] sm:$0xff] }
 0x1be   : > { %v3923_v15 = vpop.f32.mrf.mxu1 }
 0x1bf   : > { %v3925_v61 = vpop.f32.mrf.mxu0 }
 0x1c0   : > { %v3927_v62 = vpop.f32.mrf.mxu1 }
 0x1c1   : > { %v3929_v19 = vpop.f32.mrf.mxu0 }
 0x1c2   : > { %v3931_v2 = vpop.f32.mrf.mxu1 }
 0x1c3   : > { %v3933_v12 = vpop.f32.mrf.mxu0  ;;  %v1878_v52 = vld [vmem:[#allocation2 + $0x88] sm:$0xff] }
 0x1c4   : > { %v3935_v21 = vpop.f32.mrf.mxu1 }
 0x1c5   : > { %v3937_v13 = vpop.f32.mrf.mxu0 }
 0x1c6   : > { %v3939_v16 = vpop.f32.mrf.mxu1 }
 0x1c7   : > { %v3941_v23 = vpop.f32.mrf.mxu0 }
 0x1c8   : > { %v3943_v17 = vpop.f32.mrf.mxu1 }
 0x1c9   : > { %v3945_v20 = vpop.f32.mrf.mxu0 }
 0x1ca   : > { %v3947_v22 = vpop.f32.mrf.mxu1 }
 0x1cb   : > { %v3949_v25 = vpop.f32.mrf.mxu0 }
 0x1cc   : > { %v3951_v29 = vpop.f32.mrf.mxu1 }
 0x1cd   : > { %v3953_v30 = vpop.f32.mrf.mxu0 }
 0x1ce   : > { %v3955_v31 = vpop.f32.mrf.mxu1 }
 0x1cf   : > { %4144 = vst [vmem:[#allocation4_spill] sm:$0xff] %v3955_v31  ;;  %v3957_v32 = vpop.f32.mrf.mxu0 }
 0x1d0   : > { %v3249_v24 = vpop.f32.mrf.mxu1 }
 0x1d1   : > { %v2090_v35 = vadd.f32 %v3249_v24, %v1869_v33  ;;  %v3959_v36 = vpop.f32.mrf.mxu0  ;;  %v1875_v33 = vld [vmem:[#allocation2 + $0x70] sm:$0xff] }
 0x1d2   : > { %v2051_v39 = vpop.f32.mrf.mxu1 }
 0x1d3   : > { %2114 = vst.msk [vmem:[#allocation2 + $0x40] sm:$0xff] %vm223_vm6, %v2090_v35  ;;  %v2084_v27 = vadd.f32 %v2051_v39, %v1863_v26  ;;  %v3962_v41 = vpop.f32.mrf.mxu0 }
 0x1d4   : > { %v3250_v44 = vpop.f32.mrf.mxu1 }
 0x1d5   : > { %2108 = vst.msk [vmem:[#allocation2 + $0x10] sm:$0xff] %vm223_vm6, %v2084_v27  ;;  %v2093_v45 = vadd.f32 %v3250_v44, %v1872_v43  ;;  %v3965_v47 = vpop.f32.mrf.mxu0  ;;  %v1884_v43 = vld [vmem:[#allocation2 + $0xb8] sm:$0xff] }
 0x1d6   : > { %v2054_v5 = vpop.f32.mrf.mxu1 }
 0x1d7   : > { %2117 = vst.msk [vmem:[#allocation2 + $0x58] sm:$0xff] %vm223_vm6, %v2093_v45  ;;  %v2087_v51 = vadd.f32 %v2054_v5, %v1866_v48  ;;  %v3968_v3 = vpop.f32.mrf.mxu0  ;;  %v3974_v48 = vpop.permute.xlu1 %2737 }
 0x1d8   : > { %4145 = vst [vmem:[#allocation5_spill] sm:$0xff] %v3968_v3  ;;  %v3253_v54 = vpop.f32.mrf.mxu1  ;;  %4147 = vst [vmem:[#allocation7_spill] sm:$0xff] %v3974_v48 }
 0x1d9   : > { %2111 = vst.msk [vmem:[#allocation2 + $0x28] sm:$0xff] %vm223_vm6, %v2087_v51  ;;  %v2102_v10 = vadd.f32 %v3253_v54, %v1881_v63  ;;  %v3971_v9 = vpop.f32.mrf.mxu0  ;;  %v3977_v63 = vpop.permute.xlu0 %2732 }
 0x1da   : > { %4146 = vst [vmem:[#allocation6_spill] sm:$0xff] %v3971_v9  ;;  %v2067_v24 = vpop.f32.mrf.mxu1  ;;  %v2138_v35 = vld [vmem:[#allocation2 + $0x40] sm:$0xff]  ;;  %4148 = vst [vmem:[#allocation8_spill] sm:$0xff] %v3977_v63 }
 0x1db   : > { %2126 = vst.msk [vmem:[#allocation2 + $0xa0] sm:$0xff] %vm223_vm6, %v2102_v10  ;;  %v2096_v26 = vadd.f32 %v2067_v24, %v1875_v33  ;;  %v3259_v39 = vpop.f32.mrf.mxu0 }
 0x1dc   : > { %v2359_v27 = vadd.f32 %v3259_v39, %v2138_v35  ;;  %v3254_v44 = vpop.f32.mrf.mxu1  ;;  %v2132_v45 = vld [vmem:[#allocation2 + $0x10] sm:$0xff] }
 0x1dd   : > { %2120 = vst.msk [vmem:[#allocation2 + $0x70] sm:$0xff] %vm223_vm6, %v2096_v26  ;;  %v2105_v5 = vadd.f32 %v3254_v44, %v1884_v43  ;;  %v2320_v51 = vpop.f32.mrf.mxu0  ;;  %v3986_v63 = vpop.permute.xlu0 %2727 }
 0x1de   : > { %2383 = vst.msk [vmem:[#allocation2 + $0x40] sm:$0xff] %vm223_vm6, %v2359_v27  ;;  %v2353_v54 = vadd.f32 %v2320_v51, %v2132_v45  ;;  %v2070_v9 = vpop.f32.mrf.mxu1  ;;  %v2141_v10 = vld [vmem:[#allocation2 + $0x58] sm:$0xff]  ;;  %v3984_v45 = vpop.permute.xlu1 %2722  ;;  %4149 = vst [vmem:[#allocation9_spill] sm:$0xff] %v3986_v63 }
 0x1df   : > { %2129 = vst.msk [vmem:[#allocation2 + $0xb8] sm:$0xff] %vm223_vm6, %v2105_v5  ;;  %v2099_v33 = vadd.f32 %v2070_v9, %v1878_v52  ;;  %v3260_v24 = vpop.f32.mrf.mxu0 }
 0x1e0   : > { %2377 = vst.msk [vmem:[#allocation2 + $0x10] sm:$0xff] %vm223_vm6, %v2353_v54  ;;  %v2362_v35 = vadd.f32 %v3260_v24, %v2141_v10  ;;  %v2247_v39 = vpop.f32.mrf.mxu1  ;;  %v2135_v48 = vld [vmem:[#allocation2 + $0x28] sm:$0xff]  ;;  %v1813_v10 = vadd.f32 %v3898_v38, %v3846_v1  ;;  %v1816_v38 = vadd.f32 %v3905_v4, %v3852_v14  ;;  %v1819_v14 = vadd.f32 %v3911_v53, %v3858_v34 }
 0x1e1   : > { %2123 = vst.msk [vmem:[#allocation2 + $0x88] sm:$0xff] %vm223_vm6, %v2099_v33  ;;  %v2323_v26 = vpop.f32.mrf.mxu0  ;;  %v3998_v1 = vpop.permute.xlu0 %2717  ;;  %v1822_v34 = vadd.f32 %v3919_v57, %v3864_v40 }
 0x1e2   : > { %2386 = vst.msk [vmem:[#allocation2 + $0x58] sm:$0xff] %vm223_vm6, %v2362_v35  ;;  %v2356_v43 = vadd.f32 %v2323_v26, %v2135_v48  ;;  %v2249_v27 = vpop.f32.mrf.mxu1  ;;  %v2150_v44 = vld [vmem:[#allocation2 + $0xa0] sm:$0xff]  ;;  %v1814_v26 = vadd.f32 %v3902_v42, %v3849_v7  ;;  %v2082_v3 = vadd.f32 %v3916_v28, %v1813_v10  ;;  %v3996_v31 = vpop.permute.xlu1 %2712  ;;  %v2085_v10 = vadd.f32 %v3925_v61, %v1816_v38 }
 0x1e3   : > { %v3263_v51 = vpop.f32.mrf.mxu0 }
 0x1e4   : > { %2380 = vst.msk [vmem:[#allocation2 + $0x28] sm:$0xff] %vm223_vm6, %v2356_v43  ;;  %v2371_v52 = vadd.f32 %v3263_v51, %v2150_v44  ;;  %v2251_v9 = vpop.f32.mrf.mxu1  ;;  %v2144_v5 = vld [vmem:[#allocation2 + $0x70] sm:$0xff] }
 0x1e5   : > { %v2336_v54 = vpop.f32.mrf.mxu0  ;;  %v4015_v61 = vpop.permute.xlu0 %2707 }
 0x1e6   : > { %2395 = vst.msk [vmem:[#allocation2 + $0xa0] sm:$0xff] %vm223_vm6, %v2371_v52  ;;  %v2365_v33 = vadd.f32 %v2336_v54, %v2144_v5  ;;  %v2253_v48 = vpop.f32.mrf.mxu1  ;;  %v2153_v24 = vld [vmem:[#allocation2 + $0xb8] sm:$0xff]  ;;  %v2083_v52 = vadd.f32 %v3921_v59, %v1814_v26  ;;  %v2351_v5 = vadd.f32 %v2247_v39, %v2082_v3  ;;  %v1817_v54 = vadd.f32 %v3908_v49, %v3855_v18  ;;  %v4011_v39 = vpop.permute.xlu1 %2702 }
 0x1e7   : > { %v3264_v35 = vpop.f32.mrf.mxu0  ;;  %v2354_v59 = vadd.f32 %v2251_v9, %v2085_v10  ;;  %v1820_v18 = vadd.f32 %v3914_v11, %v3861_v37  ;;  %v1823_v11 = vadd.f32 %v3923_v15, %v3867_v0 }
 0x1e8   : > { %2389 = vst.msk [vmem:[#allocation2 + $0x70] sm:$0xff] %vm223_vm6, %v2365_v33  ;;  %v2374_v43 = vadd.f32 %v3264_v35, %v2153_v24  ;;  %v2257_v44 = vpop.f32.mrf.mxu1  ;;  %v2147_v51 = vld [vmem:[#allocation2 + $0x88] sm:$0xff]  ;;  %v2352_v33 = vadd.f32 %v2249_v27, %v2083_v52  ;;  %v2086_v4 = vadd.f32 %v3929_v19, %v1817_v54  ;;  %v2088_v27 = vadd.f32 %v3933_v12, %v1819_v14 }
 0x1e9   : > { %v2339_v6 = vpop.f32.mrf.mxu0  ;;  %v2089_v53 = vadd.f32 %v3937_v13, %v1820_v18  ;;  %v2091_v12 = vadd.f32 %v3941_v23, %v1822_v34  ;;  %v2092_v0 = vadd.f32 %v3945_v20, %v1823_v11  ;;  %v1831_v34 = vadd.f32 %v3943_v17, %v3881_v8 }
 0x1ea   : > { %2398 = vst.msk [vmem:[#allocation2 + $0xb8] sm:$0xff] %vm223_vm6, %v2374_v43  ;;  %v2368_v7 = vadd.f32 %v2339_v6, %v2147_v51  ;;  %v2259_v42 = vpop.f32.mrf.mxu1  ;;  %v2355_v26 = vadd.f32 %v2253_v48, %v2086_v4  ;;  %v1834_v8 = vadd.f32 %v3951_v29, %v3887_v60 }
 0x1eb   : > { %v2516_v28 = vpop.f32.mrf.mxu0  ;;  %v2358_v48 = vadd.f32 %v2259_v42, %v2089_v53  ;;  %v2100_v11 = vadd.f32 %v3962_v41, %v1831_v34  ;;  %v4151_v41 = vld [vmem:[#allocation3_spill] sm:$0xff] }
 0x1ec   : > { %2392 = vst.msk [vmem:[#allocation2 + $0x88] sm:$0xff] %vm223_vm6, %v2368_v7  ;;  %v2620_v24 = vadd.f32 %v2516_v28, %v2351_v5  ;;  %v2261_v35 = vpop.f32.mrf.mxu1  ;;  %v1825_v28 = vadd.f32 %v3927_v62, %v3870_v46  ;;  %v1828_v46 = vadd.f32 %v3935_v21, %v3876_v55 }
 0x1ed   : > { %v2518_v63 = vpop.f32.mrf.mxu0  ;;  %v2360_v15 = vadd.f32 %v2261_v35, %v2091_v12 }
 0x1ee   : > { %v2621_v6 = vadd.f32 %v2518_v63, %v2352_v33  ;;  %v2263_v3 = vpop.f32.mrf.mxu1  ;;  %v2357_v63 = vadd.f32 %v2257_v44, %v2088_v27  ;;  %v4022_v52 = vadd.f32 %v4011_v39, %v2620_v24  ;;  %v1826_v33 = vadd.f32 %v3931_v2, %v3873_v50 }
 0x1ef   : > { %v2520_v49 = vpop.f32.mrf.mxu0  ;;  %v2094_v14 = vadd.f32 %v3949_v25, %v1825_v28  ;;  %v2361_v4 = vadd.f32 %v2263_v3, %v2092_v0  ;;  %v1829_v2 = vadd.f32 %v3939_v16, %v3878_v58  ;;  %v2097_v25 = vadd.f32 %v3957_v32, %v1828_v46  ;;  %v2401_v0 = vld [vmem:[#allocation2 + $0x10] sm:$0xff] }
 0x1f0   : > { %v2623_v43 = vadd.f32 %v2520_v49, %v2354_v59  ;;  %v2267_v51 = vpop.f32.mrf.mxu1  ;;  %v4031_v13 = vadd.f32 %v4011_v39, %v2621_v6  ;;  %v2095_v62 = vadd.f32 %v3953_v30, %v1826_v33 }
 0x1f1   : > { %v2522_v19 = vpop.f32.mrf.mxu0  ;;  %v2363_v35 = vadd.f32 %v2267_v51, %v2094_v14  ;;  %v2098_v58 = vadd.f32 %v3959_v36, %v1829_v2  ;;  %v4154_v2 = vld [vmem:[#allocation6_spill] sm:$0xff] }
 0x1f2   : > { %v2624_v9 = vadd.f32 %v2522_v19, %v2355_v26  ;;  %v2269_v38 = vpop.f32.mrf.mxu1  ;;  %v4025_v37 = vadd.f32 %v4015_v61, %v2623_v43 }
 0x1f3   : > { %v2526_v5 = vpop.f32.mrf.mxu0  ;;  %v2364_v3 = vadd.f32 %v2269_v38, %v2095_v62 }
 0x1f4   : > { %v2626_v40 = vadd.f32 %v2526_v5, %v2357_v63  ;;  %v2271_v57 = vpop.f32.mrf.mxu1  ;;  %v4034_v44 = vadd.f32 %v4015_v61, %v2624_v9  ;;  %v2764_v7 = vpack.c.bf16 %v4025_v37, %v4022_v52  ;;  %v1832_v9 = vadd.f32 %v3947_v22, %v3884_v56  ;;  %v2407_v5 = vld [vmem:[#allocation2 + $0x40] sm:$0xff]  ;;  %v4150_v22 = vld [vmem:[#allocation9_spill] sm:$0xff] }
 0x1f5   : > { %v2528_v54 = vpop.f32.mrf.mxu0  ;;  %v2366_v16 = vadd.f32 %v2271_v57, %v2097_v25 }
 0x1f6   : > { %v2627_v23 = vadd.f32 %v2528_v54, %v2358_v48  ;;  %v2273_v42 = vpop.f32.mrf.mxu1  ;;  %v2765_v10 = vpack.c.bf16 %v4034_v44, %v4031_v13  ;;  %v4050_v27 = vadd.f32 %v3996_v31, %v2626_v40  ;;  %v2101_v17 = vadd.f32 %v3965_v47, %v1832_v9  ;;  %v2419_v9 = vld [vmem:[#allocation2 + $0xa0] sm:$0xff] }
 0x1f7   : > { %v2530_v24 = vpop.f32.mrf.mxu0  ;;  %v2367_v12 = vadd.f32 %v2273_v42, %v2098_v58  ;;  %v4152_v42 = vld [vmem:[#allocation4_spill] sm:$0xff] }
 0x1f8   : > { %v2629_v59 = vadd.f32 %v2530_v24, %v2360_v15  ;;  %v2277_v6 = vpop.f32.mrf.mxu1  ;;  %v4059_v30 = vadd.f32 %v3996_v31, %v2627_v23  ;;  %v1835_v33 = vadd.f32 %v4152_v42, %v4151_v41  ;;  %v4153_v24 = vld [vmem:[#allocation5_spill] sm:$0xff] }
 0x1f9   : > { %v2532_v20 = vpop.f32.mrf.mxu0  ;;  %v2369_v28 = vadd.f32 %v2277_v6, %v2100_v11  ;;  %v2103_v14 = vadd.f32 %v4153_v24, %v1834_v8 }
 0x1fa   : > { %v2630_v18 = vadd.f32 %v2532_v20, %v2361_v4  ;;  %v2279_v49 = vpop.f32.mrf.mxu1  ;;  %v4053_v50 = vadd.f32 %v3998_v1, %v2629_v59  ;;  %v2410_v59 = vld [vmem:[#allocation2 + $0x58] sm:$0xff]  ;;  %v2104_v25 = vadd.f32 %v4154_v2, %v1835_v33 }
 0x1fb   : > { %v2536_v26 = vpop.f32.mrf.mxu0  ;;  %v2370_v4 = vadd.f32 %v2279_v49, %v2101_v17  ;;  %v4156_v17 = vld [vmem:[#allocation7_spill] sm:$0xff] }
 0x1fc   : > { %v2632_v55 = vadd.f32 %v2536_v26, %v2363_v35  ;;  %v2281_v21 = vpop.f32.mrf.mxu1  ;;  %v4062_v43 = vadd.f32 %v3998_v1, %v2630_v18  ;;  %v2767_v51 = vpack.c.bf16 %v4053_v50, %v4050_v27  ;;  %v2404_v26 = vld [vmem:[#allocation2 + $0x28] sm:$0xff] }
 0x1fd   : > { %v2538_v53 = vpop.f32.mrf.mxu0 }
 0x1fe   : > { %v2633_v32 = vadd.f32 %v2538_v53, %v2364_v3  ;;  %v2283_v19 = vpop.f32.mrf.mxu1  ;;  %v2768_v63 = vpack.c.bf16 %v4062_v43, %v4059_v30  ;;  %v2752_v56 = vadd.f32 %v3984_v45, %v2632_v55  ;;  %v2372_v3 = vadd.f32 %v2281_v21, %v2103_v14  ;;  %v4155_v21 = vld [vmem:[#allocation8_spill] sm:$0xff] }
 0x1ff   : > { %v2540_v38 = vpop.f32.mrf.mxu0  ;;  %v2777_v30 = vld [vmem:[%s212_s24 + $0x8] sm:$0xff] }
 0x200   : > { %v2635_v48 = vadd.f32 %v2540_v38, %v2366_v16  ;;  %v3269_v40 = vpop.f32.mrf.mxu1  ;;  %v2753_v46 = vadd.f32 %v3984_v45, %v2633_v32  ;;  %v2373_v16 = vadd.f32 %v2283_v19, %v2104_v25 }
 0x201   : > { %v2628_v36 = vadd.f32 %v3269_v40, %v2407_v5  ;;  %v2542_v57 = vpop.f32.mrf.mxu0  ;;  %v2413_v5 = vld [vmem:[#allocation2 + $0x70] sm:$0xff] }
 0x202   : > { %v2636_v54 = vadd.f32 %v2542_v57, %v2367_v12  ;;  %v2589_v15 = vpop.f32.mrf.mxu1  ;;  %v2755_v23 = vadd.f32 %v4150_v22, %v2635_v48 }
 0x203   : > { %2652 = vst.msk [vmem:[#allocation2 + $0x40] sm:$0xff] %vm223_vm6, %v2628_v36  ;;  %v2622_v60 = vadd.f32 %v2589_v15, %v2401_v0  ;;  %v2546_v29 = vpop.f32.mrf.mxu0 }
 0x204   : > { %v2638_v47 = vadd.f32 %v2546_v29, %v2369_v28  ;;  %v3270_v6 = vpop.f32.mrf.mxu1  ;;  %v2756_v62 = vadd.f32 %v4150_v22, %v2636_v54  ;;  %v2770_v20 = vpack.c.bf16 %v2755_v23, %v2752_v56  ;;  %v2422_v28 = vld [vmem:[#allocation2 + $0xb8] sm:$0xff]  ;;  %v2416_v23 = vld [vmem:[#allocation2 + $0x88] sm:$0xff] }
 0x205   : > { %2646 = vst.msk [vmem:[#allocation2 + $0x10] sm:$0xff] %vm223_vm6, %v2622_v60  ;;  %v2631_v35 = vadd.f32 %v3270_v6, %v2410_v59  ;;  %v2548_v18 = vpop.f32.mrf.mxu0 }
 0x206   : > { %v2639_v49 = vadd.f32 %v2548_v18, %v2370_v4  ;;  %v2592_v55 = vpop.f32.mrf.mxu1  ;;  %v2771_v34 = vpack.c.bf16 %v2756_v62, %v2753_v46  ;;  %v2758_v8 = vadd.f32 %v4155_v21, %v2638_v47  ;;  %v2776_v46 = vld [vmem:[%s212_s24] sm:$0xff]  ;;  %v4157_v62 = vmov 0.0  }
 0x207   : > { %2655 = vst.msk [vmem:[#allocation2 + $0x58] sm:$0xff] %vm223_vm6, %v2631_v35  ;;  %v2625_v53 = vadd.f32 %v2592_v55, %v2404_v26  ;;  %v2550_v58 = vpop.f32.mrf.mxu0  ;;  %v2778_v35 = vpack.c.bf16 %v2777_v30, %v2776_v46 }
 0x208   : > { %v2641_v32 = vadd.f32 %v2550_v58, %v2372_v3  ;;  %v3273_v38 = vpop.f32.mrf.mxu1  ;;  %v2759_v54 = vadd.f32 %v4155_v21, %v2639_v49 }
 0x209   : > { %2649 = vst.msk [vmem:[#allocation2 + $0x28] sm:$0xff] %vm223_vm6, %v2625_v53  ;;  %v2640_v11 = vadd.f32 %v3273_v38, %v2419_v9  ;;  %v2552_v12 = vpop.f32.mrf.mxu0 }
 0x20a   : > { %v2642_v48 = vadd.f32 %v2552_v12, %v2373_v16  ;;  %v2605_v40 = vpop.f32.mrf.mxu1  ;;  %v2761_v36 = vadd.f32 %v4156_v17, %v2641_v32 }
 0x20b   : > { %2664 = vst.msk [vmem:[#allocation2 + $0xa0] sm:$0xff] %vm223_vm6, %v2640_v11  ;;  %v2634_v57 = vadd.f32 %v2605_v40, %v2413_v5 }
 0x20c   : > { %v3274_v19 = vpop.f32.mrf.mxu1  ;;  %v2762_v0 = vadd.f32 %v4156_v17, %v2642_v48  ;;  %v2773_v15 = vpack.c.bf16 %v2761_v36, %v2758_v8 }
 0x20d   : > { %2658 = vst.msk [vmem:[#allocation2 + $0x70] sm:$0xff] %vm223_vm6, %v2634_v57  ;;  %v2643_v56 = vadd.f32 %v3274_v19, %v2422_v28 }
 0x20e   : > { %v2608_v41 = vpop.f32.mrf.mxu1  ;;  %v2774_v42 = vpack.c.bf16 %v2762_v0, %v2759_v54  ;;  %v2679_v43 = vld [vmem:[#allocation2 + $0x58] sm:$0xff] }
 0x20f   : > { %2667 = vst.msk [vmem:[#allocation2 + $0xb8] sm:$0xff] %vm223_vm6, %v2643_v56  ;;  %v2637_v33 = vadd.f32 %v2608_v41, %v2416_v23 }
 0x210   : > { %2791 = vmatprep.subr.bf16.mxu1 %v2774_v42  ;;  %v2673_v27 = vld [vmem:[#allocation2 + $0x28] sm:$0xff] }
 0x211   : > { %2661 = vst.msk [vmem:[#allocation2 + $0x88] sm:$0xff] %vm223_vm6, %v2637_v33  ;;  %2792 = vmatpush1.bf16.msra.mxu1 %v2773_v15 }
 0x212   : > { %2793 = vmatprep.subr.bf16.mxu1 %v2771_v34  ;;  %v2688_v24 = vld [vmem:[#allocation2 + $0xa0] sm:$0xff] }
 0x213   : > { %v2760_v4 = vadd.f32 %v4155_v21, %v2688_v24 }
 0x214   : > { %v2682_v29 = vld [vmem:[#allocation2 + $0x70] sm:$0xff] }
 0x215   : > { %2794 = vmatpush1.bf16.msra.mxu1 %v2770_v20  ;;  %v2676_v20 = vld [vmem:[#allocation2 + $0x40] sm:$0xff] }
 0x216   : > { %v2691_v14 = vld [vmem:[#allocation2 + $0xb8] sm:$0xff]  ;;  %2795 = vmatprep.subr.bf16.mxu1 %v2768_v63  ;;  %v2754_v63 = vadd.f32 %v3984_v45, %v2682_v29  ;;  %v2748_v13 = vadd.f32 %v3996_v31, %v2676_v20  ;;  %v2670_v45 = vld [vmem:[#allocation2 + $0x10] sm:$0xff] }
 0x217   : > { %v2763_v60 = vadd.f32 %v4156_v17, %v2691_v14 }
 0x218   : > { %v2685_v47 = vld [vmem:[#allocation2 + $0x88] sm:$0xff] }
 0x219   : > { %v2775_v59 = vpack.c.bf16 %v2763_v60, %v2760_v4  ;;  %v2757_v6 = vadd.f32 %v4150_v22, %v2685_v47  ;;  %2796 = vmatpush1.bf16.msra.mxu1 %v2767_v51  ;;  %v2751_v22 = vadd.f32 %v3998_v1, %v2679_v43  ;;  %v2742_v1 = vadd.f32 %v4011_v39, %v2670_v45 }
 0x21a   : > { %2797 = vmatprep.subr.bf16.mxu1 %v2765_v10  ;;  %v2745_v10 = vadd.f32 %v4015_v61, %v2673_v27 }
 0x21b   : > { %3276 = vmatpush3.bf16.msra.mxu0 %v2775_v59  ;;  %v2772_v18 = vpack.c.bf16 %v2757_v6, %v2754_v63  ;;  %v2769_v44 = vpack.c.bf16 %v2751_v22, %v2748_v13 }
 0x21c   : > { %3277 = vmatprep.subr.bf16.mxu0 %v4157_v62  ;;  %v2766_v52 = vpack.c.bf16 %v2745_v10, %v2742_v1 }
 0x21d   : > { %2798 = vmatpush1.bf16.msra.mxu1 %v2764_v7 }
 0x21f   : > { %3278 = vmatpush3.bf16.msra.mxu0 %v2772_v18 }
 0x220   : > { %3279 = vmatprep.subr.bf16.mxu0 %v4157_v62  ;;  %3130 = vmatmul.mubr.msk.bf16.vlgmr.msra.gmra.mxu1 %vm2779_vm12, %v2778_v35 }
 0x223   : > { %3280 = vmatpush3.bf16.msra.mxu0 %v2769_v44 }
 0x224   : > { %3281 = vmatprep.subr.bf16.mxu0 %v4157_v62 }
 0x227   : > { %3282 = vmatpush3.bf16.msra.mxu0 %v2766_v52 }
 0x22a   : > { %3284 = vmatmul.mubr.msk.bf16.vlgmr.msra.gmra.mxu0 %vm2779_vm12, %v2778_v35 }
 0x2e0   : > { %v2817_v31 = vpop.f32.mrf.mxu1 }
 0x2e1   : > { %2867 = vst [vmem:[%s217_s28] sm:$0xff] %v2817_v31 }
 0x2e2   : > { %v2819_v37 = vpop.f32.mrf.mxu1 }
 0x2e3   : > { %2868 = vst [vmem:[%s217_s28 + $0x8] sm:$0xff] %v2819_v37 }
 0x2e4   : > { %v2821_v7 = vpop.f32.mrf.mxu1 }
 0x2e5   : > { %2870 = vst [vmem:[%s217_s28 + $0x18] sm:$0xff] %v2821_v7 }
 0x2e6   : > { %v2823_v61 = vpop.f32.mrf.mxu1 }
 0x2e7   : > { %2871 = vst [vmem:[%s217_s28 + $0x20] sm:$0xff] %v2823_v61 }
 0x2ea   : > { %v2860_v50 = vpop.f32.mrf.mxu0 }
 0x2eb   : > { %2869 = vst.msk [vmem:[%s217_s28 + $0x10] sm:$0xff] %vm223_vm6, %v2860_v50 }
 0x2ec   : > { %v3285_v39 = vpop.f32.mrf.mxu0 }
 0x2ee   : > { %v2863_v51 = vpop.f32.mrf.mxu0 }
 0x2ef   : > { %2872 = vst.msk [vmem:[%s217_s28 + $0x28] sm:$0xff] %vm223_vm6, %v2863_v51 }
 0x2f0   : > { %v3286_v2 = vpop.f32.mrf.mxu0 }
 0x2f1 PF: > { %s14_s15 = sadd.s32 1, %s3364_s15  }
 0x2f2   : > { %p11_p4 = scmp.ge.s32.totalorder %s14_s15, 4  }
 0x2f4   :  { %13 = sbr.rel (!%p11_p4) target bundleno = 1 (0x1), region = 77 }

</bundles_post_ra>
